<compile_context>
chip_gen: v6e
topology: v6e:2x2x1
jax: 0.10.0
libtpu: 0.0.40
codegen_flags: <defaults>
</compile_context>

<pallas_src>
import functools
import math

import jax
import jax.numpy as jnp
from jax.experimental import pallas as pl
from jax.experimental.pallas import tpu as pltpu

_LANE = 128
_SUBLANE = 8
_NEG_INF = -1e30


def _ceil_to(x, m):
    return -(-x // m) * m


# ------------------------------ slab packing ---------------------------------

def _pack_slab(entries):
    """Pack named 2-D (or leading-batch 3-D) matrices into one lane-padded slab.

    Every entry is padded to a multiple of 8 rows (sublane aligned) and to a
    common lane width (multiple of 128), then concatenated along the row axis.
    Returns (slab_f32, layout) with layout[name] = (row_offset, rows, cols).
    """
    lane = _LANE * max(1, max(_ceil_to(int(a.shape[-1]), _LANE) // _LANE
                              for _, a in entries))
    layout, blocks, off = {}, [], 0
    for name, a in entries:
        a = jnp.asarray(a, jnp.float32)
        r, c = int(a.shape[-2]), int(a.shape[-1])
        rp = _ceil_to(r, _SUBLANE)
        layout[name] = (off, r, c)
        pad = [(0, 0)] * (a.ndim - 2) + [(0, rp - r), (0, lane - c)]
        blocks.append(jnp.pad(a, pad))
        off += rp
    return jnp.concatenate(blocks, axis=-2), layout


def _pack_parameters(params, args):
    """Pack every weight/bias/LN row into one shared slab (cacheable per model)."""
    d = args["d_model"]
    F = args["num_box_features"]
    R = args["num_relations"]
    r_pad = _ceil_to(R, _LANE)

    row = lambda v: jnp.asarray(v, jnp.float32).reshape(1, -1)
    ent = []
    add = lambda n, a: ent.append((n, jnp.asarray(a, jnp.float32)))

    def add_attn(pfx, p):
        add(pfx + "_wqkv", jnp.concatenate([p["wq"], p["wk"], p["wv"]], axis=1))
        add(pfx + "_bqkv", jnp.concatenate([p["bq"], p["bk"], p["bv"]]).reshape(1, -1))
        add(pfx + "_wo", p["wo"])
        add(pfx + "_bo", row(p["bo"]))

    add("box_fc_w", params["box_fc_w"])
    add("box_fc_b", row(params["box_fc_b"]))
    add("rel_emb", params["rel_emb"])
    te_w1 = params["te_w1"]          # concat order: [subject, object, rel_emb]
    add("te_w1_s", te_w1[:F])
    add("te_w1_o", te_w1[F:2 * F])
    add("te_w1_r", te_w1[2 * F:])
    add("te_b1", row(params["te_b1"]))
    add("te_w2", params["te_w2"])
    add("te_b2", row(params["te_b2"]))
    td_w1 = params["td_w1"]          # concat order: [sub_ctx, obj_ctx, dec, pairwise]
    add("td_w1_s", td_w1[:d])
    add("td_w1_o", td_w1[d:2 * d])
    add("td_w1_d", td_w1[2 * d:3 * d])
    add("td_w1_p", td_w1[3 * d:])
    add("td_b1", row(params["td_b1"]))
    # lane-pad the final projection so the output store is an unmasked full vst
    add("td_w2", jnp.pad(jnp.asarray(params["td_w2"], jnp.float32),
                         ((0, 0), (0, r_pad - R))))
    add("td_b2", jnp.pad(row(params["td_b2"]), ((0, 0), (0, r_pad - R))))
    add("enc_norm_g", row(params["enc_norm_g"]))
    add("enc_norm_b", row(params["enc_norm_b"]))
    add("dec_norm_g", row(params["dec_norm_g"]))
    add("dec_norm_b", row(params["dec_norm_b"]))

    for i, lp in enumerate(params["encoder_layers"]):
        add_attn(f"enc{i}_sa", lp["self_attn"])
        add(f"enc{i}_ln1_g", row(lp["ln1_g"]))
        add(f"enc{i}_ln1_b", row(lp["ln1_b"]))
        add(f"enc{i}_ffn_w1", lp["ffn_w1"])
        add(f"enc{i}_ffn_b1", row(lp["ffn_b1"]))
        add(f"enc{i}_ffn_w2", lp["ffn_w2"])
        add(f"enc{i}_ffn_b2", row(lp["ffn_b2"]))
        add(f"enc{i}_ln2_g", row(lp["ln2_g"]))
        add(f"enc{i}_ln2_b", row(lp["ln2_b"]))

    for i, lp in enumerate(params["decoder_layers"]):
        add_attn(f"dec{i}_sa", lp["self_attn"])
        add_attn(f"dec{i}_ca", lp["cross_attn"])
        add(f"dec{i}_ln1_g", row(lp["ln1_g"]))
        add(f"dec{i}_ln1_b", row(lp["ln1_b"]))
        add(f"dec{i}_ln2_g", row(lp["ln2_g"]))
        add(f"dec{i}_ln2_b", row(lp["ln2_b"]))
        add(f"dec{i}_ffn_w1", lp["ffn_w1"])
        add(f"dec{i}_ffn_b1", row(lp["ffn_b1"]))
        add(f"dec{i}_ffn_w2", lp["ffn_w2"])
        add(f"dec{i}_ffn_b2", row(lp["ffn_b2"]))
        add(f"dec{i}_ln3_g", row(lp["ln3_g"]))
        add(f"dec{i}_ln3_b", row(lp["ln3_b"]))

    return _pack_slab(ent)


def _pack_batched(box_features, pairwise_features, subject_features,
                  relation_ids, object_features, box_padding_mask,
                  triplet_padding_mask, subject_indices, object_indices):
    """Pack the 9 per-example inputs into one per-batch f32 slab (one DMA)."""
    B, P = pairwise_features.shape[:2]
    N_box = box_features.shape[1]
    f32 = jnp.float32
    # Index columns are stored as f32 (values < 2^24, exactly representable).
    ent = [
        ("box", jnp.asarray(box_features, f32)),
        ("subj", jnp.asarray(subject_features, f32)),
        ("obj", jnp.asarray(object_features, f32)),
        ("pw", jnp.asarray(pairwise_features, f32)),
        ("rel_ids", jnp.asarray(relation_ids, f32).reshape(B, P, 1)),
        ("sub_idx", jnp.asarray(subject_indices, f32).reshape(B, P, 1)),
        ("obj_idx", jnp.asarray(object_indices, f32).reshape(B, P, 1)),
        ("box_bias", jnp.where(jnp.asarray(box_padding_mask), _NEG_INF, 0.0)
                        .astype(f32).reshape(B, 1, N_box)),
        ("trip_bias", jnp.where(jnp.asarray(triplet_padding_mask), _NEG_INF, 0.0)
                         .astype(f32).reshape(B, 1, P)),
    ]
    return _pack_slab(ent)


# ------------------------------- fused kernel --------------------------------

def _fused_transformer_kernel(shared_ref, batched_ref, o_ref, *,
                              s_lay, b_lay, nhead, n_enc, n_dec, tb, cdt):
    """Whole Transformer forward for `tb` batch elements, fully VMEM-resident."""
    f32 = jnp.float32

    def SW(name):                       # static, sublane-aligned slice of the weight slab
        off, r, c = s_lay[name]
        return shared_ref[off:off + r, 0:c]

    d = s_lay["box_fc_w"][2]
    dh = d // nhead
    scale = 1.0 / math.sqrt(dh)
    n_box = b_lay["box"][1]
    p_len = b_lay["subj"][1]
    n_rel = s_lay["rel_emb"][1]

    def mm(a, b):                       # MXU matmul: bf16 operands, f32 accumulation
        return jnp.dot(a.astype(cdt), b.astype(cdt), preferred_element_type=f32)

    def mm_f32(a, b):                   # exact path: one-hot gathers / embedding lookup
        return jnp.dot(a, b, preferred_element_type=f32)

    def layer_norm(x, pfx, eps=1e-5):   # f32 throughout
        mu = jnp.mean(x, axis=-1, keepdims=True)
        xc = x - mu
        var = jnp.mean(xc * xc, axis=-1, keepdims=True)
        return xc * jax.lax.rsqrt(var + eps) * SW(pfx + "_g") + SW(pfx + "_b")

    def mha(xq, xkv, pfx, bias, is_self):
        wqkv, bqkv = SW(pfx + "_wqkv"), SW(pfx + "_bqkv")
        if is_self:                     # fused (T, d) @ (d, 3d) QKV projection
            qkv = mm(xq, wqkv) + bqkv
            q, k, v = qkv[:, :d], qkv[:, d:2 * d], qkv[:, 2 * d:]
        else:
            q = mm(xq, wqkv[:, :d]) + bqkv[:, :d]
            kv = mm(xkv, wqkv[:, d:]) + bqkv[:, d:]
            k, v = kv[:, :d], kv[:, d:]
        heads = []
        for h in range(nhead):          # static unroll; heads live in lane slices
            sl = slice(h * dh, (h + 1) * dh)
            s = jax.lax.dot_general(q[:, sl].astype(cdt), k[:, sl].astype(cdt),
                                    (((1,), (1,)), ((), ())),
                                    preferred_element_type=f32) * scale
            s = s + bias                # additive mask; scores & softmax stay f32
            s = s - jnp.max(s, axis=-1, keepdims=True)
            ex = jnp.exp(s)
            p = ex * pl.reciprocal(jnp.sum(ex, axis=-1, keepdims=True), approx=True)
            heads.append(mm(p, v[:, sl]))                    # (Tq, dh)
        ctx_h = jnp.concatenate(heads, axis=-1)              # (Tq, d)
        return mm(ctx_h, SW(pfx + "_wo")) + SW(pfx + "_bo")  # single output projection

    def ffn(x, pfx):
        h = jnp.maximum(mm(x, SW(pfx + "_w1")) + SW(pfx + "_b1"), 0.0)
        return mm(h, SW(pfx + "_w2")) + SW(pfx + "_b2")

    for eb in range(tb):                # batch elements handled by this grid step
        def BV(name, _eb=eb):
            off, r, c = b_lay[name]
            return batched_ref[_eb, off:off + r, 0:c]

        box, subj, obj, pw = BV("box"), BV("subj"), BV("obj"), BV("pw")
        rel_ids = BV("rel_ids").astype(jnp.int32)            # (P, 1)
        sub_idx = BV("sub_idx").astype(jnp.int32)            # (P, 1)
        obj_idx = BV("obj_idx").astype(jnp.int32)            # (P, 1)
        box_bias = BV("box_bias")                            # (1, N_box)
        trip_bias = BV("trip_bias")                          # (1, P)

        # ---- box_features_fc + TransformerEncoder (post-norm) ---------------
        ctx = mm(box, SW("box_fc_w")) + SW("box_fc_b")       # (N_box, d)
        for i in range(n_enc):
            a = mha(ctx, ctx, f"enc{i}_sa", box_bias, True)
            ctx = layer_norm(ctx + a, f"enc{i}_ln1")
            hdn = ffn(ctx, f"enc{i}_ffn")
            ctx = layer_norm(ctx + hdn, f"enc{i}_ln2")
        ctx = layer_norm(ctx, "enc_norm")

        # ---- triplet encoder (embedding lookup as one-hot matmul) -----------
        rel_onehot = (rel_ids == jax.lax.broadcasted_iota(
            jnp.int32, (p_len, n_rel), 1)).astype(f32)
        rel = mm_f32(rel_onehot, SW("rel_emb"))              # (P, E)
        hdn = jnp.maximum(mm(subj, SW("te_w1_s")) + mm(obj, SW("te_w1_o"))
                          + mm(rel, SW("te_w1_r")) + SW("te_b1"), 0.0)
        dec = mm(hdn, SW("te_w2")) + SW("te_b2")             # (P, d)

        # ---- TransformerDecoder with in-kernel causal + padding bias --------
        rows = jax.lax.broadcasted_iota(jnp.int32, (p_len, p_len), 0)
        cols = jax.lax.broadcasted_iota(jnp.int32, (p_len, p_len), 1)
        self_bias = jnp.where(cols <= rows, 0.0, _NEG_INF).astype(f32) + trip_bias
        for i in range(n_dec):
            a = mha(dec, dec, f"dec{i}_sa", self_bias, True)
            dec = layer_norm(dec + a, f"dec{i}_ln1")
            a = mha(dec, ctx, f"dec{i}_ca", box_bias, False)
            dec = layer_norm(dec + a, f"dec{i}_ln2")
            hdn = ffn(dec, f"dec{i}_ffn")
            dec = layer_norm(dec + hdn, f"dec{i}_ln3")
        dec = layer_norm(dec, "dec_norm")

        # ---- gather contextual box features (one-hot matmul gather, f32) ----
        giota = jax.lax.broadcasted_iota(jnp.int32, (p_len, n_box), 1)
        sub_ctx = mm_f32((sub_idx == giota).astype(f32), ctx)   # (P, d)
        obj_ctx = mm_f32((obj_idx == giota).astype(f32), ctx)   # (P, d)

        # ---- triplet decoder (td_w2/b2 lane-padded -> unmasked, lane-dense store)
        hdn = jnp.maximum(mm(sub_ctx, SW("td_w1_s")) + mm(obj_ctx, SW("td_w1_o"))
                          + mm(dec, SW("td_w1_d")) + mm(pw, SW("td_w1_p"))
                          + SW("td_b1"), 0.0)
        o_ref[eb] = (mm(hdn, SW("td_w2")) + SW("td_b2")).astype(o_ref.dtype)


# --------------------------------- wrapper ------------------------------------

def transformer_forward(params, args, box_features, pairwise_features,
                        subject_features, relation_ids, object_features,
                        box_padding_mask, triplet_padding_mask,
                        batch_indices, subject_indices, object_indices,
                        *, batch_per_step=1, matmul_dtype=jnp.bfloat16,
                        vmem_limit_bytes=32 * 1024 * 1024):
    # TODO(synk): batch_indices is assumed to equal repeat(arange(B), P), which is
    # how the reference module lays it out (required for its .view(B, max_k, d)).
    del batch_indices
    B, P = pairwise_features.shape[:2]
    N_box = box_features.shape[1]
    R = args["num_relations"]
    d = args["d_model"]
    ff = args["dim_feedforward"]
    nhead = args["nhead"]
    r_pad = _ceil_to(R, _LANE)
    tb = batch_per_step
    if B % tb != 0:
        raise ValueError("batch size must be divisible by batch_per_step")

    # NOTE: the weight slab is a pure function of `params`; in production pack
    # it once and reuse across calls.
    shared_slab, s_lay = _pack_parameters(params, args)
    batched_slab, b_lay = _pack_batched(
        box_features, pairwise_features, subject_features, relation_ids,
        object_features, box_padding_mask, triplet_padding_mask,
        subject_indices, object_indices)
    brows, blane = batched_slab.shape[1], batched_slab.shape[2]

    # VMEM budget check: v7x has only 64 MiB physical (32 MiB scoped default);
    # everything here is VMEM-resident and (conservatively) double-buffered.
    resident_bytes = 4 * (2 * shared_slab.size
                          + 2 * tb * brows * blane
                          + 2 * tb * P * r_pad)
    if resident_bytes > vmem_limit_bytes - (4 << 20):
        raise ValueError(
            f"VMEM-resident working set ~{resident_bytes} B exceeds the budget; "
            "tile the encoder/decoder weights (pltpu.emit_pipeline) before scaling.")

    # Advisory cost estimate: shared weights counted ONCE (constant-index block),
    # batched inputs once per element, plus the output writeback.
    flops = int(2 * B * (N_box + P) * d * (4 * d + 2 * ff)
                * (args["num_encoder_layers"] + args["num_decoder_layers"]))
    transcendentals = int(B * nhead * (
        args["num_encoder_layers"] * N_box * N_box
        + args["num_decoder_layers"] * (P * P + P * N_box)))
    bytes_accessed = int(4 * (shared_slab.size + batched_slab.size + B * P * r_pad))

    kernel = functools.partial(
        _fused_transformer_kernel, s_lay=s_lay, b_lay=b_lay, nhead=nhead,
        n_enc=args["num_encoder_layers"], n_dec=args["num_decoder_layers"],
        tb=tb, cdt=matmul_dtype)

    out = pl.pallas_call(
        kernel,
        out_shape=jax.ShapeDtypeStruct((B, P, r_pad), jnp.float32),
        grid=(B // tb,),
        in_specs=[
            pl.BlockSpec(shared_slab.shape, lambda b: (0, 0)),       # weights: 1 DMA
            pl.BlockSpec((tb, brows, blane), lambda b: (b, 0, 0)),   # batched slab
        ],
        out_specs=pl.BlockSpec((tb, P, r_pad), lambda b: (b, 0, 0)),
        compiler_params=pltpu.CompilerParams(
            dimension_semantics=("parallel",),      # 2 TCs on v7x; no-op on v5e/v6e
            vmem_limit_bytes=vmem_limit_bytes),
        cost_estimate=pl.CostEstimate(flops=flops,
                                      transcendentals=transcendentals,
                                      bytes_accessed=bytes_accessed),
    )(shared_slab, batched_slab)

    return out[:, :, :R] if r_pad != R else out


# -------------------------------- init helpers --------------------------------

class KeyGen:
    def __init__(self, key):
        self.key = key

    def __call__(self):
        self.key, sub = jax.random.split(self.key)
        return sub


def xavier(key, shape):
    fan_in, fan_out = shape[-2], shape[-1]
    a = math.sqrt(6.0 / (fan_in + fan_out))
    return jax.random.uniform(key, shape, jnp.float32, -a, a)


def init_params(key, args):
    kg = KeyGen(key)
    d = args["d_model"]
    F = args["num_box_features"]
    E = args["relation_embedding_dim"]
    R = args["num_relations"]
    ff = args["dim_feedforward"]
    npw = args["num_pairwise_features"]

    te_in = 2 * F + E
    te_hidden = 2 ** math.floor(math.log2((te_in * d) ** 0.5))
    td_in = 3 * d + npw
    td_hidden = 2 ** math.floor(math.log2((td_in * R) ** 0.5))

    zeros = lambda n: jnp.zeros((n,), jnp.float32)
    ones = lambda n: jnp.ones((n,), jnp.float32)

    def mha_params():
        return dict(wq=xavier(kg(), (d, d)), bq=zeros(d),
                    wk=xavier(kg(), (d, d)), bk=zeros(d),
                    wv=xavier(kg(), (d, d)), bv=zeros(d),
                    wo=xavier(kg(), (d, d)), bo=zeros(d))

    def enc_layer():
        return dict(self_attn=mha_params(),
                    ln1_g=ones(d), ln1_b=zeros(d),
                    ffn_w1=xavier(kg(), (d, ff)), ffn_b1=zeros(ff),
                    ffn_w2=xavier(kg(), (ff, d)), ffn_b2=zeros(d),
                    ln2_g=ones(d), ln2_b=zeros(d))

    def dec_layer():
        return dict(self_attn=mha_params(), cross_attn=mha_params(),
                    ln1_g=ones(d), ln1_b=zeros(d),
                    ln2_g=ones(d), ln2_b=zeros(d),
                    ffn_w1=xavier(kg(), (d, ff)), ffn_b1=zeros(ff),
                    ffn_w2=xavier(kg(), (ff, d)), ffn_b2=zeros(d),
                    ln3_g=ones(d), ln3_b=zeros(d))

    return dict(
        box_fc_w=xavier(kg(), (F, d)), box_fc_b=zeros(d),
        rel_emb=xavier(kg(), (R, E)),
        te_w1=xavier(kg(), (te_in, te_hidden)), te_b1=zeros(te_hidden),
        te_w2=xavier(kg(), (te_hidden, d)), te_b2=zeros(d),
        td_w1=xavier(kg(), (td_in, td_hidden)), td_b1=zeros(td_hidden),
        td_w2=xavier(kg(), (td_hidden, R)), td_b2=zeros(R),
        encoder_layers=[enc_layer() for _ in range(args["num_encoder_layers"])],
        decoder_layers=[dec_layer() for _ in range(args["num_decoder_layers"])],
        enc_norm_g=ones(d), enc_norm_b=zeros(d),
        dec_norm_g=ones(d), dec_norm_b=zeros(d),
    )


# ------------------------------------ main ------------------------------------

if __name__ == "__main__":
    args = dict(d_model=32, nhead=4, dim_feedforward=64,
                num_encoder_layers=2, num_decoder_layers=2,
                num_box_features=8, num_relations=16,
                relation_embedding_dim=8, num_pairwise_features=8,
                max_k=8)

    kg = KeyGen(jax.random.PRNGKey(0))
    params = init_params(kg(), args)

    B, N_box, P = 2, 10, args["max_k"]
    F = args["num_box_features"]

    box_features = jax.random.normal(kg(), (B, N_box, F), jnp.float32)
    pairwise_features = jax.random.normal(kg(), (B, P, args["num_pairwise_features"]), jnp.float32)
    subject_features = jax.random.normal(kg(), (B, P, F), jnp.float32)
    object_features = jax.random.normal(kg(), (B, P, F), jnp.float32)
    relation_ids = jax.random.randint(kg(), (B, P), 0, args["num_relations"])

    # True == padded (PyTorch key_padding_mask convention)
    box_padding_mask = jnp.zeros((B, N_box), dtype=bool).at[0, 8:].set(True)
    triplet_padding_mask = jnp.zeros((B, P), dtype=bool).at[0, 6:].set(True)

    batch_indices = jnp.repeat(jnp.arange(B), P)                       # (B*P,)
    subject_indices = jax.random.randint(kg(), (B * P,), 0, 8)
    object_indices = jax.random.randint(kg(), (B * P,), 0, 8)

    out = transformer_forward(params, args, box_features, pairwise_features,
                              subject_features, relation_ids, object_features,
                              box_padding_mask, triplet_padding_mask,
                              batch_indices, subject_indices, object_indices)
    out = jax.block_until_ready(out)
    assert out.shape == (B, P, args["num_relations"]), out.shape
    assert bool(jnp.all(jnp.isfinite(out)))
    print("KERNEL_OK")
</pallas_src>

<mosaic_0001>
module attributes {stable_mosaic.version = 11 : i64} {
  func.func @_fused_transformer_kernel(%arg0: i32, %arg1: memref<1360x128xf32, #tpu.memory_space<vmem>>, %arg2: memref<1x80x128xf32, #tpu.memory_space<vmem>>, %arg3: memref<1x8x128xf32, #tpu.memory_space<vmem>>) attributes {dimension_semantics = [#tpu.dimension_semantics<parallel>], iteration_bounds = array<i64: 2>, scalar_prefetch = 0 : i64, scratch_operands = 0 : i64, tpu.core_type = #tpu.core_type<tc>, window_params = [{pipeline_mode = #tpu.pipeline_mode<synchronous>, transform_indices = @transform_0, window_bounds = array<i64: 1360, 128>}, {transform_indices = @transform_1, window_bounds = array<i64: 1, 80, 128>}, {transform_indices = @transform_2, window_bounds = array<i64: 1, 8, 128>}]} {
    %c0 = arith.constant 0 : index
    %c0_0 = arith.constant 0 : index
    %c0_1 = arith.constant 0 : index
    %0 = vector.load %arg2[%c0, %c0_0, %c0_1] : memref<1x80x128xf32, #tpu.memory_space<vmem>>, vector<1x10x8xf32>
    %1 = vector.shape_cast %0 : vector<1x10x8xf32> to vector<10x8xf32>
    %c0_2 = arith.constant 0 : index
    %c16 = arith.constant 16 : index
    %c0_3 = arith.constant 0 : index
    %2 = vector.load %arg2[%c0_2, %c16, %c0_3] : memref<1x80x128xf32, #tpu.memory_space<vmem>>, vector<1x8x8xf32>
    %3 = vector.shape_cast %2 : vector<1x8x8xf32> to vector<8x8xf32>
    %c0_4 = arith.constant 0 : index
    %c24 = arith.constant 24 : index
    %c0_5 = arith.constant 0 : index
    %4 = vector.load %arg2[%c0_4, %c24, %c0_5] : memref<1x80x128xf32, #tpu.memory_space<vmem>>, vector<1x8x8xf32>
    %5 = vector.shape_cast %4 : vector<1x8x8xf32> to vector<8x8xf32>
    %c0_6 = arith.constant 0 : index
    %c32 = arith.constant 32 : index
    %c0_7 = arith.constant 0 : index
    %6 = vector.load %arg2[%c0_6, %c32, %c0_7] : memref<1x80x128xf32, #tpu.memory_space<vmem>>, vector<1x8x8xf32>
    %7 = vector.shape_cast %6 : vector<1x8x8xf32> to vector<8x8xf32>
    %c0_8 = arith.constant 0 : index
    %c40 = arith.constant 40 : index
    %c0_9 = arith.constant 0 : index
    %8 = vector.load %arg2[%c0_8, %c40, %c0_9] : memref<1x80x128xf32, #tpu.memory_space<vmem>>, vector<1x8x1xf32>
    %9 = vector.shape_cast %8 : vector<1x8x1xf32> to vector<8x1xf32>
    %10 = arith.fptosi %9 : vector<8x1xf32> to vector<8x1xi32>
    %c0_10 = arith.constant 0 : index
    %c48 = arith.constant 48 : index
    %c0_11 = arith.constant 0 : index
    %11 = vector.load %arg2[%c0_10, %c48, %c0_11] : memref<1x80x128xf32, #tpu.memory_space<vmem>>, vector<1x8x1xf32>
    %12 = vector.shape_cast %11 : vector<1x8x1xf32> to vector<8x1xf32>
    %13 = arith.fptosi %12 : vector<8x1xf32> to vector<8x1xi32>
    %c0_12 = arith.constant 0 : index
    %c56 = arith.constant 56 : index
    %c0_13 = arith.constant 0 : index
    %14 = vector.load %arg2[%c0_12, %c56, %c0_13] : memref<1x80x128xf32, #tpu.memory_space<vmem>>, vector<1x8x1xf32>
    %15 = vector.shape_cast %14 : vector<1x8x1xf32> to vector<8x1xf32>
    %16 = arith.fptosi %15 : vector<8x1xf32> to vector<8x1xi32>
    %c0_14 = arith.constant 0 : index
    %c64 = arith.constant 64 : index
    %c0_15 = arith.constant 0 : index
    %17 = vector.load %arg2[%c0_14, %c64, %c0_15] : memref<1x80x128xf32, #tpu.memory_space<vmem>>, vector<1x1x10xf32>
    %18 = vector.shape_cast %17 : vector<1x1x10xf32> to vector<1x10xf32>
    %c0_16 = arith.constant 0 : index
    %c72 = arith.constant 72 : index
    %c0_17 = arith.constant 0 : index
    %19 = vector.load %arg2[%c0_16, %c72, %c0_17] : memref<1x80x128xf32, #tpu.memory_space<vmem>>, vector<1x1x8xf32>
    %20 = vector.shape_cast %19 : vector<1x1x8xf32> to vector<1x8xf32>
    %c0_18 = arith.constant 0 : index
    %c0_19 = arith.constant 0 : index
    %21 = vector.load %arg1[%c0_18, %c0_19] : memref<1360x128xf32, #tpu.memory_space<vmem>>, vector<8x32xf32>
    %22 = arith.truncf %1 : vector<10x8xf32> to vector<10x8xbf16>
    %23 = arith.truncf %21 : vector<8x32xf32> to vector<8x32xbf16>
    %cst = arith.constant dense<0.000000e+00> : vector<10x32xf32>
    %24 = tpu.matmul %22, %23, %cst {dimension_numbers = #tpu.dot_dimension_numbers<[1], [0], [0], [1], [0, 0, 1, 1], [], []>} : vector<10x8xbf16>, vector<8x32xbf16>, vector<10x32xf32> -> vector<10x32xf32>
    %c8 = arith.constant 8 : index
    %c0_20 = arith.constant 0 : index
    %25 = vector.load %arg1[%c8, %c0_20] : memref<1360x128xf32, #tpu.memory_space<vmem>>, vector<1x32xf32>
    %26 = vector.broadcast %25 : vector<1x32xf32> to vector<10x32xf32>
    %27 = arith.addf %24, %26 : vector<10x32xf32>
    %c272 = arith.constant 272 : index
    %c0_21 = arith.constant 0 : index
    %28 = vector.load %arg1[%c272, %c0_21] : memref<1360x128xf32, #tpu.memory_space<vmem>>, vector<32x96xf32>
    %c304 = arith.constant 304 : index
    %c0_22 = arith.constant 0 : index
    %29 = vector.load %arg1[%c304, %c0_22] : memref<1360x128xf32, #tpu.memory_space<vmem>>, vector<1x96xf32>
    %30 = arith.truncf %27 : vector<10x32xf32> to vector<10x32xbf16>
    %31 = arith.truncf %28 : vector<32x96xf32> to vector<32x96xbf16>
    %cst_23 = arith.constant dense<0.000000e+00> : vector<10x96xf32>
    %32 = tpu.matmul %30, %31, %cst_23 {dimension_numbers = #tpu.dot_dimension_numbers<[1], [0], [0], [1], [0, 0, 1, 1], [], []>} : vector<10x32xbf16>, vector<32x96xbf16>, vector<10x96xf32> -> vector<10x96xf32>
    %33 = vector.broadcast %29 : vector<1x96xf32> to vector<10x96xf32>
    %34 = arith.addf %32, %33 : vector<10x96xf32>
    %35 = vector.extract_strided_slice %34 {offsets = [0, 0], sizes = [10, 32], strides = [1, 1]} : vector<10x96xf32> to vector<10x32xf32>
    %36 = vector.extract_strided_slice %34 {offsets = [0, 32], sizes = [10, 32], strides = [1, 1]} : vector<10x96xf32> to vector<10x32xf32>
    %37 = vector.extract_strided_slice %34 {offsets = [0, 64], sizes = [10, 32], strides = [1, 1]} : vector<10x96xf32> to vector<10x32xf32>
    %38 = vector.extract_strided_slice %35 {offsets = [0, 0], sizes = [10, 8], strides = [1, 1]} : vector<10x32xf32> to vector<10x8xf32>
    %39 = arith.truncf %38 : vector<10x8xf32> to vector<10x8xbf16>
    %40 = vector.extract_strided_slice %36 {offsets = [0, 0], sizes = [10, 8], strides = [1, 1]} : vector<10x32xf32> to vector<10x8xf32>
    %41 = arith.truncf %40 : vector<10x8xf32> to vector<10x8xbf16>
    %cst_24 = arith.constant dense<0.000000e+00> : vector<10x10xf32>
    %42 = tpu.matmul %39, %41, %cst_24 {dimension_numbers = #tpu.dot_dimension_numbers<[1], [1], [0], [0], [0, 0, 1, 0], [], []>} : vector<10x8xbf16>, vector<10x8xbf16>, vector<10x10xf32> -> vector<10x10xf32>
    %cst_25 = arith.constant 0.353553385 : f32
    %43 = vector.broadcast %cst_25 : f32 to vector<10x10xf32>
    %44 = arith.mulf %42, %43 : vector<10x10xf32>
    %45 = vector.broadcast %18 : vector<1x10xf32> to vector<10x10xf32>
    %46 = arith.addf %44, %45 : vector<10x10xf32>
    %cst_26 = arith.constant dense<0xFF800000> : vector<10xf32>
    %47 = vector.multi_reduction <maximumf>, %46, %cst_26 [1] : vector<10x10xf32> to vector<10xf32>
    %48 = vector.shape_cast %47 : vector<10xf32> to vector<10x1xf32>
    %49 = vector.broadcast %48 : vector<10x1xf32> to vector<10x10xf32>
    %50 = arith.subf %46, %49 : vector<10x10xf32>
    %51 = math.exp %50 : vector<10x10xf32>
    %cst_27 = arith.constant dense<0.000000e+00> : vector<10xf32>
    %52 = vector.multi_reduction <add>, %51, %cst_27 [1] : vector<10x10xf32> to vector<10xf32>
    %53 = vector.shape_cast %52 : vector<10xf32> to vector<10x1xf32>
    %54 = tpu.reciprocal %53 {approx = true} : vector<10x1xf32> -> vector<10x1xf32>
    %55 = vector.broadcast %54 : vector<10x1xf32> to vector<10x10xf32>
    %56 = arith.mulf %51, %55 : vector<10x10xf32>
    %57 = vector.extract_strided_slice %37 {offsets = [0, 0], sizes = [10, 8], strides = [1, 1]} : vector<10x32xf32> to vector<10x8xf32>
    %58 = arith.truncf %56 : vector<10x10xf32> to vector<10x10xbf16>
    %59 = arith.truncf %57 : vector<10x8xf32> to vector<10x8xbf16>
    %cst_28 = arith.constant dense<0.000000e+00> : vector<10x8xf32>
    %60 = tpu.matmul %58, %59, %cst_28 {dimension_numbers = #tpu.dot_dimension_numbers<[1], [0], [0], [1], [0, 0, 1, 1], [], []>} : vector<10x10xbf16>, vector<10x8xbf16>, vector<10x8xf32> -> vector<10x8xf32>
    %61 = vector.extract_strided_slice %35 {offsets = [0, 8], sizes = [10, 8], strides = [1, 1]} : vector<10x32xf32> to vector<10x8xf32>
    %62 = arith.truncf %61 : vector<10x8xf32> to vector<10x8xbf16>
    %63 = vector.extract_strided_slice %36 {offsets = [0, 8], sizes = [10, 8], strides = [1, 1]} : vector<10x32xf32> to vector<10x8xf32>
    %64 = arith.truncf %63 : vector<10x8xf32> to vector<10x8xbf16>
    %cst_29 = arith.constant dense<0.000000e+00> : vector<10x10xf32>
    %65 = tpu.matmul %62, %64, %cst_29 {dimension_numbers = #tpu.dot_dimension_numbers<[1], [1], [0], [0], [0, 0, 1, 0], [], []>} : vector<10x8xbf16>, vector<10x8xbf16>, vector<10x10xf32> -> vector<10x10xf32>
    %cst_30 = arith.constant 0.353553385 : f32
    %66 = vector.broadcast %cst_30 : f32 to vector<10x10xf32>
    %67 = arith.mulf %65, %66 : vector<10x10xf32>
    %68 = vector.broadcast %18 : vector<1x10xf32> to vector<10x10xf32>
    %69 = arith.addf %67, %68 : vector<10x10xf32>
    %cst_31 = arith.constant dense<0xFF800000> : vector<10xf32>
    %70 = vector.multi_reduction <maximumf>, %69, %cst_31 [1] : vector<10x10xf32> to vector<10xf32>
    %71 = vector.shape_cast %70 : vector<10xf32> to vector<10x1xf32>
    %72 = vector.broadcast %71 : vector<10x1xf32> to vector<10x10xf32>
    %73 = arith.subf %69, %72 : vector<10x10xf32>
    %74 = math.exp %73 : vector<10x10xf32>
    %cst_32 = arith.constant dense<0.000000e+00> : vector<10xf32>
    %75 = vector.multi_reduction <add>, %74, %cst_32 [1] : vector<10x10xf32> to vector<10xf32>
    %76 = vector.shape_cast %75 : vector<10xf32> to vector<10x1xf32>
    %77 = tpu.reciprocal %76 {approx = true} : vector<10x1xf32> -> vector<10x1xf32>
    %78 = vector.broadcast %77 : vector<10x1xf32> to vector<10x10xf32>
    %79 = arith.mulf %74, %78 : vector<10x10xf32>
    %80 = vector.extract_strided_slice %37 {offsets = [0, 8], sizes = [10, 8], strides = [1, 1]} : vector<10x32xf32> to vector<10x8xf32>
    %81 = arith.truncf %79 : vector<10x10xf32> to vector<10x10xbf16>
    %82 = arith.truncf %80 : vector<10x8xf32> to vector<10x8xbf16>
    %cst_33 = arith.constant dense<0.000000e+00> : vector<10x8xf32>
    %83 = tpu.matmul %81, %82, %cst_33 {dimension_numbers = #tpu.dot_dimension_numbers<[1], [0], [0], [1], [0, 0, 1, 1], [], []>} : vector<10x10xbf16>, vector<10x8xbf16>, vector<10x8xf32> -> vector<10x8xf32>
    %84 = vector.extract_strided_slice %35 {offsets = [0, 16], sizes = [10, 8], strides = [1, 1]} : vector<10x32xf32> to vector<10x8xf32>
    %85 = arith.truncf %84 : vector<10x8xf32> to vector<10x8xbf16>
    %86 = vector.extract_strided_slice %36 {offsets = [0, 16], sizes = [10, 8], strides = [1, 1]} : vector<10x32xf32> to vector<10x8xf32>
    %87 = arith.truncf %86 : vector<10x8xf32> to vector<10x8xbf16>
    %cst_34 = arith.constant dense<0.000000e+00> : vector<10x10xf32>
    %88 = tpu.matmul %85, %87, %cst_34 {dimension_numbers = #tpu.dot_dimension_numbers<[1], [1], [0], [0], [0, 0, 1, 0], [], []>} : vector<10x8xbf16>, vector<10x8xbf16>, vector<10x10xf32> -> vector<10x10xf32>
    %cst_35 = arith.constant 0.353553385 : f32
    %89 = vector.broadcast %cst_35 : f32 to vector<10x10xf32>
    %90 = arith.mulf %88, %89 : vector<10x10xf32>
    %91 = vector.broadcast %18 : vector<1x10xf32> to vector<10x10xf32>
    %92 = arith.addf %90, %91 : vector<10x10xf32>
    %cst_36 = arith.constant dense<0xFF800000> : vector<10xf32>
    %93 = vector.multi_reduction <maximumf>, %92, %cst_36 [1] : vector<10x10xf32> to vector<10xf32>
    %94 = vector.shape_cast %93 : vector<10xf32> to vector<10x1xf32>
    %95 = vector.broadcast %94 : vector<10x1xf32> to vector<10x10xf32>
    %96 = arith.subf %92, %95 : vector<10x10xf32>
    %97 = math.exp %96 : vector<10x10xf32>
    %cst_37 = arith.constant dense<0.000000e+00> : vector<10xf32>
    %98 = vector.multi_reduction <add>, %97, %cst_37 [1] : vector<10x10xf32> to vector<10xf32>
    %99 = vector.shape_cast %98 : vector<10xf32> to vector<10x1xf32>
    %100 = tpu.reciprocal %99 {approx = true} : vector<10x1xf32> -> vector<10x1xf32>
    %101 = vector.broadcast %100 : vector<10x1xf32> to vector<10x10xf32>
    %102 = arith.mulf %97, %101 : vector<10x10xf32>
    %103 = vector.extract_strided_slice %37 {offsets = [0, 16], sizes = [10, 8], strides = [1, 1]} : vector<10x32xf32> to vector<10x8xf32>
    %104 = arith.truncf %102 : vector<10x10xf32> to vector<10x10xbf16>
    %105 = arith.truncf %103 : vector<10x8xf32> to vector<10x8xbf16>
    %cst_38 = arith.constant dense<0.000000e+00> : vector<10x8xf32>
    %106 = tpu.matmul %104, %105, %cst_38 {dimension_numbers = #tpu.dot_dimension_numbers<[1], [0], [0], [1], [0, 0, 1, 1], [], []>} : vector<10x10xbf16>, vector<10x8xbf16>, vector<10x8xf32> -> vector<10x8xf32>
    %107 = vector.extract_strided_slice %35 {offsets = [0, 24], sizes = [10, 8], strides = [1, 1]} : vector<10x32xf32> to vector<10x8xf32>
    %108 = arith.truncf %107 : vector<10x8xf32> to vector<10x8xbf16>
    %109 = vector.extract_strided_slice %36 {offsets = [0, 24], sizes = [10, 8], strides = [1, 1]} : vector<10x32xf32> to vector<10x8xf32>
    %110 = arith.truncf %109 : vector<10x8xf32> to vector<10x8xbf16>
    %cst_39 = arith.constant dense<0.000000e+00> : vector<10x10xf32>
    %111 = tpu.matmul %108, %110, %cst_39 {dimension_numbers = #tpu.dot_dimension_numbers<[1], [1], [0], [0], [0, 0, 1, 0], [], []>} : vector<10x8xbf16>, vector<10x8xbf16>, vector<10x10xf32> -> vector<10x10xf32>
    %cst_40 = arith.constant 0.353553385 : f32
    %112 = vector.broadcast %cst_40 : f32 to vector<10x10xf32>
    %113 = arith.mulf %111, %112 : vector<10x10xf32>
    %114 = vector.broadcast %18 : vector<1x10xf32> to vector<10x10xf32>
    %115 = arith.addf %113, %114 : vector<10x10xf32>
    %cst_41 = arith.constant dense<0xFF800000> : vector<10xf32>
    %116 = vector.multi_reduction <maximumf>, %115, %cst_41 [1] : vector<10x10xf32> to vector<10xf32>
    %117 = vector.shape_cast %116 : vector<10xf32> to vector<10x1xf32>
    %118 = vector.broadcast %117 : vector<10x1xf32> to vector<10x10xf32>
    %119 = arith.subf %115, %118 : vector<10x10xf32>
    %120 = math.exp %119 : vector<10x10xf32>
    %cst_42 = arith.constant dense<0.000000e+00> : vector<10xf32>
    %121 = vector.multi_reduction <add>, %120, %cst_42 [1] : vector<10x10xf32> to vector<10xf32>
    %122 = vector.shape_cast %121 : vector<10xf32> to vector<10x1xf32>
    %123 = tpu.reciprocal %122 {approx = true} : vector<10x1xf32> -> vector<10x1xf32>
    %124 = vector.broadcast %123 : vector<10x1xf32> to vector<10x10xf32>
    %125 = arith.mulf %120, %124 : vector<10x10xf32>
    %126 = vector.extract_strided_slice %37 {offsets = [0, 24], sizes = [10, 8], strides = [1, 1]} : vector<10x32xf32> to vector<10x8xf32>
    %127 = arith.truncf %125 : vector<10x10xf32> to vector<10x10xbf16>
    %128 = arith.truncf %126 : vector<10x8xf32> to vector<10x8xbf16>
    %cst_43 = arith.constant dense<0.000000e+00> : vector<10x8xf32>
    %129 = tpu.matmul %127, %128, %cst_43 {dimension_numbers = #tpu.dot_dimension_numbers<[1], [0], [0], [1], [0, 0, 1, 1], [], []>} : vector<10x10xbf16>, vector<10x8xbf16>, vector<10x8xf32> -> vector<10x8xf32>
    %130 = tpu.concatenate %60, %83, %106, %129 in 1 : vector<10x8xf32>, vector<10x8xf32>, vector<10x8xf32>, vector<10x8xf32> -> vector<10x32xf32>
    %c312 = arith.constant 312 : index
    %c0_44 = arith.constant 0 : index
    %131 = vector.load %arg1[%c312, %c0_44] : memref<1360x128xf32, #tpu.memory_space<vmem>>, vector<32x32xf32>
    %132 = arith.truncf %130 : vector<10x32xf32> to vector<10x32xbf16>
    %133 = arith.truncf %131 : vector<32x32xf32> to vector<32x32xbf16>
    %cst_45 = arith.constant dense<0.000000e+00> : vector<10x32xf32>
    %134 = tpu.matmul %132, %133, %cst_45 {dimension_numbers = #tpu.dot_dimension_numbers<[1], [0], [0], [1], [0, 0, 1, 1], [], []>} : vector<10x32xbf16>, vector<32x32xbf16>, vector<10x32xf32> -> vector<10x32xf32>
    %c344 = arith.constant 344 : index
    %c0_46 = arith.constant 0 : index
    %135 = vector.load %arg1[%c344, %c0_46] : memref<1360x128xf32, #tpu.memory_space<vmem>>, vector<1x32xf32>
    %136 = vector.broadcast %135 : vector<1x32xf32> to vector<10x32xf32>
    %137 = arith.addf %134, %136 : vector<10x32xf32>
    %138 = arith.addf %27, %137 : vector<10x32xf32>
    %cst_47 = arith.constant dense<0.000000e+00> : vector<10xf32>
    %139 = vector.multi_reduction <add>, %138, %cst_47 [1] : vector<10x32xf32> to vector<10xf32>
    %140 = vector.shape_cast %139 : vector<10xf32> to vector<10x1xf32>
    %cst_48 = arith.constant 3.200000e+01 : f32
    %141 = vector.broadcast %cst_48 : f32 to vector<10x1xf32>
    %142 = arith.divf %140, %141 : vector<10x1xf32>
    %143 = vector.broadcast %142 : vector<10x1xf32> to vector<10x32xf32>
    %144 = arith.subf %138, %143 : vector<10x32xf32>
    %145 = arith.mulf %144, %144 : vector<10x32xf32>
    %cst_49 = arith.constant dense<0.000000e+00> : vector<10xf32>
    %146 = vector.multi_reduction <add>, %145, %cst_49 [1] : vector<10x32xf32> to vector<10xf32>
    %147 = vector.shape_cast %146 : vector<10xf32> to vector<10x1xf32>
    %cst_50 = arith.constant 3.200000e+01 : f32
    %148 = vector.broadcast %cst_50 : f32 to vector<10x1xf32>
    %149 = arith.divf %147, %148 : vector<10x1xf32>
    %cst_51 = arith.constant 9.99999974E-6 : f32
    %150 = vector.broadcast %cst_51 : f32 to vector<10x1xf32>
    %151 = arith.addf %149, %150 : vector<10x1xf32>
    %152 = math.rsqrt %151 : vector<10x1xf32>
    %153 = vector.broadcast %152 : vector<10x1xf32> to vector<10x32xf32>
    %154 = arith.mulf %144, %153 : vector<10x32xf32>
    %c352 = arith.constant 352 : index
    %c0_52 = arith.constant 0 : index
    %155 = vector.load %arg1[%c352, %c0_52] : memref<1360x128xf32, #tpu.memory_space<vmem>>, vector<1x32xf32>
    %156 = vector.broadcast %155 : vector<1x32xf32> to vector<10x32xf32>
    %157 = arith.mulf %154, %156 : vector<10x32xf32>
    %c360 = arith.constant 360 : index
    %c0_53 = arith.constant 0 : index
    %158 = vector.load %arg1[%c360, %c0_53] : memref<1360x128xf32, #tpu.memory_space<vmem>>, vector<1x32xf32>
    %159 = vector.broadcast %158 : vector<1x32xf32> to vector<10x32xf32>
    %160 = arith.addf %157, %159 : vector<10x32xf32>
    %c368 = arith.constant 368 : index
    %c0_54 = arith.constant 0 : index
    %161 = vector.load %arg1[%c368, %c0_54] : memref<1360x128xf32, #tpu.memory_space<vmem>>, vector<32x64xf32>
    %162 = arith.truncf %160 : vector<10x32xf32> to vector<10x32xbf16>
    %163 = arith.truncf %161 : vector<32x64xf32> to vector<32x64xbf16>
    %cst_55 = arith.constant dense<0.000000e+00> : vector<10x64xf32>
    %164 = tpu.matmul %162, %163, %cst_55 {dimension_numbers = #tpu.dot_dimension_numbers<[1], [0], [0], [1], [0, 0, 1, 1], [], []>} : vector<10x32xbf16>, vector<32x64xbf16>, vector<10x64xf32> -> vector<10x64xf32>
    %c400 = arith.constant 400 : index
    %c0_56 = arith.constant 0 : index
    %165 = vector.load %arg1[%c400, %c0_56] : memref<1360x128xf32, #tpu.memory_space<vmem>>, vector<1x64xf32>
    %166 = vector.broadcast %165 : vector<1x64xf32> to vector<10x64xf32>
    %167 = arith.addf %164, %166 : vector<10x64xf32>
    %cst_57 = arith.constant 0.000000e+00 : f32
    %168 = vector.broadcast %cst_57 : f32 to vector<10x64xf32>
    %169 = arith.maximumf %167, %168 : vector<10x64xf32>
    %c408 = arith.constant 408 : index
    %c0_58 = arith.constant 0 : index
    %170 = vector.load %arg1[%c408, %c0_58] : memref<1360x128xf32, #tpu.memory_space<vmem>>, vector<64x32xf32>
    %171 = arith.truncf %169 : vector<10x64xf32> to vector<10x64xbf16>
    %172 = arith.truncf %170 : vector<64x32xf32> to vector<64x32xbf16>
    %cst_59 = arith.constant dense<0.000000e+00> : vector<10x32xf32>
    %173 = tpu.matmul %171, %172, %cst_59 {dimension_numbers = #tpu.dot_dimension_numbers<[1], [0], [0], [1], [0, 0, 1, 1], [], []>} : vector<10x64xbf16>, vector<64x32xbf16>, vector<10x32xf32> -> vector<10x32xf32>
    %c472 = arith.constant 472 : index
    %c0_60 = arith.constant 0 : index
    %174 = vector.load %arg1[%c472, %c0_60] : memref<1360x128xf32, #tpu.memory_space<vmem>>, vector<1x32xf32>
    %175 = vector.broadcast %174 : vector<1x32xf32> to vector<10x32xf32>
    %176 = arith.addf %173, %175 : vector<10x32xf32>
    %177 = arith.addf %160, %176 : vector<10x32xf32>
    %cst_61 = arith.constant dense<0.000000e+00> : vector<10xf32>
    %178 = vector.multi_reduction <add>, %177, %cst_61 [1] : vector<10x32xf32> to vector<10xf32>
    %179 = vector.shape_cast %178 : vector<10xf32> to vector<10x1xf32>
    %cst_62 = arith.constant 3.200000e+01 : f32
    %180 = vector.broadcast %cst_62 : f32 to vector<10x1xf32>
    %181 = arith.divf %179, %180 : vector<10x1xf32>
    %182 = vector.broadcast %181 : vector<10x1xf32> to vector<10x32xf32>
    %183 = arith.subf %177, %182 : vector<10x32xf32>
    %184 = arith.mulf %183, %183 : vector<10x32xf32>
    %cst_63 = arith.constant dense<0.000000e+00> : vector<10xf32>
    %185 = vector.multi_reduction <add>, %184, %cst_63 [1] : vector<10x32xf32> to vector<10xf32>
    %186 = vector.shape_cast %185 : vector<10xf32> to vector<10x1xf32>
    %cst_64 = arith.constant 3.200000e+01 : f32
    %187 = vector.broadcast %cst_64 : f32 to vector<10x1xf32>
    %188 = arith.divf %186, %187 : vector<10x1xf32>
    %cst_65 = arith.constant 9.99999974E-6 : f32
    %189 = vector.broadcast %cst_65 : f32 to vector<10x1xf32>
    %190 = arith.addf %188, %189 : vector<10x1xf32>
    %191 = math.rsqrt %190 : vector<10x1xf32>
    %192 = vector.broadcast %191 : vector<10x1xf32> to vector<10x32xf32>
    %193 = arith.mulf %183, %192 : vector<10x32xf32>
    %c480 = arith.constant 480 : index
    %c0_66 = arith.constant 0 : index
    %194 = vector.load %arg1[%c480, %c0_66] : memref<1360x128xf32, #tpu.memory_space<vmem>>, vector<1x32xf32>
    %195 = vector.broadcast %194 : vector<1x32xf32> to vector<10x32xf32>
    %196 = arith.mulf %193, %195 : vector<10x32xf32>
    %c488 = arith.constant 488 : index
    %c0_67 = arith.constant 0 : index
    %197 = vector.load %arg1[%c488, %c0_67] : memref<1360x128xf32, #tpu.memory_space<vmem>>, vector<1x32xf32>
    %198 = vector.broadcast %197 : vector<1x32xf32> to vector<10x32xf32>
    %199 = arith.addf %196, %198 : vector<10x32xf32>
    %c496 = arith.constant 496 : index
    %c0_68 = arith.constant 0 : index
    %200 = vector.load %arg1[%c496, %c0_68] : memref<1360x128xf32, #tpu.memory_space<vmem>>, vector<32x96xf32>
    %c528 = arith.constant 528 : index
    %c0_69 = arith.constant 0 : index
    %201 = vector.load %arg1[%c528, %c0_69] : memref<1360x128xf32, #tpu.memory_space<vmem>>, vector<1x96xf32>
    %202 = arith.truncf %199 : vector<10x32xf32> to vector<10x32xbf16>
    %203 = arith.truncf %200 : vector<32x96xf32> to vector<32x96xbf16>
    %cst_70 = arith.constant dense<0.000000e+00> : vector<10x96xf32>
    %204 = tpu.matmul %202, %203, %cst_70 {dimension_numbers = #tpu.dot_dimension_numbers<[1], [0], [0], [1], [0, 0, 1, 1], [], []>} : vector<10x32xbf16>, vector<32x96xbf16>, vector<10x96xf32> -> vector<10x96xf32>
    %205 = vector.broadcast %201 : vector<1x96xf32> to vector<10x96xf32>
    %206 = arith.addf %204, %205 : vector<10x96xf32>
    %207 = vector.extract_strided_slice %206 {offsets = [0, 0], sizes = [10, 32], strides = [1, 1]} : vector<10x96xf32> to vector<10x32xf32>
    %208 = vector.extract_strided_slice %206 {offsets = [0, 32], sizes = [10, 32], strides = [1, 1]} : vector<10x96xf32> to vector<10x32xf32>
    %209 = vector.extract_strided_slice %206 {offsets = [0, 64], sizes = [10, 32], strides = [1, 1]} : vector<10x96xf32> to vector<10x32xf32>
    %210 = vector.extract_strided_slice %207 {offsets = [0, 0], sizes = [10, 8], strides = [1, 1]} : vector<10x32xf32> to vector<10x8xf32>
    %211 = arith.truncf %210 : vector<10x8xf32> to vector<10x8xbf16>
    %212 = vector.extract_strided_slice %208 {offsets = [0, 0], sizes = [10, 8], strides = [1, 1]} : vector<10x32xf32> to vector<10x8xf32>
    %213 = arith.truncf %212 : vector<10x8xf32> to vector<10x8xbf16>
    %cst_71 = arith.constant dense<0.000000e+00> : vector<10x10xf32>
    %214 = tpu.matmul %211, %213, %cst_71 {dimension_numbers = #tpu.dot_dimension_numbers<[1], [1], [0], [0], [0, 0, 1, 0], [], []>} : vector<10x8xbf16>, vector<10x8xbf16>, vector<10x10xf32> -> vector<10x10xf32>
    %cst_72 = arith.constant 0.353553385 : f32
    %215 = vector.broadcast %cst_72 : f32 to vector<10x10xf32>
    %216 = arith.mulf %214, %215 : vector<10x10xf32>
    %217 = vector.broadcast %18 : vector<1x10xf32> to vector<10x10xf32>
    %218 = arith.addf %216, %217 : vector<10x10xf32>
    %cst_73 = arith.constant dense<0xFF800000> : vector<10xf32>
    %219 = vector.multi_reduction <maximumf>, %218, %cst_73 [1] : vector<10x10xf32> to vector<10xf32>
    %220 = vector.shape_cast %219 : vector<10xf32> to vector<10x1xf32>
    %221 = vector.broadcast %220 : vector<10x1xf32> to vector<10x10xf32>
    %222 = arith.subf %218, %221 : vector<10x10xf32>
    %223 = math.exp %222 : vector<10x10xf32>
    %cst_74 = arith.constant dense<0.000000e+00> : vector<10xf32>
    %224 = vector.multi_reduction <add>, %223, %cst_74 [1] : vector<10x10xf32> to vector<10xf32>
    %225 = vector.shape_cast %224 : vector<10xf32> to vector<10x1xf32>
    %226 = tpu.reciprocal %225 {approx = true} : vector<10x1xf32> -> vector<10x1xf32>
    %227 = vector.broadcast %226 : vector<10x1xf32> to vector<10x10xf32>
    %228 = arith.mulf %223, %227 : vector<10x10xf32>
    %229 = vector.extract_strided_slice %209 {offsets = [0, 0], sizes = [10, 8], strides = [1, 1]} : vector<10x32xf32> to vector<10x8xf32>
    %230 = arith.truncf %228 : vector<10x10xf32> to vector<10x10xbf16>
    %231 = arith.truncf %229 : vector<10x8xf32> to vector<10x8xbf16>
    %cst_75 = arith.constant dense<0.000000e+00> : vector<10x8xf32>
    %232 = tpu.matmul %230, %231, %cst_75 {dimension_numbers = #tpu.dot_dimension_numbers<[1], [0], [0], [1], [0, 0, 1, 1], [], []>} : vector<10x10xbf16>, vector<10x8xbf16>, vector<10x8xf32> -> vector<10x8xf32>
    %233 = vector.extract_strided_slice %207 {offsets = [0, 8], sizes = [10, 8], strides = [1, 1]} : vector<10x32xf32> to vector<10x8xf32>
    %234 = arith.truncf %233 : vector<10x8xf32> to vector<10x8xbf16>
    %235 = vector.extract_strided_slice %208 {offsets = [0, 8], sizes = [10, 8], strides = [1, 1]} : vector<10x32xf32> to vector<10x8xf32>
    %236 = arith.truncf %235 : vector<10x8xf32> to vector<10x8xbf16>
    %cst_76 = arith.constant dense<0.000000e+00> : vector<10x10xf32>
    %237 = tpu.matmul %234, %236, %cst_76 {dimension_numbers = #tpu.dot_dimension_numbers<[1], [1], [0], [0], [0, 0, 1, 0], [], []>} : vector<10x8xbf16>, vector<10x8xbf16>, vector<10x10xf32> -> vector<10x10xf32>
    %cst_77 = arith.constant 0.353553385 : f32
    %238 = vector.broadcast %cst_77 : f32 to vector<10x10xf32>
    %239 = arith.mulf %237, %238 : vector<10x10xf32>
    %240 = vector.broadcast %18 : vector<1x10xf32> to vector<10x10xf32>
    %241 = arith.addf %239, %240 : vector<10x10xf32>
    %cst_78 = arith.constant dense<0xFF800000> : vector<10xf32>
    %242 = vector.multi_reduction <maximumf>, %241, %cst_78 [1] : vector<10x10xf32> to vector<10xf32>
    %243 = vector.shape_cast %242 : vector<10xf32> to vector<10x1xf32>
    %244 = vector.broadcast %243 : vector<10x1xf32> to vector<10x10xf32>
    %245 = arith.subf %241, %244 : vector<10x10xf32>
    %246 = math.exp %245 : vector<10x10xf32>
    %cst_79 = arith.constant dense<0.000000e+00> : vector<10xf32>
    %247 = vector.multi_reduction <add>, %246, %cst_79 [1] : vector<10x10xf32> to vector<10xf32>
    %248 = vector.shape_cast %247 : vector<10xf32> to vector<10x1xf32>
    %249 = tpu.reciprocal %248 {approx = true} : vector<10x1xf32> -> vector<10x1xf32>
    %250 = vector.broadcast %249 : vector<10x1xf32> to vector<10x10xf32>
    %251 = arith.mulf %246, %250 : vector<10x10xf32>
    %252 = vector.extract_strided_slice %209 {offsets = [0, 8], sizes = [10, 8], strides = [1, 1]} : vector<10x32xf32> to vector<10x8xf32>
    %253 = arith.truncf %251 : vector<10x10xf32> to vector<10x10xbf16>
    %254 = arith.truncf %252 : vector<10x8xf32> to vector<10x8xbf16>
    %cst_80 = arith.constant dense<0.000000e+00> : vector<10x8xf32>
    %255 = tpu.matmul %253, %254, %cst_80 {dimension_numbers = #tpu.dot_dimension_numbers<[1], [0], [0], [1], [0, 0, 1, 1], [], []>} : vector<10x10xbf16>, vector<10x8xbf16>, vector<10x8xf32> -> vector<10x8xf32>
    %256 = vector.extract_strided_slice %207 {offsets = [0, 16], sizes = [10, 8], strides = [1, 1]} : vector<10x32xf32> to vector<10x8xf32>
    %257 = arith.truncf %256 : vector<10x8xf32> to vector<10x8xbf16>
    %258 = vector.extract_strided_slice %208 {offsets = [0, 16], sizes = [10, 8], strides = [1, 1]} : vector<10x32xf32> to vector<10x8xf32>
    %259 = arith.truncf %258 : vector<10x8xf32> to vector<10x8xbf16>
    %cst_81 = arith.constant dense<0.000000e+00> : vector<10x10xf32>
    %260 = tpu.matmul %257, %259, %cst_81 {dimension_numbers = #tpu.dot_dimension_numbers<[1], [1], [0], [0], [0, 0, 1, 0], [], []>} : vector<10x8xbf16>, vector<10x8xbf16>, vector<10x10xf32> -> vector<10x10xf32>
    %cst_82 = arith.constant 0.353553385 : f32
    %261 = vector.broadcast %cst_82 : f32 to vector<10x10xf32>
    %262 = arith.mulf %260, %261 : vector<10x10xf32>
    %263 = vector.broadcast %18 : vector<1x10xf32> to vector<10x10xf32>
    %264 = arith.addf %262, %263 : vector<10x10xf32>
    %cst_83 = arith.constant dense<0xFF800000> : vector<10xf32>
    %265 = vector.multi_reduction <maximumf>, %264, %cst_83 [1] : vector<10x10xf32> to vector<10xf32>
    %266 = vector.shape_cast %265 : vector<10xf32> to vector<10x1xf32>
    %267 = vector.broadcast %266 : vector<10x1xf32> to vector<10x10xf32>
    %268 = arith.subf %264, %267 : vector<10x10xf32>
    %269 = math.exp %268 : vector<10x10xf32>
    %cst_84 = arith.constant dense<0.000000e+00> : vector<10xf32>
    %270 = vector.multi_reduction <add>, %269, %cst_84 [1] : vector<10x10xf32> to vector<10xf32>
    %271 = vector.shape_cast %270 : vector<10xf32> to vector<10x1xf32>
    %272 = tpu.reciprocal %271 {approx = true} : vector<10x1xf32> -> vector<10x1xf32>
    %273 = vector.broadcast %272 : vector<10x1xf32> to vector<10x10xf32>
    %274 = arith.mulf %269, %273 : vector<10x10xf32>
    %275 = vector.extract_strided_slice %209 {offsets = [0, 16], sizes = [10, 8], strides = [1, 1]} : vector<10x32xf32> to vector<10x8xf32>
    %276 = arith.truncf %274 : vector<10x10xf32> to vector<10x10xbf16>
    %277 = arith.truncf %275 : vector<10x8xf32> to vector<10x8xbf16>
    %cst_85 = arith.constant dense<0.000000e+00> : vector<10x8xf32>
    %278 = tpu.matmul %276, %277, %cst_85 {dimension_numbers = #tpu.dot_dimension_numbers<[1], [0], [0], [1], [0, 0, 1, 1], [], []>} : vector<10x10xbf16>, vector<10x8xbf16>, vector<10x8xf32> -> vector<10x8xf32>
    %279 = vector.extract_strided_slice %207 {offsets = [0, 24], sizes = [10, 8], strides = [1, 1]} : vector<10x32xf32> to vector<10x8xf32>
    %280 = arith.truncf %279 : vector<10x8xf32> to vector<10x8xbf16>
    %281 = vector.extract_strided_slice %208 {offsets = [0, 24], sizes = [10, 8], strides = [1, 1]} : vector<10x32xf32> to vector<10x8xf32>
    %282 = arith.truncf %281 : vector<10x8xf32> to vector<10x8xbf16>
    %cst_86 = arith.constant dense<0.000000e+00> : vector<10x10xf32>
    %283 = tpu.matmul %280, %282, %cst_86 {dimension_numbers = #tpu.dot_dimension_numbers<[1], [1], [0], [0], [0, 0, 1, 0], [], []>} : vector<10x8xbf16>, vector<10x8xbf16>, vector<10x10xf32> -> vector<10x10xf32>
    %cst_87 = arith.constant 0.353553385 : f32
    %284 = vector.broadcast %cst_87 : f32 to vector<10x10xf32>
    %285 = arith.mulf %283, %284 : vector<10x10xf32>
    %286 = vector.broadcast %18 : vector<1x10xf32> to vector<10x10xf32>
    %287 = arith.addf %285, %286 : vector<10x10xf32>
    %cst_88 = arith.constant dense<0xFF800000> : vector<10xf32>
    %288 = vector.multi_reduction <maximumf>, %287, %cst_88 [1] : vector<10x10xf32> to vector<10xf32>
    %289 = vector.shape_cast %288 : vector<10xf32> to vector<10x1xf32>
    %290 = vector.broadcast %289 : vector<10x1xf32> to vector<10x10xf32>
    %291 = arith.subf %287, %290 : vector<10x10xf32>
    %292 = math.exp %291 : vector<10x10xf32>
    %cst_89 = arith.constant dense<0.000000e+00> : vector<10xf32>
    %293 = vector.multi_reduction <add>, %292, %cst_89 [1] : vector<10x10xf32> to vector<10xf32>
    %294 = vector.shape_cast %293 : vector<10xf32> to vector<10x1xf32>
    %295 = tpu.reciprocal %294 {approx = true} : vector<10x1xf32> -> vector<10x1xf32>
    %296 = vector.broadcast %295 : vector<10x1xf32> to vector<10x10xf32>
    %297 = arith.mulf %292, %296 : vector<10x10xf32>
    %298 = vector.extract_strided_slice %209 {offsets = [0, 24], sizes = [10, 8], strides = [1, 1]} : vector<10x32xf32> to vector<10x8xf32>
    %299 = arith.truncf %297 : vector<10x10xf32> to vector<10x10xbf16>
    %300 = arith.truncf %298 : vector<10x8xf32> to vector<10x8xbf16>
    %cst_90 = arith.constant dense<0.000000e+00> : vector<10x8xf32>
    %301 = tpu.matmul %299, %300, %cst_90 {dimension_numbers = #tpu.dot_dimension_numbers<[1], [0], [0], [1], [0, 0, 1, 1], [], []>} : vector<10x10xbf16>, vector<10x8xbf16>, vector<10x8xf32> -> vector<10x8xf32>
    %302 = tpu.concatenate %232, %255, %278, %301 in 1 : vector<10x8xf32>, vector<10x8xf32>, vector<10x8xf32>, vector<10x8xf32> -> vector<10x32xf32>
    %c536 = arith.constant 536 : index
    %c0_91 = arith.constant 0 : index
    %303 = vector.load %arg1[%c536, %c0_91] : memref<1360x128xf32, #tpu.memory_space<vmem>>, vector<32x32xf32>
    %304 = arith.truncf %302 : vector<10x32xf32> to vector<10x32xbf16>
    %305 = arith.truncf %303 : vector<32x32xf32> to vector<32x32xbf16>
    %cst_92 = arith.constant dense<0.000000e+00> : vector<10x32xf32>
    %306 = tpu.matmul %304, %305, %cst_92 {dimension_numbers = #tpu.dot_dimension_numbers<[1], [0], [0], [1], [0, 0, 1, 1], [], []>} : vector<10x32xbf16>, vector<32x32xbf16>, vector<10x32xf32> -> vector<10x32xf32>
    %c568 = arith.constant 568 : index
    %c0_93 = arith.constant 0 : index
    %307 = vector.load %arg1[%c568, %c0_93] : memref<1360x128xf32, #tpu.memory_space<vmem>>, vector<1x32xf32>
    %308 = vector.broadcast %307 : vector<1x32xf32> to vector<10x32xf32>
    %309 = arith.addf %306, %308 : vector<10x32xf32>
    %310 = arith.addf %199, %309 : vector<10x32xf32>
    %cst_94 = arith.constant dense<0.000000e+00> : vector<10xf32>
    %311 = vector.multi_reduction <add>, %310, %cst_94 [1] : vector<10x32xf32> to vector<10xf32>
    %312 = vector.shape_cast %311 : vector<10xf32> to vector<10x1xf32>
    %cst_95 = arith.constant 3.200000e+01 : f32
    %313 = vector.broadcast %cst_95 : f32 to vector<10x1xf32>
    %314 = arith.divf %312, %313 : vector<10x1xf32>
    %315 = vector.broadcast %314 : vector<10x1xf32> to vector<10x32xf32>
    %316 = arith.subf %310, %315 : vector<10x32xf32>
    %317 = arith.mulf %316, %316 : vector<10x32xf32>
    %cst_96 = arith.constant dense<0.000000e+00> : vector<10xf32>
    %318 = vector.multi_reduction <add>, %317, %cst_96 [1] : vector<10x32xf32> to vector<10xf32>
    %319 = vector.shape_cast %318 : vector<10xf32> to vector<10x1xf32>
    %cst_97 = arith.constant 3.200000e+01 : f32
    %320 = vector.broadcast %cst_97 : f32 to vector<10x1xf32>
    %321 = arith.divf %319, %320 : vector<10x1xf32>
    %cst_98 = arith.constant 9.99999974E-6 : f32
    %322 = vector.broadcast %cst_98 : f32 to vector<10x1xf32>
    %323 = arith.addf %321, %322 : vector<10x1xf32>
    %324 = math.rsqrt %323 : vector<10x1xf32>
    %325 = vector.broadcast %324 : vector<10x1xf32> to vector<10x32xf32>
    %326 = arith.mulf %316, %325 : vector<10x32xf32>
    %c576 = arith.constant 576 : index
    %c0_99 = arith.constant 0 : index
    %327 = vector.load %arg1[%c576, %c0_99] : memref<1360x128xf32, #tpu.memory_space<vmem>>, vector<1x32xf32>
    %328 = vector.broadcast %327 : vector<1x32xf32> to vector<10x32xf32>
    %329 = arith.mulf %326, %328 : vector<10x32xf32>
    %c584 = arith.constant 584 : index
    %c0_100 = arith.constant 0 : index
    %330 = vector.load %arg1[%c584, %c0_100] : memref<1360x128xf32, #tpu.memory_space<vmem>>, vector<1x32xf32>
    %331 = vector.broadcast %330 : vector<1x32xf32> to vector<10x32xf32>
    %332 = arith.addf %329, %331 : vector<10x32xf32>
    %c592 = arith.constant 592 : index
    %c0_101 = arith.constant 0 : index
    %333 = vector.load %arg1[%c592, %c0_101] : memref<1360x128xf32, #tpu.memory_space<vmem>>, vector<32x64xf32>
    %334 = arith.truncf %332 : vector<10x32xf32> to vector<10x32xbf16>
    %335 = arith.truncf %333 : vector<32x64xf32> to vector<32x64xbf16>
    %cst_102 = arith.constant dense<0.000000e+00> : vector<10x64xf32>
    %336 = tpu.matmul %334, %335, %cst_102 {dimension_numbers = #tpu.dot_dimension_numbers<[1], [0], [0], [1], [0, 0, 1, 1], [], []>} : vector<10x32xbf16>, vector<32x64xbf16>, vector<10x64xf32> -> vector<10x64xf32>
    %c624 = arith.constant 624 : index
    %c0_103 = arith.constant 0 : index
    %337 = vector.load %arg1[%c624, %c0_103] : memref<1360x128xf32, #tpu.memory_space<vmem>>, vector<1x64xf32>
    %338 = vector.broadcast %337 : vector<1x64xf32> to vector<10x64xf32>
    %339 = arith.addf %336, %338 : vector<10x64xf32>
    %cst_104 = arith.constant 0.000000e+00 : f32
    %340 = vector.broadcast %cst_104 : f32 to vector<10x64xf32>
    %341 = arith.maximumf %339, %340 : vector<10x64xf32>
    %c632 = arith.constant 632 : index
    %c0_105 = arith.constant 0 : index
    %342 = vector.load %arg1[%c632, %c0_105] : memref<1360x128xf32, #tpu.memory_space<vmem>>, vector<64x32xf32>
    %343 = arith.truncf %341 : vector<10x64xf32> to vector<10x64xbf16>
    %344 = arith.truncf %342 : vector<64x32xf32> to vector<64x32xbf16>
    %cst_106 = arith.constant dense<0.000000e+00> : vector<10x32xf32>
    %345 = tpu.matmul %343, %344, %cst_106 {dimension_numbers = #tpu.dot_dimension_numbers<[1], [0], [0], [1], [0, 0, 1, 1], [], []>} : vector<10x64xbf16>, vector<64x32xbf16>, vector<10x32xf32> -> vector<10x32xf32>
    %c696 = arith.constant 696 : index
    %c0_107 = arith.constant 0 : index
    %346 = vector.load %arg1[%c696, %c0_107] : memref<1360x128xf32, #tpu.memory_space<vmem>>, vector<1x32xf32>
    %347 = vector.broadcast %346 : vector<1x32xf32> to vector<10x32xf32>
    %348 = arith.addf %345, %347 : vector<10x32xf32>
    %349 = arith.addf %332, %348 : vector<10x32xf32>
    %cst_108 = arith.constant dense<0.000000e+00> : vector<10xf32>
    %350 = vector.multi_reduction <add>, %349, %cst_108 [1] : vector<10x32xf32> to vector<10xf32>
    %351 = vector.shape_cast %350 : vector<10xf32> to vector<10x1xf32>
    %cst_109 = arith.constant 3.200000e+01 : f32
    %352 = vector.broadcast %cst_109 : f32 to vector<10x1xf32>
    %353 = arith.divf %351, %352 : vector<10x1xf32>
    %354 = vector.broadcast %353 : vector<10x1xf32> to vector<10x32xf32>
    %355 = arith.subf %349, %354 : vector<10x32xf32>
    %356 = arith.mulf %355, %355 : vector<10x32xf32>
    %cst_110 = arith.constant dense<0.000000e+00> : vector<10xf32>
    %357 = vector.multi_reduction <add>, %356, %cst_110 [1] : vector<10x32xf32> to vector<10xf32>
    %358 = vector.shape_cast %357 : vector<10xf32> to vector<10x1xf32>
    %cst_111 = arith.constant 3.200000e+01 : f32
    %359 = vector.broadcast %cst_111 : f32 to vector<10x1xf32>
    %360 = arith.divf %358, %359 : vector<10x1xf32>
    %cst_112 = arith.constant 9.99999974E-6 : f32
    %361 = vector.broadcast %cst_112 : f32 to vector<10x1xf32>
    %362 = arith.addf %360, %361 : vector<10x1xf32>
    %363 = math.rsqrt %362 : vector<10x1xf32>
    %364 = vector.broadcast %363 : vector<10x1xf32> to vector<10x32xf32>
    %365 = arith.mulf %355, %364 : vector<10x32xf32>
    %c704 = arith.constant 704 : index
    %c0_113 = arith.constant 0 : index
    %366 = vector.load %arg1[%c704, %c0_113] : memref<1360x128xf32, #tpu.memory_space<vmem>>, vector<1x32xf32>
    %367 = vector.broadcast %366 : vector<1x32xf32> to vector<10x32xf32>
    %368 = arith.mulf %365, %367 : vector<10x32xf32>
    %c712 = arith.constant 712 : index
    %c0_114 = arith.constant 0 : index
    %369 = vector.load %arg1[%c712, %c0_114] : memref<1360x128xf32, #tpu.memory_space<vmem>>, vector<1x32xf32>
    %370 = vector.broadcast %369 : vector<1x32xf32> to vector<10x32xf32>
    %371 = arith.addf %368, %370 : vector<10x32xf32>
    %cst_115 = arith.constant dense<0.000000e+00> : vector<10xf32>
    %372 = vector.multi_reduction <add>, %371, %cst_115 [1] : vector<10x32xf32> to vector<10xf32>
    %373 = vector.shape_cast %372 : vector<10xf32> to vector<10x1xf32>
    %cst_116 = arith.constant 3.200000e+01 : f32
    %374 = vector.broadcast %cst_116 : f32 to vector<10x1xf32>
    %375 = arith.divf %373, %374 : vector<10x1xf32>
    %376 = vector.broadcast %375 : vector<10x1xf32> to vector<10x32xf32>
    %377 = arith.subf %371, %376 : vector<10x32xf32>
    %378 = arith.mulf %377, %377 : vector<10x32xf32>
    %cst_117 = arith.constant dense<0.000000e+00> : vector<10xf32>
    %379 = vector.multi_reduction <add>, %378, %cst_117 [1] : vector<10x32xf32> to vector<10xf32>
    %380 = vector.shape_cast %379 : vector<10xf32> to vector<10x1xf32>
    %cst_118 = arith.constant 3.200000e+01 : f32
    %381 = vector.broadcast %cst_118 : f32 to vector<10x1xf32>
    %382 = arith.divf %380, %381 : vector<10x1xf32>
    %cst_119 = arith.constant 9.99999974E-6 : f32
    %383 = vector.broadcast %cst_119 : f32 to vector<10x1xf32>
    %384 = arith.addf %382, %383 : vector<10x1xf32>
    %385 = math.rsqrt %384 : vector<10x1xf32>
    %386 = vector.broadcast %385 : vector<10x1xf32> to vector<10x32xf32>
    %387 = arith.mulf %377, %386 : vector<10x32xf32>
    %c240 = arith.constant 240 : index
    %c0_120 = arith.constant 0 : index
    %388 = vector.load %arg1[%c240, %c0_120] : memref<1360x128xf32, #tpu.memory_space<vmem>>, vector<1x32xf32>
    %389 = vector.broadcast %388 : vector<1x32xf32> to vector<10x32xf32>
    %390 = arith.mulf %387, %389 : vector<10x32xf32>
    %c248 = arith.constant 248 : index
    %c0_121 = arith.constant 0 : index
    %391 = vector.load %arg1[%c248, %c0_121] : memref<1360x128xf32, #tpu.memory_space<vmem>>, vector<1x32xf32>
    %392 = vector.broadcast %391 : vector<1x32xf32> to vector<10x32xf32>
    %393 = arith.addf %390, %392 : vector<10x32xf32>
    %394 = tpu.iota {dimensions = array<i32: 1>} : vector<8x16xi32>
    %395 = vector.broadcast %10 : vector<8x1xi32> to vector<8x16xi32>
    %396 = arith.cmpi eq, %395, %394 : vector<8x16xi32>
    %397 = arith.extui %396 : vector<8x16xi1> to vector<8x16xi32>
    %398 = arith.sitofp %397 : vector<8x16xi32> to vector<8x16xf32>
    %c16_122 = arith.constant 16 : index
    %c0_123 = arith.constant 0 : index
    %399 = vector.load %arg1[%c16_122, %c0_123] : memref<1360x128xf32, #tpu.memory_space<vmem>>, vector<16x8xf32>
    %cst_124 = arith.constant dense<0.000000e+00> : vector<8x8xf32>
    %400 = tpu.matmul %398, %399, %cst_124 {dimension_numbers = #tpu.dot_dimension_numbers<[1], [0], [0], [1], [0, 0, 1, 1], [], []>} : vector<8x16xf32>, vector<16x8xf32>, vector<8x8xf32> -> vector<8x8xf32>
    %c32_125 = arith.constant 32 : index
    %c0_126 = arith.constant 0 : index
    %401 = vector.load %arg1[%c32_125, %c0_126] : memref<1360x128xf32, #tpu.memory_space<vmem>>, vector<8x16xf32>
    %402 = arith.truncf %3 : vector<8x8xf32> to vector<8x8xbf16>
    %403 = arith.truncf %401 : vector<8x16xf32> to vector<8x16xbf16>
    %cst_127 = arith.constant dense<0.000000e+00> : vector<8x16xf32>
    %404 = tpu.matmul %402, %403, %cst_127 {dimension_numbers = #tpu.dot_dimension_numbers<[1], [0], [0], [1], [0, 0, 1, 1], [], []>} : vector<8x8xbf16>, vector<8x16xbf16>, vector<8x16xf32> -> vector<8x16xf32>
    %c40_128 = arith.constant 40 : index
    %c0_129 = arith.constant 0 : index
    %405 = vector.load %arg1[%c40_128, %c0_129] : memref<1360x128xf32, #tpu.memory_space<vmem>>, vector<8x16xf32>
    %406 = arith.truncf %5 : vector<8x8xf32> to vector<8x8xbf16>
    %407 = arith.truncf %405 : vector<8x16xf32> to vector<8x16xbf16>
    %cst_130 = arith.constant dense<0.000000e+00> : vector<8x16xf32>
    %408 = tpu.matmul %406, %407, %cst_130 {dimension_numbers = #tpu.dot_dimension_numbers<[1], [0], [0], [1], [0, 0, 1, 1], [], []>} : vector<8x8xbf16>, vector<8x16xbf16>, vector<8x16xf32> -> vector<8x16xf32>
    %409 = arith.addf %404, %408 : vector<8x16xf32>
    %c48_131 = arith.constant 48 : index
    %c0_132 = arith.constant 0 : index
    %410 = vector.load %arg1[%c48_131, %c0_132] : memref<1360x128xf32, #tpu.memory_space<vmem>>, vector<8x16xf32>
    %411 = arith.truncf %400 : vector<8x8xf32> to vector<8x8xbf16>
    %412 = arith.truncf %410 : vector<8x16xf32> to vector<8x16xbf16>
    %cst_133 = arith.constant dense<0.000000e+00> : vector<8x16xf32>
    %413 = tpu.matmul %411, %412, %cst_133 {dimension_numbers = #tpu.dot_dimension_numbers<[1], [0], [0], [1], [0, 0, 1, 1], [], []>} : vector<8x8xbf16>, vector<8x16xbf16>, vector<8x16xf32> -> vector<8x16xf32>
    %414 = arith.addf %409, %413 : vector<8x16xf32>
    %c56_134 = arith.constant 56 : index
    %c0_135 = arith.constant 0 : index
    %415 = vector.load %arg1[%c56_134, %c0_135] : memref<1360x128xf32, #tpu.memory_space<vmem>>, vector<1x16xf32>
    %416 = vector.broadcast %415 : vector<1x16xf32> to vector<8x16xf32>
    %417 = arith.addf %414, %416 : vector<8x16xf32>
    %cst_136 = arith.constant 0.000000e+00 : f32
    %418 = vector.broadcast %cst_136 : f32 to vector<8x16xf32>
    %419 = arith.maximumf %417, %418 : vector<8x16xf32>
    %c64_137 = arith.constant 64 : index
    %c0_138 = arith.constant 0 : index
    %420 = vector.load %arg1[%c64_137, %c0_138] : memref<1360x128xf32, #tpu.memory_space<vmem>>, vector<16x32xf32>
    %421 = arith.truncf %419 : vector<8x16xf32> to vector<8x16xbf16>
    %422 = arith.truncf %420 : vector<16x32xf32> to vector<16x32xbf16>
    %cst_139 = arith.constant dense<0.000000e+00> : vector<8x32xf32>
    %423 = tpu.matmul %421, %422, %cst_139 {dimension_numbers = #tpu.dot_dimension_numbers<[1], [0], [0], [1], [0, 0, 1, 1], [], []>} : vector<8x16xbf16>, vector<16x32xbf16>, vector<8x32xf32> -> vector<8x32xf32>
    %c80 = arith.constant 80 : index
    %c0_140 = arith.constant 0 : index
    %424 = vector.load %arg1[%c80, %c0_140] : memref<1360x128xf32, #tpu.memory_space<vmem>>, vector<1x32xf32>
    %425 = vector.broadcast %424 : vector<1x32xf32> to vector<8x32xf32>
    %426 = arith.addf %423, %425 : vector<8x32xf32>
    %427 = tpu.iota {dimensions = array<i32: 0>} : vector<8x8xi32>
    %428 = tpu.iota {dimensions = array<i32: 1>} : vector<8x8xi32>
    %429 = arith.cmpi sle, %428, %427 : vector<8x8xi32>
    %cst_141 = arith.constant 0.000000e+00 : f32
    %cst_142 = arith.constant -1.000000e+30 : f32
    %430 = vector.broadcast %cst_141 : f32 to vector<8x8xf32>
    %431 = vector.broadcast %cst_142 : f32 to vector<8x8xf32>
    %432 = arith.select %429, %430, %431 : vector<8x8xi1>, vector<8x8xf32>
    %433 = vector.broadcast %20 : vector<1x8xf32> to vector<8x8xf32>
    %434 = arith.addf %432, %433 : vector<8x8xf32>
    %c720 = arith.constant 720 : index
    %c0_143 = arith.constant 0 : index
    %435 = vector.load %arg1[%c720, %c0_143] : memref<1360x128xf32, #tpu.memory_space<vmem>>, vector<32x96xf32>
    %c752 = arith.constant 752 : index
    %c0_144 = arith.constant 0 : index
    %436 = vector.load %arg1[%c752, %c0_144] : memref<1360x128xf32, #tpu.memory_space<vmem>>, vector<1x96xf32>
    %437 = arith.truncf %426 : vector<8x32xf32> to vector<8x32xbf16>
    %438 = arith.truncf %435 : vector<32x96xf32> to vector<32x96xbf16>
    %cst_145 = arith.constant dense<0.000000e+00> : vector<8x96xf32>
    %439 = tpu.matmul %437, %438, %cst_145 {dimension_numbers = #tpu.dot_dimension_numbers<[1], [0], [0], [1], [0, 0, 1, 1], [], []>} : vector<8x32xbf16>, vector<32x96xbf16>, vector<8x96xf32> -> vector<8x96xf32>
    %440 = vector.broadcast %436 : vector<1x96xf32> to vector<8x96xf32>
    %441 = arith.addf %439, %440 : vector<8x96xf32>
    %442 = vector.extract_strided_slice %441 {offsets = [0, 0], sizes = [8, 32], strides = [1, 1]} : vector<8x96xf32> to vector<8x32xf32>
    %443 = vector.extract_strided_slice %441 {offsets = [0, 32], sizes = [8, 32], strides = [1, 1]} : vector<8x96xf32> to vector<8x32xf32>
    %444 = vector.extract_strided_slice %441 {offsets = [0, 64], sizes = [8, 32], strides = [1, 1]} : vector<8x96xf32> to vector<8x32xf32>
    %445 = vector.extract_strided_slice %442 {offsets = [0, 0], sizes = [8, 8], strides = [1, 1]} : vector<8x32xf32> to vector<8x8xf32>
    %446 = arith.truncf %445 : vector<8x8xf32> to vector<8x8xbf16>
    %447 = vector.extract_strided_slice %443 {offsets = [0, 0], sizes = [8, 8], strides = [1, 1]} : vector<8x32xf32> to vector<8x8xf32>
    %448 = arith.truncf %447 : vector<8x8xf32> to vector<8x8xbf16>
    %cst_146 = arith.constant dense<0.000000e+00> : vector<8x8xf32>
    %449 = tpu.matmul %446, %448, %cst_146 {dimension_numbers = #tpu.dot_dimension_numbers<[1], [1], [0], [0], [0, 0, 1, 0], [], []>} : vector<8x8xbf16>, vector<8x8xbf16>, vector<8x8xf32> -> vector<8x8xf32>
    %cst_147 = arith.constant 0.353553385 : f32
    %450 = vector.broadcast %cst_147 : f32 to vector<8x8xf32>
    %451 = arith.mulf %449, %450 : vector<8x8xf32>
    %452 = arith.addf %451, %434 : vector<8x8xf32>
    %cst_148 = arith.constant dense<0xFF800000> : vector<8xf32>
    %453 = vector.multi_reduction <maximumf>, %452, %cst_148 [1] : vector<8x8xf32> to vector<8xf32>
    %454 = vector.shape_cast %453 : vector<8xf32> to vector<8x1xf32>
    %455 = vector.broadcast %454 : vector<8x1xf32> to vector<8x8xf32>
    %456 = arith.subf %452, %455 : vector<8x8xf32>
    %457 = math.exp %456 : vector<8x8xf32>
    %cst_149 = arith.constant dense<0.000000e+00> : vector<8xf32>
    %458 = vector.multi_reduction <add>, %457, %cst_149 [1] : vector<8x8xf32> to vector<8xf32>
    %459 = vector.shape_cast %458 : vector<8xf32> to vector<8x1xf32>
    %460 = tpu.reciprocal %459 {approx = true} : vector<8x1xf32> -> vector<8x1xf32>
    %461 = vector.broadcast %460 : vector<8x1xf32> to vector<8x8xf32>
    %462 = arith.mulf %457, %461 : vector<8x8xf32>
    %463 = vector.extract_strided_slice %444 {offsets = [0, 0], sizes = [8, 8], strides = [1, 1]} : vector<8x32xf32> to vector<8x8xf32>
    %464 = arith.truncf %462 : vector<8x8xf32> to vector<8x8xbf16>
    %465 = arith.truncf %463 : vector<8x8xf32> to vector<8x8xbf16>
    %cst_150 = arith.constant dense<0.000000e+00> : vector<8x8xf32>
    %466 = tpu.matmul %464, %465, %cst_150 {dimension_numbers = #tpu.dot_dimension_numbers<[1], [0], [0], [1], [0, 0, 1, 1], [], []>} : vector<8x8xbf16>, vector<8x8xbf16>, vector<8x8xf32> -> vector<8x8xf32>
    %467 = vector.extract_strided_slice %442 {offsets = [0, 8], sizes = [8, 8], strides = [1, 1]} : vector<8x32xf32> to vector<8x8xf32>
    %468 = arith.truncf %467 : vector<8x8xf32> to vector<8x8xbf16>
    %469 = vector.extract_strided_slice %443 {offsets = [0, 8], sizes = [8, 8], strides = [1, 1]} : vector<8x32xf32> to vector<8x8xf32>
    %470 = arith.truncf %469 : vector<8x8xf32> to vector<8x8xbf16>
    %cst_151 = arith.constant dense<0.000000e+00> : vector<8x8xf32>
    %471 = tpu.matmul %468, %470, %cst_151 {dimension_numbers = #tpu.dot_dimension_numbers<[1], [1], [0], [0], [0, 0, 1, 0], [], []>} : vector<8x8xbf16>, vector<8x8xbf16>, vector<8x8xf32> -> vector<8x8xf32>
    %cst_152 = arith.constant 0.353553385 : f32
    %472 = vector.broadcast %cst_152 : f32 to vector<8x8xf32>
    %473 = arith.mulf %471, %472 : vector<8x8xf32>
    %474 = arith.addf %473, %434 : vector<8x8xf32>
    %cst_153 = arith.constant dense<0xFF800000> : vector<8xf32>
    %475 = vector.multi_reduction <maximumf>, %474, %cst_153 [1] : vector<8x8xf32> to vector<8xf32>
    %476 = vector.shape_cast %475 : vector<8xf32> to vector<8x1xf32>
    %477 = vector.broadcast %476 : vector<8x1xf32> to vector<8x8xf32>
    %478 = arith.subf %474, %477 : vector<8x8xf32>
    %479 = math.exp %478 : vector<8x8xf32>
    %cst_154 = arith.constant dense<0.000000e+00> : vector<8xf32>
    %480 = vector.multi_reduction <add>, %479, %cst_154 [1] : vector<8x8xf32> to vector<8xf32>
    %481 = vector.shape_cast %480 : vector<8xf32> to vector<8x1xf32>
    %482 = tpu.reciprocal %481 {approx = true} : vector<8x1xf32> -> vector<8x1xf32>
    %483 = vector.broadcast %482 : vector<8x1xf32> to vector<8x8xf32>
    %484 = arith.mulf %479, %483 : vector<8x8xf32>
    %485 = vector.extract_strided_slice %444 {offsets = [0, 8], sizes = [8, 8], strides = [1, 1]} : vector<8x32xf32> to vector<8x8xf32>
    %486 = arith.truncf %484 : vector<8x8xf32> to vector<8x8xbf16>
    %487 = arith.truncf %485 : vector<8x8xf32> to vector<8x8xbf16>
    %cst_155 = arith.constant dense<0.000000e+00> : vector<8x8xf32>
    %488 = tpu.matmul %486, %487, %cst_155 {dimension_numbers = #tpu.dot_dimension_numbers<[1], [0], [0], [1], [0, 0, 1, 1], [], []>} : vector<8x8xbf16>, vector<8x8xbf16>, vector<8x8xf32> -> vector<8x8xf32>
    %489 = vector.extract_strided_slice %442 {offsets = [0, 16], sizes = [8, 8], strides = [1, 1]} : vector<8x32xf32> to vector<8x8xf32>
    %490 = arith.truncf %489 : vector<8x8xf32> to vector<8x8xbf16>
    %491 = vector.extract_strided_slice %443 {offsets = [0, 16], sizes = [8, 8], strides = [1, 1]} : vector<8x32xf32> to vector<8x8xf32>
    %492 = arith.truncf %491 : vector<8x8xf32> to vector<8x8xbf16>
    %cst_156 = arith.constant dense<0.000000e+00> : vector<8x8xf32>
    %493 = tpu.matmul %490, %492, %cst_156 {dimension_numbers = #tpu.dot_dimension_numbers<[1], [1], [0], [0], [0, 0, 1, 0], [], []>} : vector<8x8xbf16>, vector<8x8xbf16>, vector<8x8xf32> -> vector<8x8xf32>
    %cst_157 = arith.constant 0.353553385 : f32
    %494 = vector.broadcast %cst_157 : f32 to vector<8x8xf32>
    %495 = arith.mulf %493, %494 : vector<8x8xf32>
    %496 = arith.addf %495, %434 : vector<8x8xf32>
    %cst_158 = arith.constant dense<0xFF800000> : vector<8xf32>
    %497 = vector.multi_reduction <maximumf>, %496, %cst_158 [1] : vector<8x8xf32> to vector<8xf32>
    %498 = vector.shape_cast %497 : vector<8xf32> to vector<8x1xf32>
    %499 = vector.broadcast %498 : vector<8x1xf32> to vector<8x8xf32>
    %500 = arith.subf %496, %499 : vector<8x8xf32>
    %501 = math.exp %500 : vector<8x8xf32>
    %cst_159 = arith.constant dense<0.000000e+00> : vector<8xf32>
    %502 = vector.multi_reduction <add>, %501, %cst_159 [1] : vector<8x8xf32> to vector<8xf32>
    %503 = vector.shape_cast %502 : vector<8xf32> to vector<8x1xf32>
    %504 = tpu.reciprocal %503 {approx = true} : vector<8x1xf32> -> vector<8x1xf32>
    %505 = vector.broadcast %504 : vector<8x1xf32> to vector<8x8xf32>
    %506 = arith.mulf %501, %505 : vector<8x8xf32>
    %507 = vector.extract_strided_slice %444 {offsets = [0, 16], sizes = [8, 8], strides = [1, 1]} : vector<8x32xf32> to vector<8x8xf32>
    %508 = arith.truncf %506 : vector<8x8xf32> to vector<8x8xbf16>
    %509 = arith.truncf %507 : vector<8x8xf32> to vector<8x8xbf16>
    %cst_160 = arith.constant dense<0.000000e+00> : vector<8x8xf32>
    %510 = tpu.matmul %508, %509, %cst_160 {dimension_numbers = #tpu.dot_dimension_numbers<[1], [0], [0], [1], [0, 0, 1, 1], [], []>} : vector<8x8xbf16>, vector<8x8xbf16>, vector<8x8xf32> -> vector<8x8xf32>
    %511 = vector.extract_strided_slice %442 {offsets = [0, 24], sizes = [8, 8], strides = [1, 1]} : vector<8x32xf32> to vector<8x8xf32>
    %512 = arith.truncf %511 : vector<8x8xf32> to vector<8x8xbf16>
    %513 = vector.extract_strided_slice %443 {offsets = [0, 24], sizes = [8, 8], strides = [1, 1]} : vector<8x32xf32> to vector<8x8xf32>
    %514 = arith.truncf %513 : vector<8x8xf32> to vector<8x8xbf16>
    %cst_161 = arith.constant dense<0.000000e+00> : vector<8x8xf32>
    %515 = tpu.matmul %512, %514, %cst_161 {dimension_numbers = #tpu.dot_dimension_numbers<[1], [1], [0], [0], [0, 0, 1, 0], [], []>} : vector<8x8xbf16>, vector<8x8xbf16>, vector<8x8xf32> -> vector<8x8xf32>
    %cst_162 = arith.constant 0.353553385 : f32
    %516 = vector.broadcast %cst_162 : f32 to vector<8x8xf32>
    %517 = arith.mulf %515, %516 : vector<8x8xf32>
    %518 = arith.addf %517, %434 : vector<8x8xf32>
    %cst_163 = arith.constant dense<0xFF800000> : vector<8xf32>
    %519 = vector.multi_reduction <maximumf>, %518, %cst_163 [1] : vector<8x8xf32> to vector<8xf32>
    %520 = vector.shape_cast %519 : vector<8xf32> to vector<8x1xf32>
    %521 = vector.broadcast %520 : vector<8x1xf32> to vector<8x8xf32>
    %522 = arith.subf %518, %521 : vector<8x8xf32>
    %523 = math.exp %522 : vector<8x8xf32>
    %cst_164 = arith.constant dense<0.000000e+00> : vector<8xf32>
    %524 = vector.multi_reduction <add>, %523, %cst_164 [1] : vector<8x8xf32> to vector<8xf32>
    %525 = vector.shape_cast %524 : vector<8xf32> to vector<8x1xf32>
    %526 = tpu.reciprocal %525 {approx = true} : vector<8x1xf32> -> vector<8x1xf32>
    %527 = vector.broadcast %526 : vector<8x1xf32> to vector<8x8xf32>
    %528 = arith.mulf %523, %527 : vector<8x8xf32>
    %529 = vector.extract_strided_slice %444 {offsets = [0, 24], sizes = [8, 8], strides = [1, 1]} : vector<8x32xf32> to vector<8x8xf32>
    %530 = arith.truncf %528 : vector<8x8xf32> to vector<8x8xbf16>
    %531 = arith.truncf %529 : vector<8x8xf32> to vector<8x8xbf16>
    %cst_165 = arith.constant dense<0.000000e+00> : vector<8x8xf32>
    %532 = tpu.matmul %530, %531, %cst_165 {dimension_numbers = #tpu.dot_dimension_numbers<[1], [0], [0], [1], [0, 0, 1, 1], [], []>} : vector<8x8xbf16>, vector<8x8xbf16>, vector<8x8xf32> -> vector<8x8xf32>
    %533 = tpu.concatenate %466, %488, %510, %532 in 1 : vector<8x8xf32>, vector<8x8xf32>, vector<8x8xf32>, vector<8x8xf32> -> vector<8x32xf32>
    %c760 = arith.constant 760 : index
    %c0_166 = arith.constant 0 : index
    %534 = vector.load %arg1[%c760, %c0_166] : memref<1360x128xf32, #tpu.memory_space<vmem>>, vector<32x32xf32>
    %535 = arith.truncf %533 : vector<8x32xf32> to vector<8x32xbf16>
    %536 = arith.truncf %534 : vector<32x32xf32> to vector<32x32xbf16>
    %cst_167 = arith.constant dense<0.000000e+00> : vector<8x32xf32>
    %537 = tpu.matmul %535, %536, %cst_167 {dimension_numbers = #tpu.dot_dimension_numbers<[1], [0], [0], [1], [0, 0, 1, 1], [], []>} : vector<8x32xbf16>, vector<32x32xbf16>, vector<8x32xf32> -> vector<8x32xf32>
    %c792 = arith.constant 792 : index
    %c0_168 = arith.constant 0 : index
    %538 = vector.load %arg1[%c792, %c0_168] : memref<1360x128xf32, #tpu.memory_space<vmem>>, vector<1x32xf32>
    %539 = vector.broadcast %538 : vector<1x32xf32> to vector<8x32xf32>
    %540 = arith.addf %537, %539 : vector<8x32xf32>
    %541 = arith.addf %426, %540 : vector<8x32xf32>
    %cst_169 = arith.constant dense<0.000000e+00> : vector<8xf32>
    %542 = vector.multi_reduction <add>, %541, %cst_169 [1] : vector<8x32xf32> to vector<8xf32>
    %543 = vector.shape_cast %542 : vector<8xf32> to vector<8x1xf32>
    %cst_170 = arith.constant 3.200000e+01 : f32
    %544 = vector.broadcast %cst_170 : f32 to vector<8x1xf32>
    %545 = arith.divf %543, %544 : vector<8x1xf32>
    %546 = vector.broadcast %545 : vector<8x1xf32> to vector<8x32xf32>
    %547 = arith.subf %541, %546 : vector<8x32xf32>
    %548 = arith.mulf %547, %547 : vector<8x32xf32>
    %cst_171 = arith.constant dense<0.000000e+00> : vector<8xf32>
    %549 = vector.multi_reduction <add>, %548, %cst_171 [1] : vector<8x32xf32> to vector<8xf32>
    %550 = vector.shape_cast %549 : vector<8xf32> to vector<8x1xf32>
    %cst_172 = arith.constant 3.200000e+01 : f32
    %551 = vector.broadcast %cst_172 : f32 to vector<8x1xf32>
    %552 = arith.divf %550, %551 : vector<8x1xf32>
    %cst_173 = arith.constant 9.99999974E-6 : f32
    %553 = vector.broadcast %cst_173 : f32 to vector<8x1xf32>
    %554 = arith.addf %552, %553 : vector<8x1xf32>
    %555 = math.rsqrt %554 : vector<8x1xf32>
    %556 = vector.broadcast %555 : vector<8x1xf32> to vector<8x32xf32>
    %557 = arith.mulf %547, %556 : vector<8x32xf32>
    %c880 = arith.constant 880 : index
    %c0_174 = arith.constant 0 : index
    %558 = vector.load %arg1[%c880, %c0_174] : memref<1360x128xf32, #tpu.memory_space<vmem>>, vector<1x32xf32>
    %559 = vector.broadcast %558 : vector<1x32xf32> to vector<8x32xf32>
    %560 = arith.mulf %557, %559 : vector<8x32xf32>
    %c888 = arith.constant 888 : index
    %c0_175 = arith.constant 0 : index
    %561 = vector.load %arg1[%c888, %c0_175] : memref<1360x128xf32, #tpu.memory_space<vmem>>, vector<1x32xf32>
    %562 = vector.broadcast %561 : vector<1x32xf32> to vector<8x32xf32>
    %563 = arith.addf %560, %562 : vector<8x32xf32>
    %c800 = arith.constant 800 : index
    %c0_176 = arith.constant 0 : index
    %564 = vector.load %arg1[%c800, %c0_176] : memref<1360x128xf32, #tpu.memory_space<vmem>>, vector<32x96xf32>
    %c832 = arith.constant 832 : index
    %c0_177 = arith.constant 0 : index
    %565 = vector.load %arg1[%c832, %c0_177] : memref<1360x128xf32, #tpu.memory_space<vmem>>, vector<1x96xf32>
    %566 = vector.extract_strided_slice %564 {offsets = [0, 0], sizes = [32, 32], strides = [1, 1]} : vector<32x96xf32> to vector<32x32xf32>
    %567 = arith.truncf %563 : vector<8x32xf32> to vector<8x32xbf16>
    %568 = arith.truncf %566 : vector<32x32xf32> to vector<32x32xbf16>
    %cst_178 = arith.constant dense<0.000000e+00> : vector<8x32xf32>
    %569 = tpu.matmul %567, %568, %cst_178 {dimension_numbers = #tpu.dot_dimension_numbers<[1], [0], [0], [1], [0, 0, 1, 1], [], []>} : vector<8x32xbf16>, vector<32x32xbf16>, vector<8x32xf32> -> vector<8x32xf32>
    %570 = vector.extract_strided_slice %565 {offsets = [0, 0], sizes = [1, 32], strides = [1, 1]} : vector<1x96xf32> to vector<1x32xf32>
    %571 = vector.broadcast %570 : vector<1x32xf32> to vector<8x32xf32>
    %572 = arith.addf %569, %571 : vector<8x32xf32>
    %573 = vector.extract_strided_slice %564 {offsets = [0, 32], sizes = [32, 64], strides = [1, 1]} : vector<32x96xf32> to vector<32x64xf32>
    %574 = arith.truncf %393 : vector<10x32xf32> to vector<10x32xbf16>
    %575 = arith.truncf %573 : vector<32x64xf32> to vector<32x64xbf16>
    %cst_179 = arith.constant dense<0.000000e+00> : vector<10x64xf32>
    %576 = tpu.matmul %574, %575, %cst_179 {dimension_numbers = #tpu.dot_dimension_numbers<[1], [0], [0], [1], [0, 0, 1, 1], [], []>} : vector<10x32xbf16>, vector<32x64xbf16>, vector<10x64xf32> -> vector<10x64xf32>
    %577 = vector.extract_strided_slice %565 {offsets = [0, 32], sizes = [1, 64], strides = [1, 1]} : vector<1x96xf32> to vector<1x64xf32>
    %578 = vector.broadcast %577 : vector<1x64xf32> to vector<10x64xf32>
    %579 = arith.addf %576, %578 : vector<10x64xf32>
    %580 = vector.extract_strided_slice %579 {offsets = [0, 0], sizes = [10, 32], strides = [1, 1]} : vector<10x64xf32> to vector<10x32xf32>
    %581 = vector.extract_strided_slice %579 {offsets = [0, 32], sizes = [10, 32], strides = [1, 1]} : vector<10x64xf32> to vector<10x32xf32>
    %582 = vector.extract_strided_slice %572 {offsets = [0, 0], sizes = [8, 8], strides = [1, 1]} : vector<8x32xf32> to vector<8x8xf32>
    %583 = arith.truncf %582 : vector<8x8xf32> to vector<8x8xbf16>
    %584 = vector.extract_strided_slice %580 {offsets = [0, 0], sizes = [10, 8], strides = [1, 1]} : vector<10x32xf32> to vector<10x8xf32>
    %585 = arith.truncf %584 : vector<10x8xf32> to vector<10x8xbf16>
    %cst_180 = arith.constant dense<0.000000e+00> : vector<8x10xf32>
    %586 = tpu.matmul %583, %585, %cst_180 {dimension_numbers = #tpu.dot_dimension_numbers<[1], [1], [0], [0], [0, 0, 1, 0], [], []>} : vector<8x8xbf16>, vector<10x8xbf16>, vector<8x10xf32> -> vector<8x10xf32>
    %cst_181 = arith.constant 0.353553385 : f32
    %587 = vector.broadcast %cst_181 : f32 to vector<8x10xf32>
    %588 = arith.mulf %586, %587 : vector<8x10xf32>
    %589 = vector.broadcast %18 : vector<1x10xf32> to vector<8x10xf32>
    %590 = arith.addf %588, %589 : vector<8x10xf32>
    %cst_182 = arith.constant dense<0xFF800000> : vector<8xf32>
    %591 = vector.multi_reduction <maximumf>, %590, %cst_182 [1] : vector<8x10xf32> to vector<8xf32>
    %592 = vector.shape_cast %591 : vector<8xf32> to vector<8x1xf32>
    %593 = vector.broadcast %592 : vector<8x1xf32> to vector<8x10xf32>
    %594 = arith.subf %590, %593 : vector<8x10xf32>
    %595 = math.exp %594 : vector<8x10xf32>
    %cst_183 = arith.constant dense<0.000000e+00> : vector<8xf32>
    %596 = vector.multi_reduction <add>, %595, %cst_183 [1] : vector<8x10xf32> to vector<8xf32>
    %597 = vector.shape_cast %596 : vector<8xf32> to vector<8x1xf32>
    %598 = tpu.reciprocal %597 {approx = true} : vector<8x1xf32> -> vector<8x1xf32>
    %599 = vector.broadcast %598 : vector<8x1xf32> to vector<8x10xf32>
    %600 = arith.mulf %595, %599 : vector<8x10xf32>
    %601 = vector.extract_strided_slice %581 {offsets = [0, 0], sizes = [10, 8], strides = [1, 1]} : vector<10x32xf32> to vector<10x8xf32>
    %602 = arith.truncf %600 : vector<8x10xf32> to vector<8x10xbf16>
    %603 = arith.truncf %601 : vector<10x8xf32> to vector<10x8xbf16>
    %cst_184 = arith.constant dense<0.000000e+00> : vector<8x8xf32>
    %604 = tpu.matmul %602, %603, %cst_184 {dimension_numbers = #tpu.dot_dimension_numbers<[1], [0], [0], [1], [0, 0, 1, 1], [], []>} : vector<8x10xbf16>, vector<10x8xbf16>, vector<8x8xf32> -> vector<8x8xf32>
    %605 = vector.extract_strided_slice %572 {offsets = [0, 8], sizes = [8, 8], strides = [1, 1]} : vector<8x32xf32> to vector<8x8xf32>
    %606 = arith.truncf %605 : vector<8x8xf32> to vector<8x8xbf16>
    %607 = vector.extract_strided_slice %580 {offsets = [0, 8], sizes = [10, 8], strides = [1, 1]} : vector<10x32xf32> to vector<10x8xf32>
    %608 = arith.truncf %607 : vector<10x8xf32> to vector<10x8xbf16>
    %cst_185 = arith.constant dense<0.000000e+00> : vector<8x10xf32>
    %609 = tpu.matmul %606, %608, %cst_185 {dimension_numbers = #tpu.dot_dimension_numbers<[1], [1], [0], [0], [0, 0, 1, 0], [], []>} : vector<8x8xbf16>, vector<10x8xbf16>, vector<8x10xf32> -> vector<8x10xf32>
    %cst_186 = arith.constant 0.353553385 : f32
    %610 = vector.broadcast %cst_186 : f32 to vector<8x10xf32>
    %611 = arith.mulf %609, %610 : vector<8x10xf32>
    %612 = vector.broadcast %18 : vector<1x10xf32> to vector<8x10xf32>
    %613 = arith.addf %611, %612 : vector<8x10xf32>
    %cst_187 = arith.constant dense<0xFF800000> : vector<8xf32>
    %614 = vector.multi_reduction <maximumf>, %613, %cst_187 [1] : vector<8x10xf32> to vector<8xf32>
    %615 = vector.shape_cast %614 : vector<8xf32> to vector<8x1xf32>
    %616 = vector.broadcast %615 : vector<8x1xf32> to vector<8x10xf32>
    %617 = arith.subf %613, %616 : vector<8x10xf32>
    %618 = math.exp %617 : vector<8x10xf32>
    %cst_188 = arith.constant dense<0.000000e+00> : vector<8xf32>
    %619 = vector.multi_reduction <add>, %618, %cst_188 [1] : vector<8x10xf32> to vector<8xf32>
    %620 = vector.shape_cast %619 : vector<8xf32> to vector<8x1xf32>
    %621 = tpu.reciprocal %620 {approx = true} : vector<8x1xf32> -> vector<8x1xf32>
    %622 = vector.broadcast %621 : vector<8x1xf32> to vector<8x10xf32>
    %623 = arith.mulf %618, %622 : vector<8x10xf32>
    %624 = vector.extract_strided_slice %581 {offsets = [0, 8], sizes = [10, 8], strides = [1, 1]} : vector<10x32xf32> to vector<10x8xf32>
    %625 = arith.truncf %623 : vector<8x10xf32> to vector<8x10xbf16>
    %626 = arith.truncf %624 : vector<10x8xf32> to vector<10x8xbf16>
    %cst_189 = arith.constant dense<0.000000e+00> : vector<8x8xf32>
    %627 = tpu.matmul %625, %626, %cst_189 {dimension_numbers = #tpu.dot_dimension_numbers<[1], [0], [0], [1], [0, 0, 1, 1], [], []>} : vector<8x10xbf16>, vector<10x8xbf16>, vector<8x8xf32> -> vector<8x8xf32>
    %628 = vector.extract_strided_slice %572 {offsets = [0, 16], sizes = [8, 8], strides = [1, 1]} : vector<8x32xf32> to vector<8x8xf32>
    %629 = arith.truncf %628 : vector<8x8xf32> to vector<8x8xbf16>
    %630 = vector.extract_strided_slice %580 {offsets = [0, 16], sizes = [10, 8], strides = [1, 1]} : vector<10x32xf32> to vector<10x8xf32>
    %631 = arith.truncf %630 : vector<10x8xf32> to vector<10x8xbf16>
    %cst_190 = arith.constant dense<0.000000e+00> : vector<8x10xf32>
    %632 = tpu.matmul %629, %631, %cst_190 {dimension_numbers = #tpu.dot_dimension_numbers<[1], [1], [0], [0], [0, 0, 1, 0], [], []>} : vector<8x8xbf16>, vector<10x8xbf16>, vector<8x10xf32> -> vector<8x10xf32>
    %cst_191 = arith.constant 0.353553385 : f32
    %633 = vector.broadcast %cst_191 : f32 to vector<8x10xf32>
    %634 = arith.mulf %632, %633 : vector<8x10xf32>
    %635 = vector.broadcast %18 : vector<1x10xf32> to vector<8x10xf32>
    %636 = arith.addf %634, %635 : vector<8x10xf32>
    %cst_192 = arith.constant dense<0xFF800000> : vector<8xf32>
    %637 = vector.multi_reduction <maximumf>, %636, %cst_192 [1] : vector<8x10xf32> to vector<8xf32>
    %638 = vector.shape_cast %637 : vector<8xf32> to vector<8x1xf32>
    %639 = vector.broadcast %638 : vector<8x1xf32> to vector<8x10xf32>
    %640 = arith.subf %636, %639 : vector<8x10xf32>
    %641 = math.exp %640 : vector<8x10xf32>
    %cst_193 = arith.constant dense<0.000000e+00> : vector<8xf32>
    %642 = vector.multi_reduction <add>, %641, %cst_193 [1] : vector<8x10xf32> to vector<8xf32>
    %643 = vector.shape_cast %642 : vector<8xf32> to vector<8x1xf32>
    %644 = tpu.reciprocal %643 {approx = true} : vector<8x1xf32> -> vector<8x1xf32>
    %645 = vector.broadcast %644 : vector<8x1xf32> to vector<8x10xf32>
    %646 = arith.mulf %641, %645 : vector<8x10xf32>
    %647 = vector.extract_strided_slice %581 {offsets = [0, 16], sizes = [10, 8], strides = [1, 1]} : vector<10x32xf32> to vector<10x8xf32>
    %648 = arith.truncf %646 : vector<8x10xf32> to vector<8x10xbf16>
    %649 = arith.truncf %647 : vector<10x8xf32> to vector<10x8xbf16>
    %cst_194 = arith.constant dense<0.000000e+00> : vector<8x8xf32>
    %650 = tpu.matmul %648, %649, %cst_194 {dimension_numbers = #tpu.dot_dimension_numbers<[1], [0], [0], [1], [0, 0, 1, 1], [], []>} : vector<8x10xbf16>, vector<10x8xbf16>, vector<8x8xf32> -> vector<8x8xf32>
    %651 = vector.extract_strided_slice %572 {offsets = [0, 24], sizes = [8, 8], strides = [1, 1]} : vector<8x32xf32> to vector<8x8xf32>
    %652 = arith.truncf %651 : vector<8x8xf32> to vector<8x8xbf16>
    %653 = vector.extract_strided_slice %580 {offsets = [0, 24], sizes = [10, 8], strides = [1, 1]} : vector<10x32xf32> to vector<10x8xf32>
    %654 = arith.truncf %653 : vector<10x8xf32> to vector<10x8xbf16>
    %cst_195 = arith.constant dense<0.000000e+00> : vector<8x10xf32>
    %655 = tpu.matmul %652, %654, %cst_195 {dimension_numbers = #tpu.dot_dimension_numbers<[1], [1], [0], [0], [0, 0, 1, 0], [], []>} : vector<8x8xbf16>, vector<10x8xbf16>, vector<8x10xf32> -> vector<8x10xf32>
    %cst_196 = arith.constant 0.353553385 : f32
    %656 = vector.broadcast %cst_196 : f32 to vector<8x10xf32>
    %657 = arith.mulf %655, %656 : vector<8x10xf32>
    %658 = vector.broadcast %18 : vector<1x10xf32> to vector<8x10xf32>
    %659 = arith.addf %657, %658 : vector<8x10xf32>
    %cst_197 = arith.constant dense<0xFF800000> : vector<8xf32>
    %660 = vector.multi_reduction <maximumf>, %659, %cst_197 [1] : vector<8x10xf32> to vector<8xf32>
    %661 = vector.shape_cast %660 : vector<8xf32> to vector<8x1xf32>
    %662 = vector.broadcast %661 : vector<8x1xf32> to vector<8x10xf32>
    %663 = arith.subf %659, %662 : vector<8x10xf32>
    %664 = math.exp %663 : vector<8x10xf32>
    %cst_198 = arith.constant dense<0.000000e+00> : vector<8xf32>
    %665 = vector.multi_reduction <add>, %664, %cst_198 [1] : vector<8x10xf32> to vector<8xf32>
    %666 = vector.shape_cast %665 : vector<8xf32> to vector<8x1xf32>
    %667 = tpu.reciprocal %666 {approx = true} : vector<8x1xf32> -> vector<8x1xf32>
    %668 = vector.broadcast %667 : vector<8x1xf32> to vector<8x10xf32>
    %669 = arith.mulf %664, %668 : vector<8x10xf32>
    %670 = vector.extract_strided_slice %581 {offsets = [0, 24], sizes = [10, 8], strides = [1, 1]} : vector<10x32xf32> to vector<10x8xf32>
    %671 = arith.truncf %669 : vector<8x10xf32> to vector<8x10xbf16>
    %672 = arith.truncf %670 : vector<10x8xf32> to vector<10x8xbf16>
    %cst_199 = arith.constant dense<0.000000e+00> : vector<8x8xf32>
    %673 = tpu.matmul %671, %672, %cst_199 {dimension_numbers = #tpu.dot_dimension_numbers<[1], [0], [0], [1], [0, 0, 1, 1], [], []>} : vector<8x10xbf16>, vector<10x8xbf16>, vector<8x8xf32> -> vector<8x8xf32>
    %674 = tpu.concatenate %604, %627, %650, %673 in 1 : vector<8x8xf32>, vector<8x8xf32>, vector<8x8xf32>, vector<8x8xf32> -> vector<8x32xf32>
    %c840 = arith.constant 840 : index
    %c0_200 = arith.constant 0 : index
    %675 = vector.load %arg1[%c840, %c0_200] : memref<1360x128xf32, #tpu.memory_space<vmem>>, vector<32x32xf32>
    %676 = arith.truncf %674 : vector<8x32xf32> to vector<8x32xbf16>
    %677 = arith.truncf %675 : vector<32x32xf32> to vector<32x32xbf16>
    %cst_201 = arith.constant dense<0.000000e+00> : vector<8x32xf32>
    %678 = tpu.matmul %676, %677, %cst_201 {dimension_numbers = #tpu.dot_dimension_numbers<[1], [0], [0], [1], [0, 0, 1, 1], [], []>} : vector<8x32xbf16>, vector<32x32xbf16>, vector<8x32xf32> -> vector<8x32xf32>
    %c872 = arith.constant 872 : index
    %c0_202 = arith.constant 0 : index
    %679 = vector.load %arg1[%c872, %c0_202] : memref<1360x128xf32, #tpu.memory_space<vmem>>, vector<1x32xf32>
    %680 = vector.broadcast %679 : vector<1x32xf32> to vector<8x32xf32>
    %681 = arith.addf %678, %680 : vector<8x32xf32>
    %682 = arith.addf %563, %681 : vector<8x32xf32>
    %cst_203 = arith.constant dense<0.000000e+00> : vector<8xf32>
    %683 = vector.multi_reduction <add>, %682, %cst_203 [1] : vector<8x32xf32> to vector<8xf32>
    %684 = vector.shape_cast %683 : vector<8xf32> to vector<8x1xf32>
    %cst_204 = arith.constant 3.200000e+01 : f32
    %685 = vector.broadcast %cst_204 : f32 to vector<8x1xf32>
    %686 = arith.divf %684, %685 : vector<8x1xf32>
    %687 = vector.broadcast %686 : vector<8x1xf32> to vector<8x32xf32>
    %688 = arith.subf %682, %687 : vector<8x32xf32>
    %689 = arith.mulf %688, %688 : vector<8x32xf32>
    %cst_205 = arith.constant dense<0.000000e+00> : vector<8xf32>
    %690 = vector.multi_reduction <add>, %689, %cst_205 [1] : vector<8x32xf32> to vector<8xf32>
    %691 = vector.shape_cast %690 : vector<8xf32> to vector<8x1xf32>
    %cst_206 = arith.constant 3.200000e+01 : f32
    %692 = vector.broadcast %cst_206 : f32 to vector<8x1xf32>
    %693 = arith.divf %691, %692 : vector<8x1xf32>
    %cst_207 = arith.constant 9.99999974E-6 : f32
    %694 = vector.broadcast %cst_207 : f32 to vector<8x1xf32>
    %695 = arith.addf %693, %694 : vector<8x1xf32>
    %696 = math.rsqrt %695 : vector<8x1xf32>
    %697 = vector.broadcast %696 : vector<8x1xf32> to vector<8x32xf32>
    %698 = arith.mulf %688, %697 : vector<8x32xf32>
    %c896 = arith.constant 896 : index
    %c0_208 = arith.constant 0 : index
    %699 = vector.load %arg1[%c896, %c0_208] : memref<1360x128xf32, #tpu.memory_space<vmem>>, vector<1x32xf32>
    %700 = vector.broadcast %699 : vector<1x32xf32> to vector<8x32xf32>
    %701 = arith.mulf %698, %700 : vector<8x32xf32>
    %c904 = arith.constant 904 : index
    %c0_209 = arith.constant 0 : index
    %702 = vector.load %arg1[%c904, %c0_209] : memref<1360x128xf32, #tpu.memory_space<vmem>>, vector<1x32xf32>
    %703 = vector.broadcast %702 : vector<1x32xf32> to vector<8x32xf32>
    %704 = arith.addf %701, %703 : vector<8x32xf32>
    %c912 = arith.constant 912 : index
    %c0_210 = arith.constant 0 : index
    %705 = vector.load %arg1[%c912, %c0_210] : memref<1360x128xf32, #tpu.memory_space<vmem>>, vector<32x64xf32>
    %706 = arith.truncf %704 : vector<8x32xf32> to vector<8x32xbf16>
    %707 = arith.truncf %705 : vector<32x64xf32> to vector<32x64xbf16>
    %cst_211 = arith.constant dense<0.000000e+00> : vector<8x64xf32>
    %708 = tpu.matmul %706, %707, %cst_211 {dimension_numbers = #tpu.dot_dimension_numbers<[1], [0], [0], [1], [0, 0, 1, 1], [], []>} : vector<8x32xbf16>, vector<32x64xbf16>, vector<8x64xf32> -> vector<8x64xf32>
    %c944 = arith.constant 944 : index
    %c0_212 = arith.constant 0 : index
    %709 = vector.load %arg1[%c944, %c0_212] : memref<1360x128xf32, #tpu.memory_space<vmem>>, vector<1x64xf32>
    %710 = vector.broadcast %709 : vector<1x64xf32> to vector<8x64xf32>
    %711 = arith.addf %708, %710 : vector<8x64xf32>
    %cst_213 = arith.constant 0.000000e+00 : f32
    %712 = vector.broadcast %cst_213 : f32 to vector<8x64xf32>
    %713 = arith.maximumf %711, %712 : vector<8x64xf32>
    %c952 = arith.constant 952 : index
    %c0_214 = arith.constant 0 : index
    %714 = vector.load %arg1[%c952, %c0_214] : memref<1360x128xf32, #tpu.memory_space<vmem>>, vector<64x32xf32>
    %715 = arith.truncf %713 : vector<8x64xf32> to vector<8x64xbf16>
    %716 = arith.truncf %714 : vector<64x32xf32> to vector<64x32xbf16>
    %cst_215 = arith.constant dense<0.000000e+00> : vector<8x32xf32>
    %717 = tpu.matmul %715, %716, %cst_215 {dimension_numbers = #tpu.dot_dimension_numbers<[1], [0], [0], [1], [0, 0, 1, 1], [], []>} : vector<8x64xbf16>, vector<64x32xbf16>, vector<8x32xf32> -> vector<8x32xf32>
    %c1016 = arith.constant 1016 : index
    %c0_216 = arith.constant 0 : index
    %718 = vector.load %arg1[%c1016, %c0_216] : memref<1360x128xf32, #tpu.memory_space<vmem>>, vector<1x32xf32>
    %719 = vector.broadcast %718 : vector<1x32xf32> to vector<8x32xf32>
    %720 = arith.addf %717, %719 : vector<8x32xf32>
    %721 = arith.addf %704, %720 : vector<8x32xf32>
    %cst_217 = arith.constant dense<0.000000e+00> : vector<8xf32>
    %722 = vector.multi_reduction <add>, %721, %cst_217 [1] : vector<8x32xf32> to vector<8xf32>
    %723 = vector.shape_cast %722 : vector<8xf32> to vector<8x1xf32>
    %cst_218 = arith.constant 3.200000e+01 : f32
    %724 = vector.broadcast %cst_218 : f32 to vector<8x1xf32>
    %725 = arith.divf %723, %724 : vector<8x1xf32>
    %726 = vector.broadcast %725 : vector<8x1xf32> to vector<8x32xf32>
    %727 = arith.subf %721, %726 : vector<8x32xf32>
    %728 = arith.mulf %727, %727 : vector<8x32xf32>
    %cst_219 = arith.constant dense<0.000000e+00> : vector<8xf32>
    %729 = vector.multi_reduction <add>, %728, %cst_219 [1] : vector<8x32xf32> to vector<8xf32>
    %730 = vector.shape_cast %729 : vector<8xf32> to vector<8x1xf32>
    %cst_220 = arith.constant 3.200000e+01 : f32
    %731 = vector.broadcast %cst_220 : f32 to vector<8x1xf32>
    %732 = arith.divf %730, %731 : vector<8x1xf32>
    %cst_221 = arith.constant 9.99999974E-6 : f32
    %733 = vector.broadcast %cst_221 : f32 to vector<8x1xf32>
    %734 = arith.addf %732, %733 : vector<8x1xf32>
    %735 = math.rsqrt %734 : vector<8x1xf32>
    %736 = vector.broadcast %735 : vector<8x1xf32> to vector<8x32xf32>
    %737 = arith.mulf %727, %736 : vector<8x32xf32>
    %c1024 = arith.constant 1024 : index
    %c0_222 = arith.constant 0 : index
    %738 = vector.load %arg1[%c1024, %c0_222] : memref<1360x128xf32, #tpu.memory_space<vmem>>, vector<1x32xf32>
    %739 = vector.broadcast %738 : vector<1x32xf32> to vector<8x32xf32>
    %740 = arith.mulf %737, %739 : vector<8x32xf32>
    %c1032 = arith.constant 1032 : index
    %c0_223 = arith.constant 0 : index
    %741 = vector.load %arg1[%c1032, %c0_223] : memref<1360x128xf32, #tpu.memory_space<vmem>>, vector<1x32xf32>
    %742 = vector.broadcast %741 : vector<1x32xf32> to vector<8x32xf32>
    %743 = arith.addf %740, %742 : vector<8x32xf32>
    %c1040 = arith.constant 1040 : index
    %c0_224 = arith.constant 0 : index
    %744 = vector.load %arg1[%c1040, %c0_224] : memref<1360x128xf32, #tpu.memory_space<vmem>>, vector<32x96xf32>
    %c1072 = arith.constant 1072 : index
    %c0_225 = arith.constant 0 : index
    %745 = vector.load %arg1[%c1072, %c0_225] : memref<1360x128xf32, #tpu.memory_space<vmem>>, vector<1x96xf32>
    %746 = arith.truncf %743 : vector<8x32xf32> to vector<8x32xbf16>
    %747 = arith.truncf %744 : vector<32x96xf32> to vector<32x96xbf16>
    %cst_226 = arith.constant dense<0.000000e+00> : vector<8x96xf32>
    %748 = tpu.matmul %746, %747, %cst_226 {dimension_numbers = #tpu.dot_dimension_numbers<[1], [0], [0], [1], [0, 0, 1, 1], [], []>} : vector<8x32xbf16>, vector<32x96xbf16>, vector<8x96xf32> -> vector<8x96xf32>
    %749 = vector.broadcast %745 : vector<1x96xf32> to vector<8x96xf32>
    %750 = arith.addf %748, %749 : vector<8x96xf32>
    %751 = vector.extract_strided_slice %750 {offsets = [0, 0], sizes = [8, 32], strides = [1, 1]} : vector<8x96xf32> to vector<8x32xf32>
    %752 = vector.extract_strided_slice %750 {offsets = [0, 32], sizes = [8, 32], strides = [1, 1]} : vector<8x96xf32> to vector<8x32xf32>
    %753 = vector.extract_strided_slice %750 {offsets = [0, 64], sizes = [8, 32], strides = [1, 1]} : vector<8x96xf32> to vector<8x32xf32>
    %754 = vector.extract_strided_slice %751 {offsets = [0, 0], sizes = [8, 8], strides = [1, 1]} : vector<8x32xf32> to vector<8x8xf32>
    %755 = arith.truncf %754 : vector<8x8xf32> to vector<8x8xbf16>
    %756 = vector.extract_strided_slice %752 {offsets = [0, 0], sizes = [8, 8], strides = [1, 1]} : vector<8x32xf32> to vector<8x8xf32>
    %757 = arith.truncf %756 : vector<8x8xf32> to vector<8x8xbf16>
    %cst_227 = arith.constant dense<0.000000e+00> : vector<8x8xf32>
    %758 = tpu.matmul %755, %757, %cst_227 {dimension_numbers = #tpu.dot_dimension_numbers<[1], [1], [0], [0], [0, 0, 1, 0], [], []>} : vector<8x8xbf16>, vector<8x8xbf16>, vector<8x8xf32> -> vector<8x8xf32>
    %cst_228 = arith.constant 0.353553385 : f32
    %759 = vector.broadcast %cst_228 : f32 to vector<8x8xf32>
    %760 = arith.mulf %758, %759 : vector<8x8xf32>
    %761 = arith.addf %760, %434 : vector<8x8xf32>
    %cst_229 = arith.constant dense<0xFF800000> : vector<8xf32>
    %762 = vector.multi_reduction <maximumf>, %761, %cst_229 [1] : vector<8x8xf32> to vector<8xf32>
    %763 = vector.shape_cast %762 : vector<8xf32> to vector<8x1xf32>
    %764 = vector.broadcast %763 : vector<8x1xf32> to vector<8x8xf32>
    %765 = arith.subf %761, %764 : vector<8x8xf32>
    %766 = math.exp %765 : vector<8x8xf32>
    %cst_230 = arith.constant dense<0.000000e+00> : vector<8xf32>
    %767 = vector.multi_reduction <add>, %766, %cst_230 [1] : vector<8x8xf32> to vector<8xf32>
    %768 = vector.shape_cast %767 : vector<8xf32> to vector<8x1xf32>
    %769 = tpu.reciprocal %768 {approx = true} : vector<8x1xf32> -> vector<8x1xf32>
    %770 = vector.broadcast %769 : vector<8x1xf32> to vector<8x8xf32>
    %771 = arith.mulf %766, %770 : vector<8x8xf32>
    %772 = vector.extract_strided_slice %753 {offsets = [0, 0], sizes = [8, 8], strides = [1, 1]} : vector<8x32xf32> to vector<8x8xf32>
    %773 = arith.truncf %771 : vector<8x8xf32> to vector<8x8xbf16>
    %774 = arith.truncf %772 : vector<8x8xf32> to vector<8x8xbf16>
    %cst_231 = arith.constant dense<0.000000e+00> : vector<8x8xf32>
    %775 = tpu.matmul %773, %774, %cst_231 {dimension_numbers = #tpu.dot_dimension_numbers<[1], [0], [0], [1], [0, 0, 1, 1], [], []>} : vector<8x8xbf16>, vector<8x8xbf16>, vector<8x8xf32> -> vector<8x8xf32>
    %776 = vector.extract_strided_slice %751 {offsets = [0, 8], sizes = [8, 8], strides = [1, 1]} : vector<8x32xf32> to vector<8x8xf32>
    %777 = arith.truncf %776 : vector<8x8xf32> to vector<8x8xbf16>
    %778 = vector.extract_strided_slice %752 {offsets = [0, 8], sizes = [8, 8], strides = [1, 1]} : vector<8x32xf32> to vector<8x8xf32>
    %779 = arith.truncf %778 : vector<8x8xf32> to vector<8x8xbf16>
    %cst_232 = arith.constant dense<0.000000e+00> : vector<8x8xf32>
    %780 = tpu.matmul %777, %779, %cst_232 {dimension_numbers = #tpu.dot_dimension_numbers<[1], [1], [0], [0], [0, 0, 1, 0], [], []>} : vector<8x8xbf16>, vector<8x8xbf16>, vector<8x8xf32> -> vector<8x8xf32>
    %cst_233 = arith.constant 0.353553385 : f32
    %781 = vector.broadcast %cst_233 : f32 to vector<8x8xf32>
    %782 = arith.mulf %780, %781 : vector<8x8xf32>
    %783 = arith.addf %782, %434 : vector<8x8xf32>
    %cst_234 = arith.constant dense<0xFF800000> : vector<8xf32>
    %784 = vector.multi_reduction <maximumf>, %783, %cst_234 [1] : vector<8x8xf32> to vector<8xf32>
    %785 = vector.shape_cast %784 : vector<8xf32> to vector<8x1xf32>
    %786 = vector.broadcast %785 : vector<8x1xf32> to vector<8x8xf32>
    %787 = arith.subf %783, %786 : vector<8x8xf32>
    %788 = math.exp %787 : vector<8x8xf32>
    %cst_235 = arith.constant dense<0.000000e+00> : vector<8xf32>
    %789 = vector.multi_reduction <add>, %788, %cst_235 [1] : vector<8x8xf32> to vector<8xf32>
    %790 = vector.shape_cast %789 : vector<8xf32> to vector<8x1xf32>
    %791 = tpu.reciprocal %790 {approx = true} : vector<8x1xf32> -> vector<8x1xf32>
    %792 = vector.broadcast %791 : vector<8x1xf32> to vector<8x8xf32>
    %793 = arith.mulf %788, %792 : vector<8x8xf32>
    %794 = vector.extract_strided_slice %753 {offsets = [0, 8], sizes = [8, 8], strides = [1, 1]} : vector<8x32xf32> to vector<8x8xf32>
    %795 = arith.truncf %793 : vector<8x8xf32> to vector<8x8xbf16>
    %796 = arith.truncf %794 : vector<8x8xf32> to vector<8x8xbf16>
    %cst_236 = arith.constant dense<0.000000e+00> : vector<8x8xf32>
    %797 = tpu.matmul %795, %796, %cst_236 {dimension_numbers = #tpu.dot_dimension_numbers<[1], [0], [0], [1], [0, 0, 1, 1], [], []>} : vector<8x8xbf16>, vector<8x8xbf16>, vector<8x8xf32> -> vector<8x8xf32>
    %798 = vector.extract_strided_slice %751 {offsets = [0, 16], sizes = [8, 8], strides = [1, 1]} : vector<8x32xf32> to vector<8x8xf32>
    %799 = arith.truncf %798 : vector<8x8xf32> to vector<8x8xbf16>
    %800 = vector.extract_strided_slice %752 {offsets = [0, 16], sizes = [8, 8], strides = [1, 1]} : vector<8x32xf32> to vector<8x8xf32>
    %801 = arith.truncf %800 : vector<8x8xf32> to vector<8x8xbf16>
    %cst_237 = arith.constant dense<0.000000e+00> : vector<8x8xf32>
    %802 = tpu.matmul %799, %801, %cst_237 {dimension_numbers = #tpu.dot_dimension_numbers<[1], [1], [0], [0], [0, 0, 1, 0], [], []>} : vector<8x8xbf16>, vector<8x8xbf16>, vector<8x8xf32> -> vector<8x8xf32>
    %cst_238 = arith.constant 0.353553385 : f32
    %803 = vector.broadcast %cst_238 : f32 to vector<8x8xf32>
    %804 = arith.mulf %802, %803 : vector<8x8xf32>
    %805 = arith.addf %804, %434 : vector<8x8xf32>
    %cst_239 = arith.constant dense<0xFF800000> : vector<8xf32>
    %806 = vector.multi_reduction <maximumf>, %805, %cst_239 [1] : vector<8x8xf32> to vector<8xf32>
    %807 = vector.shape_cast %806 : vector<8xf32> to vector<8x1xf32>
    %808 = vector.broadcast %807 : vector<8x1xf32> to vector<8x8xf32>
    %809 = arith.subf %805, %808 : vector<8x8xf32>
    %810 = math.exp %809 : vector<8x8xf32>
    %cst_240 = arith.constant dense<0.000000e+00> : vector<8xf32>
    %811 = vector.multi_reduction <add>, %810, %cst_240 [1] : vector<8x8xf32> to vector<8xf32>
    %812 = vector.shape_cast %811 : vector<8xf32> to vector<8x1xf32>
    %813 = tpu.reciprocal %812 {approx = true} : vector<8x1xf32> -> vector<8x1xf32>
    %814 = vector.broadcast %813 : vector<8x1xf32> to vector<8x8xf32>
    %815 = arith.mulf %810, %814 : vector<8x8xf32>
    %816 = vector.extract_strided_slice %753 {offsets = [0, 16], sizes = [8, 8], strides = [1, 1]} : vector<8x32xf32> to vector<8x8xf32>
    %817 = arith.truncf %815 : vector<8x8xf32> to vector<8x8xbf16>
    %818 = arith.truncf %816 : vector<8x8xf32> to vector<8x8xbf16>
    %cst_241 = arith.constant dense<0.000000e+00> : vector<8x8xf32>
    %819 = tpu.matmul %817, %818, %cst_241 {dimension_numbers = #tpu.dot_dimension_numbers<[1], [0], [0], [1], [0, 0, 1, 1], [], []>} : vector<8x8xbf16>, vector<8x8xbf16>, vector<8x8xf32> -> vector<8x8xf32>
    %820 = vector.extract_strided_slice %751 {offsets = [0, 24], sizes = [8, 8], strides = [1, 1]} : vector<8x32xf32> to vector<8x8xf32>
    %821 = arith.truncf %820 : vector<8x8xf32> to vector<8x8xbf16>
    %822 = vector.extract_strided_slice %752 {offsets = [0, 24], sizes = [8, 8], strides = [1, 1]} : vector<8x32xf32> to vector<8x8xf32>
    %823 = arith.truncf %822 : vector<8x8xf32> to vector<8x8xbf16>
    %cst_242 = arith.constant dense<0.000000e+00> : vector<8x8xf32>
    %824 = tpu.matmul %821, %823, %cst_242 {dimension_numbers = #tpu.dot_dimension_numbers<[1], [1], [0], [0], [0, 0, 1, 0], [], []>} : vector<8x8xbf16>, vector<8x8xbf16>, vector<8x8xf32> -> vector<8x8xf32>
    %cst_243 = arith.constant 0.353553385 : f32
    %825 = vector.broadcast %cst_243 : f32 to vector<8x8xf32>
    %826 = arith.mulf %824, %825 : vector<8x8xf32>
    %827 = arith.addf %826, %434 : vector<8x8xf32>
    %cst_244 = arith.constant dense<0xFF800000> : vector<8xf32>
    %828 = vector.multi_reduction <maximumf>, %827, %cst_244 [1] : vector<8x8xf32> to vector<8xf32>
    %829 = vector.shape_cast %828 : vector<8xf32> to vector<8x1xf32>
    %830 = vector.broadcast %829 : vector<8x1xf32> to vector<8x8xf32>
    %831 = arith.subf %827, %830 : vector<8x8xf32>
    %832 = math.exp %831 : vector<8x8xf32>
    %cst_245 = arith.constant dense<0.000000e+00> : vector<8xf32>
    %833 = vector.multi_reduction <add>, %832, %cst_245 [1] : vector<8x8xf32> to vector<8xf32>
    %834 = vector.shape_cast %833 : vector<8xf32> to vector<8x1xf32>
    %835 = tpu.reciprocal %834 {approx = true} : vector<8x1xf32> -> vector<8x1xf32>
    %836 = vector.broadcast %835 : vector<8x1xf32> to vector<8x8xf32>
    %837 = arith.mulf %832, %836 : vector<8x8xf32>
    %838 = vector.extract_strided_slice %753 {offsets = [0, 24], sizes = [8, 8], strides = [1, 1]} : vector<8x32xf32> to vector<8x8xf32>
    %839 = arith.truncf %837 : vector<8x8xf32> to vector<8x8xbf16>
    %840 = arith.truncf %838 : vector<8x8xf32> to vector<8x8xbf16>
    %cst_246 = arith.constant dense<0.000000e+00> : vector<8x8xf32>
    %841 = tpu.matmul %839, %840, %cst_246 {dimension_numbers = #tpu.dot_dimension_numbers<[1], [0], [0], [1], [0, 0, 1, 1], [], []>} : vector<8x8xbf16>, vector<8x8xbf16>, vector<8x8xf32> -> vector<8x8xf32>
    %842 = tpu.concatenate %775, %797, %819, %841 in 1 : vector<8x8xf32>, vector<8x8xf32>, vector<8x8xf32>, vector<8x8xf32> -> vector<8x32xf32>
    %c1080 = arith.constant 1080 : index
    %c0_247 = arith.constant 0 : index
    %843 = vector.load %arg1[%c1080, %c0_247] : memref<1360x128xf32, #tpu.memory_space<vmem>>, vector<32x32xf32>
    %844 = arith.truncf %842 : vector<8x32xf32> to vector<8x32xbf16>
    %845 = arith.truncf %843 : vector<32x32xf32> to vector<32x32xbf16>
    %cst_248 = arith.constant dense<0.000000e+00> : vector<8x32xf32>
    %846 = tpu.matmul %844, %845, %cst_248 {dimension_numbers = #tpu.dot_dimension_numbers<[1], [0], [0], [1], [0, 0, 1, 1], [], []>} : vector<8x32xbf16>, vector<32x32xbf16>, vector<8x32xf32> -> vector<8x32xf32>
    %c1112 = arith.constant 1112 : index
    %c0_249 = arith.constant 0 : index
    %847 = vector.load %arg1[%c1112, %c0_249] : memref<1360x128xf32, #tpu.memory_space<vmem>>, vector<1x32xf32>
    %848 = vector.broadcast %847 : vector<1x32xf32> to vector<8x32xf32>
    %849 = arith.addf %846, %848 : vector<8x32xf32>
    %850 = arith.addf %743, %849 : vector<8x32xf32>
    %cst_250 = arith.constant dense<0.000000e+00> : vector<8xf32>
    %851 = vector.multi_reduction <add>, %850, %cst_250 [1] : vector<8x32xf32> to vector<8xf32>
    %852 = vector.shape_cast %851 : vector<8xf32> to vector<8x1xf32>
    %cst_251 = arith.constant 3.200000e+01 : f32
    %853 = vector.broadcast %cst_251 : f32 to vector<8x1xf32>
    %854 = arith.divf %852, %853 : vector<8x1xf32>
    %855 = vector.broadcast %854 : vector<8x1xf32> to vector<8x32xf32>
    %856 = arith.subf %850, %855 : vector<8x32xf32>
    %857 = arith.mulf %856, %856 : vector<8x32xf32>
    %cst_252 = arith.constant dense<0.000000e+00> : vector<8xf32>
    %858 = vector.multi_reduction <add>, %857, %cst_252 [1] : vector<8x32xf32> to vector<8xf32>
    %859 = vector.shape_cast %858 : vector<8xf32> to vector<8x1xf32>
    %cst_253 = arith.constant 3.200000e+01 : f32
    %860 = vector.broadcast %cst_253 : f32 to vector<8x1xf32>
    %861 = arith.divf %859, %860 : vector<8x1xf32>
    %cst_254 = arith.constant 9.99999974E-6 : f32
    %862 = vector.broadcast %cst_254 : f32 to vector<8x1xf32>
    %863 = arith.addf %861, %862 : vector<8x1xf32>
    %864 = math.rsqrt %863 : vector<8x1xf32>
    %865 = vector.broadcast %864 : vector<8x1xf32> to vector<8x32xf32>
    %866 = arith.mulf %856, %865 : vector<8x32xf32>
    %c1200 = arith.constant 1200 : index
    %c0_255 = arith.constant 0 : index
    %867 = vector.load %arg1[%c1200, %c0_255] : memref<1360x128xf32, #tpu.memory_space<vmem>>, vector<1x32xf32>
    %868 = vector.broadcast %867 : vector<1x32xf32> to vector<8x32xf32>
    %869 = arith.mulf %866, %868 : vector<8x32xf32>
    %c1208 = arith.constant 1208 : index
    %c0_256 = arith.constant 0 : index
    %870 = vector.load %arg1[%c1208, %c0_256] : memref<1360x128xf32, #tpu.memory_space<vmem>>, vector<1x32xf32>
    %871 = vector.broadcast %870 : vector<1x32xf32> to vector<8x32xf32>
    %872 = arith.addf %869, %871 : vector<8x32xf32>
    %c1120 = arith.constant 1120 : index
    %c0_257 = arith.constant 0 : index
    %873 = vector.load %arg1[%c1120, %c0_257] : memref<1360x128xf32, #tpu.memory_space<vmem>>, vector<32x96xf32>
    %c1152 = arith.constant 1152 : index
    %c0_258 = arith.constant 0 : index
    %874 = vector.load %arg1[%c1152, %c0_258] : memref<1360x128xf32, #tpu.memory_space<vmem>>, vector<1x96xf32>
    %875 = vector.extract_strided_slice %873 {offsets = [0, 0], sizes = [32, 32], strides = [1, 1]} : vector<32x96xf32> to vector<32x32xf32>
    %876 = arith.truncf %872 : vector<8x32xf32> to vector<8x32xbf16>
    %877 = arith.truncf %875 : vector<32x32xf32> to vector<32x32xbf16>
    %cst_259 = arith.constant dense<0.000000e+00> : vector<8x32xf32>
    %878 = tpu.matmul %876, %877, %cst_259 {dimension_numbers = #tpu.dot_dimension_numbers<[1], [0], [0], [1], [0, 0, 1, 1], [], []>} : vector<8x32xbf16>, vector<32x32xbf16>, vector<8x32xf32> -> vector<8x32xf32>
    %879 = vector.extract_strided_slice %874 {offsets = [0, 0], sizes = [1, 32], strides = [1, 1]} : vector<1x96xf32> to vector<1x32xf32>
    %880 = vector.broadcast %879 : vector<1x32xf32> to vector<8x32xf32>
    %881 = arith.addf %878, %880 : vector<8x32xf32>
    %882 = vector.extract_strided_slice %873 {offsets = [0, 32], sizes = [32, 64], strides = [1, 1]} : vector<32x96xf32> to vector<32x64xf32>
    %883 = arith.truncf %393 : vector<10x32xf32> to vector<10x32xbf16>
    %884 = arith.truncf %882 : vector<32x64xf32> to vector<32x64xbf16>
    %cst_260 = arith.constant dense<0.000000e+00> : vector<10x64xf32>
    %885 = tpu.matmul %883, %884, %cst_260 {dimension_numbers = #tpu.dot_dimension_numbers<[1], [0], [0], [1], [0, 0, 1, 1], [], []>} : vector<10x32xbf16>, vector<32x64xbf16>, vector<10x64xf32> -> vector<10x64xf32>
    %886 = vector.extract_strided_slice %874 {offsets = [0, 32], sizes = [1, 64], strides = [1, 1]} : vector<1x96xf32> to vector<1x64xf32>
    %887 = vector.broadcast %886 : vector<1x64xf32> to vector<10x64xf32>
    %888 = arith.addf %885, %887 : vector<10x64xf32>
    %889 = vector.extract_strided_slice %888 {offsets = [0, 0], sizes = [10, 32], strides = [1, 1]} : vector<10x64xf32> to vector<10x32xf32>
    %890 = vector.extract_strided_slice %888 {offsets = [0, 32], sizes = [10, 32], strides = [1, 1]} : vector<10x64xf32> to vector<10x32xf32>
    %891 = vector.extract_strided_slice %881 {offsets = [0, 0], sizes = [8, 8], strides = [1, 1]} : vector<8x32xf32> to vector<8x8xf32>
    %892 = arith.truncf %891 : vector<8x8xf32> to vector<8x8xbf16>
    %893 = vector.extract_strided_slice %889 {offsets = [0, 0], sizes = [10, 8], strides = [1, 1]} : vector<10x32xf32> to vector<10x8xf32>
    %894 = arith.truncf %893 : vector<10x8xf32> to vector<10x8xbf16>
    %cst_261 = arith.constant dense<0.000000e+00> : vector<8x10xf32>
    %895 = tpu.matmul %892, %894, %cst_261 {dimension_numbers = #tpu.dot_dimension_numbers<[1], [1], [0], [0], [0, 0, 1, 0], [], []>} : vector<8x8xbf16>, vector<10x8xbf16>, vector<8x10xf32> -> vector<8x10xf32>
    %cst_262 = arith.constant 0.353553385 : f32
    %896 = vector.broadcast %cst_262 : f32 to vector<8x10xf32>
    %897 = arith.mulf %895, %896 : vector<8x10xf32>
    %898 = vector.broadcast %18 : vector<1x10xf32> to vector<8x10xf32>
    %899 = arith.addf %897, %898 : vector<8x10xf32>
    %cst_263 = arith.constant dense<0xFF800000> : vector<8xf32>
    %900 = vector.multi_reduction <maximumf>, %899, %cst_263 [1] : vector<8x10xf32> to vector<8xf32>
    %901 = vector.shape_cast %900 : vector<8xf32> to vector<8x1xf32>
    %902 = vector.broadcast %901 : vector<8x1xf32> to vector<8x10xf32>
    %903 = arith.subf %899, %902 : vector<8x10xf32>
    %904 = math.exp %903 : vector<8x10xf32>
    %cst_264 = arith.constant dense<0.000000e+00> : vector<8xf32>
    %905 = vector.multi_reduction <add>, %904, %cst_264 [1] : vector<8x10xf32> to vector<8xf32>
    %906 = vector.shape_cast %905 : vector<8xf32> to vector<8x1xf32>
    %907 = tpu.reciprocal %906 {approx = true} : vector<8x1xf32> -> vector<8x1xf32>
    %908 = vector.broadcast %907 : vector<8x1xf32> to vector<8x10xf32>
    %909 = arith.mulf %904, %908 : vector<8x10xf32>
    %910 = vector.extract_strided_slice %890 {offsets = [0, 0], sizes = [10, 8], strides = [1, 1]} : vector<10x32xf32> to vector<10x8xf32>
    %911 = arith.truncf %909 : vector<8x10xf32> to vector<8x10xbf16>
    %912 = arith.truncf %910 : vector<10x8xf32> to vector<10x8xbf16>
    %cst_265 = arith.constant dense<0.000000e+00> : vector<8x8xf32>
    %913 = tpu.matmul %911, %912, %cst_265 {dimension_numbers = #tpu.dot_dimension_numbers<[1], [0], [0], [1], [0, 0, 1, 1], [], []>} : vector<8x10xbf16>, vector<10x8xbf16>, vector<8x8xf32> -> vector<8x8xf32>
    %914 = vector.extract_strided_slice %881 {offsets = [0, 8], sizes = [8, 8], strides = [1, 1]} : vector<8x32xf32> to vector<8x8xf32>
    %915 = arith.truncf %914 : vector<8x8xf32> to vector<8x8xbf16>
    %916 = vector.extract_strided_slice %889 {offsets = [0, 8], sizes = [10, 8], strides = [1, 1]} : vector<10x32xf32> to vector<10x8xf32>
    %917 = arith.truncf %916 : vector<10x8xf32> to vector<10x8xbf16>
    %cst_266 = arith.constant dense<0.000000e+00> : vector<8x10xf32>
    %918 = tpu.matmul %915, %917, %cst_266 {dimension_numbers = #tpu.dot_dimension_numbers<[1], [1], [0], [0], [0, 0, 1, 0], [], []>} : vector<8x8xbf16>, vector<10x8xbf16>, vector<8x10xf32> -> vector<8x10xf32>
    %cst_267 = arith.constant 0.353553385 : f32
    %919 = vector.broadcast %cst_267 : f32 to vector<8x10xf32>
    %920 = arith.mulf %918, %919 : vector<8x10xf32>
    %921 = vector.broadcast %18 : vector<1x10xf32> to vector<8x10xf32>
    %922 = arith.addf %920, %921 : vector<8x10xf32>
    %cst_268 = arith.constant dense<0xFF800000> : vector<8xf32>
    %923 = vector.multi_reduction <maximumf>, %922, %cst_268 [1] : vector<8x10xf32> to vector<8xf32>
    %924 = vector.shape_cast %923 : vector<8xf32> to vector<8x1xf32>
    %925 = vector.broadcast %924 : vector<8x1xf32> to vector<8x10xf32>
    %926 = arith.subf %922, %925 : vector<8x10xf32>
    %927 = math.exp %926 : vector<8x10xf32>
    %cst_269 = arith.constant dense<0.000000e+00> : vector<8xf32>
    %928 = vector.multi_reduction <add>, %927, %cst_269 [1] : vector<8x10xf32> to vector<8xf32>
    %929 = vector.shape_cast %928 : vector<8xf32> to vector<8x1xf32>
    %930 = tpu.reciprocal %929 {approx = true} : vector<8x1xf32> -> vector<8x1xf32>
    %931 = vector.broadcast %930 : vector<8x1xf32> to vector<8x10xf32>
    %932 = arith.mulf %927, %931 : vector<8x10xf32>
    %933 = vector.extract_strided_slice %890 {offsets = [0, 8], sizes = [10, 8], strides = [1, 1]} : vector<10x32xf32> to vector<10x8xf32>
    %934 = arith.truncf %932 : vector<8x10xf32> to vector<8x10xbf16>
    %935 = arith.truncf %933 : vector<10x8xf32> to vector<10x8xbf16>
    %cst_270 = arith.constant dense<0.000000e+00> : vector<8x8xf32>
    %936 = tpu.matmul %934, %935, %cst_270 {dimension_numbers = #tpu.dot_dimension_numbers<[1], [0], [0], [1], [0, 0, 1, 1], [], []>} : vector<8x10xbf16>, vector<10x8xbf16>, vector<8x8xf32> -> vector<8x8xf32>
    %937 = vector.extract_strided_slice %881 {offsets = [0, 16], sizes = [8, 8], strides = [1, 1]} : vector<8x32xf32> to vector<8x8xf32>
    %938 = arith.truncf %937 : vector<8x8xf32> to vector<8x8xbf16>
    %939 = vector.extract_strided_slice %889 {offsets = [0, 16], sizes = [10, 8], strides = [1, 1]} : vector<10x32xf32> to vector<10x8xf32>
    %940 = arith.truncf %939 : vector<10x8xf32> to vector<10x8xbf16>
    %cst_271 = arith.constant dense<0.000000e+00> : vector<8x10xf32>
    %941 = tpu.matmul %938, %940, %cst_271 {dimension_numbers = #tpu.dot_dimension_numbers<[1], [1], [0], [0], [0, 0, 1, 0], [], []>} : vector<8x8xbf16>, vector<10x8xbf16>, vector<8x10xf32> -> vector<8x10xf32>
    %cst_272 = arith.constant 0.353553385 : f32
    %942 = vector.broadcast %cst_272 : f32 to vector<8x10xf32>
    %943 = arith.mulf %941, %942 : vector<8x10xf32>
    %944 = vector.broadcast %18 : vector<1x10xf32> to vector<8x10xf32>
    %945 = arith.addf %943, %944 : vector<8x10xf32>
    %cst_273 = arith.constant dense<0xFF800000> : vector<8xf32>
    %946 = vector.multi_reduction <maximumf>, %945, %cst_273 [1] : vector<8x10xf32> to vector<8xf32>
    %947 = vector.shape_cast %946 : vector<8xf32> to vector<8x1xf32>
    %948 = vector.broadcast %947 : vector<8x1xf32> to vector<8x10xf32>
    %949 = arith.subf %945, %948 : vector<8x10xf32>
    %950 = math.exp %949 : vector<8x10xf32>
    %cst_274 = arith.constant dense<0.000000e+00> : vector<8xf32>
    %951 = vector.multi_reduction <add>, %950, %cst_274 [1] : vector<8x10xf32> to vector<8xf32>
    %952 = vector.shape_cast %951 : vector<8xf32> to vector<8x1xf32>
    %953 = tpu.reciprocal %952 {approx = true} : vector<8x1xf32> -> vector<8x1xf32>
    %954 = vector.broadcast %953 : vector<8x1xf32> to vector<8x10xf32>
    %955 = arith.mulf %950, %954 : vector<8x10xf32>
    %956 = vector.extract_strided_slice %890 {offsets = [0, 16], sizes = [10, 8], strides = [1, 1]} : vector<10x32xf32> to vector<10x8xf32>
    %957 = arith.truncf %955 : vector<8x10xf32> to vector<8x10xbf16>
    %958 = arith.truncf %956 : vector<10x8xf32> to vector<10x8xbf16>
    %cst_275 = arith.constant dense<0.000000e+00> : vector<8x8xf32>
    %959 = tpu.matmul %957, %958, %cst_275 {dimension_numbers = #tpu.dot_dimension_numbers<[1], [0], [0], [1], [0, 0, 1, 1], [], []>} : vector<8x10xbf16>, vector<10x8xbf16>, vector<8x8xf32> -> vector<8x8xf32>
    %960 = vector.extract_strided_slice %881 {offsets = [0, 24], sizes = [8, 8], strides = [1, 1]} : vector<8x32xf32> to vector<8x8xf32>
    %961 = arith.truncf %960 : vector<8x8xf32> to vector<8x8xbf16>
    %962 = vector.extract_strided_slice %889 {offsets = [0, 24], sizes = [10, 8], strides = [1, 1]} : vector<10x32xf32> to vector<10x8xf32>
    %963 = arith.truncf %962 : vector<10x8xf32> to vector<10x8xbf16>
    %cst_276 = arith.constant dense<0.000000e+00> : vector<8x10xf32>
    %964 = tpu.matmul %961, %963, %cst_276 {dimension_numbers = #tpu.dot_dimension_numbers<[1], [1], [0], [0], [0, 0, 1, 0], [], []>} : vector<8x8xbf16>, vector<10x8xbf16>, vector<8x10xf32> -> vector<8x10xf32>
    %cst_277 = arith.constant 0.353553385 : f32
    %965 = vector.broadcast %cst_277 : f32 to vector<8x10xf32>
    %966 = arith.mulf %964, %965 : vector<8x10xf32>
    %967 = vector.broadcast %18 : vector<1x10xf32> to vector<8x10xf32>
    %968 = arith.addf %966, %967 : vector<8x10xf32>
    %cst_278 = arith.constant dense<0xFF800000> : vector<8xf32>
    %969 = vector.multi_reduction <maximumf>, %968, %cst_278 [1] : vector<8x10xf32> to vector<8xf32>
    %970 = vector.shape_cast %969 : vector<8xf32> to vector<8x1xf32>
    %971 = vector.broadcast %970 : vector<8x1xf32> to vector<8x10xf32>
    %972 = arith.subf %968, %971 : vector<8x10xf32>
    %973 = math.exp %972 : vector<8x10xf32>
    %cst_279 = arith.constant dense<0.000000e+00> : vector<8xf32>
    %974 = vector.multi_reduction <add>, %973, %cst_279 [1] : vector<8x10xf32> to vector<8xf32>
    %975 = vector.shape_cast %974 : vector<8xf32> to vector<8x1xf32>
    %976 = tpu.reciprocal %975 {approx = true} : vector<8x1xf32> -> vector<8x1xf32>
    %977 = vector.broadcast %976 : vector<8x1xf32> to vector<8x10xf32>
    %978 = arith.mulf %973, %977 : vector<8x10xf32>
    %979 = vector.extract_strided_slice %890 {offsets = [0, 24], sizes = [10, 8], strides = [1, 1]} : vector<10x32xf32> to vector<10x8xf32>
    %980 = arith.truncf %978 : vector<8x10xf32> to vector<8x10xbf16>
    %981 = arith.truncf %979 : vector<10x8xf32> to vector<10x8xbf16>
    %cst_280 = arith.constant dense<0.000000e+00> : vector<8x8xf32>
    %982 = tpu.matmul %980, %981, %cst_280 {dimension_numbers = #tpu.dot_dimension_numbers<[1], [0], [0], [1], [0, 0, 1, 1], [], []>} : vector<8x10xbf16>, vector<10x8xbf16>, vector<8x8xf32> -> vector<8x8xf32>
    %983 = tpu.concatenate %913, %936, %959, %982 in 1 : vector<8x8xf32>, vector<8x8xf32>, vector<8x8xf32>, vector<8x8xf32> -> vector<8x32xf32>
    %c1160 = arith.constant 1160 : index
    %c0_281 = arith.constant 0 : index
    %984 = vector.load %arg1[%c1160, %c0_281] : memref<1360x128xf32, #tpu.memory_space<vmem>>, vector<32x32xf32>
    %985 = arith.truncf %983 : vector<8x32xf32> to vector<8x32xbf16>
    %986 = arith.truncf %984 : vector<32x32xf32> to vector<32x32xbf16>
    %cst_282 = arith.constant dense<0.000000e+00> : vector<8x32xf32>
    %987 = tpu.matmul %985, %986, %cst_282 {dimension_numbers = #tpu.dot_dimension_numbers<[1], [0], [0], [1], [0, 0, 1, 1], [], []>} : vector<8x32xbf16>, vector<32x32xbf16>, vector<8x32xf32> -> vector<8x32xf32>
    %c1192 = arith.constant 1192 : index
    %c0_283 = arith.constant 0 : index
    %988 = vector.load %arg1[%c1192, %c0_283] : memref<1360x128xf32, #tpu.memory_space<vmem>>, vector<1x32xf32>
    %989 = vector.broadcast %988 : vector<1x32xf32> to vector<8x32xf32>
    %990 = arith.addf %987, %989 : vector<8x32xf32>
    %991 = arith.addf %872, %990 : vector<8x32xf32>
    %cst_284 = arith.constant dense<0.000000e+00> : vector<8xf32>
    %992 = vector.multi_reduction <add>, %991, %cst_284 [1] : vector<8x32xf32> to vector<8xf32>
    %993 = vector.shape_cast %992 : vector<8xf32> to vector<8x1xf32>
    %cst_285 = arith.constant 3.200000e+01 : f32
    %994 = vector.broadcast %cst_285 : f32 to vector<8x1xf32>
    %995 = arith.divf %993, %994 : vector<8x1xf32>
    %996 = vector.broadcast %995 : vector<8x1xf32> to vector<8x32xf32>
    %997 = arith.subf %991, %996 : vector<8x32xf32>
    %998 = arith.mulf %997, %997 : vector<8x32xf32>
    %cst_286 = arith.constant dense<0.000000e+00> : vector<8xf32>
    %999 = vector.multi_reduction <add>, %998, %cst_286 [1] : vector<8x32xf32> to vector<8xf32>
    %1000 = vector.shape_cast %999 : vector<8xf32> to vector<8x1xf32>
    %cst_287 = arith.constant 3.200000e+01 : f32
    %1001 = vector.broadcast %cst_287 : f32 to vector<8x1xf32>
    %1002 = arith.divf %1000, %1001 : vector<8x1xf32>
    %cst_288 = arith.constant 9.99999974E-6 : f32
    %1003 = vector.broadcast %cst_288 : f32 to vector<8x1xf32>
    %1004 = arith.addf %1002, %1003 : vector<8x1xf32>
    %1005 = math.rsqrt %1004 : vector<8x1xf32>
    %1006 = vector.broadcast %1005 : vector<8x1xf32> to vector<8x32xf32>
    %1007 = arith.mulf %997, %1006 : vector<8x32xf32>
    %c1216 = arith.constant 1216 : index
    %c0_289 = arith.constant 0 : index
    %1008 = vector.load %arg1[%c1216, %c0_289] : memref<1360x128xf32, #tpu.memory_space<vmem>>, vector<1x32xf32>
    %1009 = vector.broadcast %1008 : vector<1x32xf32> to vector<8x32xf32>
    %1010 = arith.mulf %1007, %1009 : vector<8x32xf32>
    %c1224 = arith.constant 1224 : index
    %c0_290 = arith.constant 0 : index
    %1011 = vector.load %arg1[%c1224, %c0_290] : memref<1360x128xf32, #tpu.memory_space<vmem>>, vector<1x32xf32>
    %1012 = vector.broadcast %1011 : vector<1x32xf32> to vector<8x32xf32>
    %1013 = arith.addf %1010, %1012 : vector<8x32xf32>
    %c1232 = arith.constant 1232 : index
    %c0_291 = arith.constant 0 : index
    %1014 = vector.load %arg1[%c1232, %c0_291] : memref<1360x128xf32, #tpu.memory_space<vmem>>, vector<32x64xf32>
    %1015 = arith.truncf %1013 : vector<8x32xf32> to vector<8x32xbf16>
    %1016 = arith.truncf %1014 : vector<32x64xf32> to vector<32x64xbf16>
    %cst_292 = arith.constant dense<0.000000e+00> : vector<8x64xf32>
    %1017 = tpu.matmul %1015, %1016, %cst_292 {dimension_numbers = #tpu.dot_dimension_numbers<[1], [0], [0], [1], [0, 0, 1, 1], [], []>} : vector<8x32xbf16>, vector<32x64xbf16>, vector<8x64xf32> -> vector<8x64xf32>
    %c1264 = arith.constant 1264 : index
    %c0_293 = arith.constant 0 : index
    %1018 = vector.load %arg1[%c1264, %c0_293] : memref<1360x128xf32, #tpu.memory_space<vmem>>, vector<1x64xf32>
    %1019 = vector.broadcast %1018 : vector<1x64xf32> to vector<8x64xf32>
    %1020 = arith.addf %1017, %1019 : vector<8x64xf32>
    %cst_294 = arith.constant 0.000000e+00 : f32
    %1021 = vector.broadcast %cst_294 : f32 to vector<8x64xf32>
    %1022 = arith.maximumf %1020, %1021 : vector<8x64xf32>
    %c1272 = arith.constant 1272 : index
    %c0_295 = arith.constant 0 : index
    %1023 = vector.load %arg1[%c1272, %c0_295] : memref<1360x128xf32, #tpu.memory_space<vmem>>, vector<64x32xf32>
    %1024 = arith.truncf %1022 : vector<8x64xf32> to vector<8x64xbf16>
    %1025 = arith.truncf %1023 : vector<64x32xf32> to vector<64x32xbf16>
    %cst_296 = arith.constant dense<0.000000e+00> : vector<8x32xf32>
    %1026 = tpu.matmul %1024, %1025, %cst_296 {dimension_numbers = #tpu.dot_dimension_numbers<[1], [0], [0], [1], [0, 0, 1, 1], [], []>} : vector<8x64xbf16>, vector<64x32xbf16>, vector<8x32xf32> -> vector<8x32xf32>
    %c1336 = arith.constant 1336 : index
    %c0_297 = arith.constant 0 : index
    %1027 = vector.load %arg1[%c1336, %c0_297] : memref<1360x128xf32, #tpu.memory_space<vmem>>, vector<1x32xf32>
    %1028 = vector.broadcast %1027 : vector<1x32xf32> to vector<8x32xf32>
    %1029 = arith.addf %1026, %1028 : vector<8x32xf32>
    %1030 = arith.addf %1013, %1029 : vector<8x32xf32>
    %cst_298 = arith.constant dense<0.000000e+00> : vector<8xf32>
    %1031 = vector.multi_reduction <add>, %1030, %cst_298 [1] : vector<8x32xf32> to vector<8xf32>
    %1032 = vector.shape_cast %1031 : vector<8xf32> to vector<8x1xf32>
    %cst_299 = arith.constant 3.200000e+01 : f32
    %1033 = vector.broadcast %cst_299 : f32 to vector<8x1xf32>
    %1034 = arith.divf %1032, %1033 : vector<8x1xf32>
    %1035 = vector.broadcast %1034 : vector<8x1xf32> to vector<8x32xf32>
    %1036 = arith.subf %1030, %1035 : vector<8x32xf32>
    %1037 = arith.mulf %1036, %1036 : vector<8x32xf32>
    %cst_300 = arith.constant dense<0.000000e+00> : vector<8xf32>
    %1038 = vector.multi_reduction <add>, %1037, %cst_300 [1] : vector<8x32xf32> to vector<8xf32>
    %1039 = vector.shape_cast %1038 : vector<8xf32> to vector<8x1xf32>
    %cst_301 = arith.constant 3.200000e+01 : f32
    %1040 = vector.broadcast %cst_301 : f32 to vector<8x1xf32>
    %1041 = arith.divf %1039, %1040 : vector<8x1xf32>
    %cst_302 = arith.constant 9.99999974E-6 : f32
    %1042 = vector.broadcast %cst_302 : f32 to vector<8x1xf32>
    %1043 = arith.addf %1041, %1042 : vector<8x1xf32>
    %1044 = math.rsqrt %1043 : vector<8x1xf32>
    %1045 = vector.broadcast %1044 : vector<8x1xf32> to vector<8x32xf32>
    %1046 = arith.mulf %1036, %1045 : vector<8x32xf32>
    %c1344 = arith.constant 1344 : index
    %c0_303 = arith.constant 0 : index
    %1047 = vector.load %arg1[%c1344, %c0_303] : memref<1360x128xf32, #tpu.memory_space<vmem>>, vector<1x32xf32>
    %1048 = vector.broadcast %1047 : vector<1x32xf32> to vector<8x32xf32>
    %1049 = arith.mulf %1046, %1048 : vector<8x32xf32>
    %c1352 = arith.constant 1352 : index
    %c0_304 = arith.constant 0 : index
    %1050 = vector.load %arg1[%c1352, %c0_304] : memref<1360x128xf32, #tpu.memory_space<vmem>>, vector<1x32xf32>
    %1051 = vector.broadcast %1050 : vector<1x32xf32> to vector<8x32xf32>
    %1052 = arith.addf %1049, %1051 : vector<8x32xf32>
    %cst_305 = arith.constant dense<0.000000e+00> : vector<8xf32>
    %1053 = vector.multi_reduction <add>, %1052, %cst_305 [1] : vector<8x32xf32> to vector<8xf32>
    %1054 = vector.shape_cast %1053 : vector<8xf32> to vector<8x1xf32>
    %cst_306 = arith.constant 3.200000e+01 : f32
    %1055 = vector.broadcast %cst_306 : f32 to vector<8x1xf32>
    %1056 = arith.divf %1054, %1055 : vector<8x1xf32>
    %1057 = vector.broadcast %1056 : vector<8x1xf32> to vector<8x32xf32>
    %1058 = arith.subf %1052, %1057 : vector<8x32xf32>
    %1059 = arith.mulf %1058, %1058 : vector<8x32xf32>
    %cst_307 = arith.constant dense<0.000000e+00> : vector<8xf32>
    %1060 = vector.multi_reduction <add>, %1059, %cst_307 [1] : vector<8x32xf32> to vector<8xf32>
    %1061 = vector.shape_cast %1060 : vector<8xf32> to vector<8x1xf32>
    %cst_308 = arith.constant 3.200000e+01 : f32
    %1062 = vector.broadcast %cst_308 : f32 to vector<8x1xf32>
    %1063 = arith.divf %1061, %1062 : vector<8x1xf32>
    %cst_309 = arith.constant 9.99999974E-6 : f32
    %1064 = vector.broadcast %cst_309 : f32 to vector<8x1xf32>
    %1065 = arith.addf %1063, %1064 : vector<8x1xf32>
    %1066 = math.rsqrt %1065 : vector<8x1xf32>
    %1067 = vector.broadcast %1066 : vector<8x1xf32> to vector<8x32xf32>
    %1068 = arith.mulf %1058, %1067 : vector<8x32xf32>
    %c256 = arith.constant 256 : index
    %c0_310 = arith.constant 0 : index
    %1069 = vector.load %arg1[%c256, %c0_310] : memref<1360x128xf32, #tpu.memory_space<vmem>>, vector<1x32xf32>
    %1070 = vector.broadcast %1069 : vector<1x32xf32> to vector<8x32xf32>
    %1071 = arith.mulf %1068, %1070 : vector<8x32xf32>
    %c264 = arith.constant 264 : index
    %c0_311 = arith.constant 0 : index
    %1072 = vector.load %arg1[%c264, %c0_311] : memref<1360x128xf32, #tpu.memory_space<vmem>>, vector<1x32xf32>
    %1073 = vector.broadcast %1072 : vector<1x32xf32> to vector<8x32xf32>
    %1074 = arith.addf %1071, %1073 : vector<8x32xf32>
    %1075 = tpu.iota {dimensions = array<i32: 1>} : vector<8x10xi32>
    %1076 = vector.broadcast %13 : vector<8x1xi32> to vector<8x10xi32>
    %1077 = arith.cmpi eq, %1076, %1075 : vector<8x10xi32>
    %1078 = arith.extui %1077 : vector<8x10xi1> to vector<8x10xi32>
    %1079 = arith.sitofp %1078 : vector<8x10xi32> to vector<8x10xf32>
    %cst_312 = arith.constant dense<0.000000e+00> : vector<8x32xf32>
    %1080 = tpu.matmul %1079, %393, %cst_312 {dimension_numbers = #tpu.dot_dimension_numbers<[1], [0], [0], [1], [0, 0, 1, 1], [], []>} : vector<8x10xf32>, vector<10x32xf32>, vector<8x32xf32> -> vector<8x32xf32>
    %1081 = vector.broadcast %16 : vector<8x1xi32> to vector<8x10xi32>
    %1082 = arith.cmpi eq, %1081, %1075 : vector<8x10xi32>
    %1083 = arith.extui %1082 : vector<8x10xi1> to vector<8x10xi32>
    %1084 = arith.sitofp %1083 : vector<8x10xi32> to vector<8x10xf32>
    %cst_313 = arith.constant dense<0.000000e+00> : vector<8x32xf32>
    %1085 = tpu.matmul %1084, %393, %cst_313 {dimension_numbers = #tpu.dot_dimension_numbers<[1], [0], [0], [1], [0, 0, 1, 1], [], []>} : vector<8x10xf32>, vector<10x32xf32>, vector<8x32xf32> -> vector<8x32xf32>
    %c88 = arith.constant 88 : index
    %c0_314 = arith.constant 0 : index
    %1086 = vector.load %arg1[%c88, %c0_314] : memref<1360x128xf32, #tpu.memory_space<vmem>>, vector<32x32xf32>
    %1087 = arith.truncf %1080 : vector<8x32xf32> to vector<8x32xbf16>
    %1088 = arith.truncf %1086 : vector<32x32xf32> to vector<32x32xbf16>
    %cst_315 = arith.constant dense<0.000000e+00> : vector<8x32xf32>
    %1089 = tpu.matmul %1087, %1088, %cst_315 {dimension_numbers = #tpu.dot_dimension_numbers<[1], [0], [0], [1], [0, 0, 1, 1], [], []>} : vector<8x32xbf16>, vector<32x32xbf16>, vector<8x32xf32> -> vector<8x32xf32>
    %c120 = arith.constant 120 : index
    %c0_316 = arith.constant 0 : index
    %1090 = vector.load %arg1[%c120, %c0_316] : memref<1360x128xf32, #tpu.memory_space<vmem>>, vector<32x32xf32>
    %1091 = arith.truncf %1085 : vector<8x32xf32> to vector<8x32xbf16>
    %1092 = arith.truncf %1090 : vector<32x32xf32> to vector<32x32xbf16>
    %cst_317 = arith.constant dense<0.000000e+00> : vector<8x32xf32>
    %1093 = tpu.matmul %1091, %1092, %cst_317 {dimension_numbers = #tpu.dot_dimension_numbers<[1], [0], [0], [1], [0, 0, 1, 1], [], []>} : vector<8x32xbf16>, vector<32x32xbf16>, vector<8x32xf32> -> vector<8x32xf32>
    %1094 = arith.addf %1089, %1093 : vector<8x32xf32>
    %c152 = arith.constant 152 : index
    %c0_318 = arith.constant 0 : index
    %1095 = vector.load %arg1[%c152, %c0_318] : memref<1360x128xf32, #tpu.memory_space<vmem>>, vector<32x32xf32>
    %1096 = arith.truncf %1074 : vector<8x32xf32> to vector<8x32xbf16>
    %1097 = arith.truncf %1095 : vector<32x32xf32> to vector<32x32xbf16>
    %cst_319 = arith.constant dense<0.000000e+00> : vector<8x32xf32>
    %1098 = tpu.matmul %1096, %1097, %cst_319 {dimension_numbers = #tpu.dot_dimension_numbers<[1], [0], [0], [1], [0, 0, 1, 1], [], []>} : vector<8x32xbf16>, vector<32x32xbf16>, vector<8x32xf32> -> vector<8x32xf32>
    %1099 = arith.addf %1094, %1098 : vector<8x32xf32>
    %c184 = arith.constant 184 : index
    %c0_320 = arith.constant 0 : index
    %1100 = vector.load %arg1[%c184, %c0_320] : memref<1360x128xf32, #tpu.memory_space<vmem>>, vector<8x32xf32>
    %1101 = arith.truncf %7 : vector<8x8xf32> to vector<8x8xbf16>
    %1102 = arith.truncf %1100 : vector<8x32xf32> to vector<8x32xbf16>
    %cst_321 = arith.constant dense<0.000000e+00> : vector<8x32xf32>
    %1103 = tpu.matmul %1101, %1102, %cst_321 {dimension_numbers = #tpu.dot_dimension_numbers<[1], [0], [0], [1], [0, 0, 1, 1], [], []>} : vector<8x8xbf16>, vector<8x32xbf16>, vector<8x32xf32> -> vector<8x32xf32>
    %1104 = arith.addf %1099, %1103 : vector<8x32xf32>
    %c192 = arith.constant 192 : index
    %c0_322 = arith.constant 0 : index
    %1105 = vector.load %arg1[%c192, %c0_322] : memref<1360x128xf32, #tpu.memory_space<vmem>>, vector<1x32xf32>
    %1106 = vector.broadcast %1105 : vector<1x32xf32> to vector<8x32xf32>
    %1107 = arith.addf %1104, %1106 : vector<8x32xf32>
    %cst_323 = arith.constant 0.000000e+00 : f32
    %1108 = vector.broadcast %cst_323 : f32 to vector<8x32xf32>
    %1109 = arith.maximumf %1107, %1108 : vector<8x32xf32>
    %c200 = arith.constant 200 : index
    %c0_324 = arith.constant 0 : index
    %1110 = vector.load %arg1[%c200, %c0_324] : memref<1360x128xf32, #tpu.memory_space<vmem>>, vector<32x128xf32>
    %1111 = arith.truncf %1109 : vector<8x32xf32> to vector<8x32xbf16>
    %1112 = arith.truncf %1110 : vector<32x128xf32> to vector<32x128xbf16>
    %cst_325 = arith.constant dense<0.000000e+00> : vector<8x128xf32>
    %1113 = tpu.matmul %1111, %1112, %cst_325 {dimension_numbers = #tpu.dot_dimension_numbers<[1], [0], [0], [1], [0, 0, 1, 1], [], []>} : vector<8x32xbf16>, vector<32x128xbf16>, vector<8x128xf32> -> vector<8x128xf32>
    %c232 = arith.constant 232 : index
    %c0_326 = arith.constant 0 : index
    %1114 = vector.load %arg1[%c232, %c0_326] : memref<1360x128xf32, #tpu.memory_space<vmem>>, vector<1x128xf32>
    %1115 = vector.broadcast %1114 : vector<1x128xf32> to vector<8x128xf32>
    %1116 = arith.addf %1113, %1115 : vector<8x128xf32>
    %c0_327 = arith.constant 0 : index
    %c0_328 = arith.constant 0 : index
    %c0_329 = arith.constant 0 : index
    %1117 = vector.load %arg3[%c0_327, %c0_328, %c0_329] : memref<1x8x128xf32, #tpu.memory_space<vmem>>, vector<1x8x128xf32>
    %1118 = vector.shape_cast %1117 : vector<1x8x128xf32> to vector<8x128xf32>
    %1119 = vector.shape_cast %1116 : vector<8x128xf32> to vector<1x8x128xf32>
    tpu.vector_store %arg3[%c0_327, %c0_328, %c0_329], %1119 {strides = array<i32>} : memref<1x8x128xf32, #tpu.memory_space<vmem>>, vector<1x8x128xf32>,
    return
  }
  func.func @transform_0(%arg0: i32) -> (i32, i32) {
    %c0_i32 = arith.constant 0 : i32
    %c0_i32_0 = arith.constant 0 : i32
    %c0_i32_1 = arith.constant 0 : i32
    return %c0_i32, %c0_i32_0 : i32, i32
  }
  func.func @transform_1(%arg0: i32) -> (i32, i32, i32) {
    %c0_i32 = arith.constant 0 : i32
    %c0_i32_0 = arith.constant 0 : i32
    %c0_i32_1 = arith.constant 0 : i32
    return %arg0, %c0_i32, %c0_i32_0 : i32, i32, i32
  }
  func.func @transform_2(%arg0: i32) -> (i32, i32, i32) {
    %c0_i32 = arith.constant 0 : i32
    %c0_i32_0 = arith.constant 0 : i32
    %c0_i32_1 = arith.constant 0 : i32
    return %arg0, %c0_i32, %c0_i32_0 : i32, i32, i32
  }
}

</mosaic_0001>

<bundles_post_ra>
// kernel: tpu_custom_call.1
= control target key start
LH: loop header
LB: loop body
LE: loop exit
PB: predicated region body
PF: predicated region fallthrough
CT: control target
= control target key end

     0   :  { %7 = vsyncpa [#allocation3], 0  ;;  %s8053_s0 = inlined_call_operand.hbm [shape: f32[1360,128], index: 0, kind: input, shape index: {}]   ;;  %s8054_s1 = inlined_call_operand.hbm [shape: f32[2,80,128], index: 1, kind: input, shape index: {}]   ;;  %s8055_s2 = inlined_call_operand.hbm [shape: f32[2,8,128], index: 2, kind: output, shape index: {}]  }
   0x1   :  { %8 = vsyncpa [#allocation6], 0 }
   0x2   :  { %10 = vsyncpa [#allocation6 + $0x1], 0 }
   0x3   :  { %11 = vsyncpa [#allocation4], 0 }
   0x4   :  { %13 = vsyncpa [#allocation4 + $0x1], 0  ;;  %s7014_s9 = smov 0   ;;  %s7016_s10 = smov 0  }
   0x5   :  { %s7018_s11 = smov 0   ;;  %s7020_s12 = smov 0  }
   0x6 LB: > { %s7035_s13 = sadd.s32 4294967295, %s6974_s12   ;;  %s5647_s14 = sadd.s32 4294967294, %s6974_s12   ;;  %s6974_s12 = sphi %s7020_s12, %s8077_s12   ;;  %s6970_s11 = sphi %s7018_s11, %s8076_s11   ;;  %s6966_s10 = sphi %s7016_s10, %s8075_s10   ;;  %s6962_s9 = sphi %s7014_s9, %s8074_s9  }
   0x7   : > { %p60_p0 = scmp.ne.s32.totalorder %s6966_s10, %s6962_s9  ;;  %p8056_p1 = scmp.eq.s32.totalorder %s7035_s13, 0 }
   0x8   : > { %p90_p3 = scmp.eq.s32.totalorder %s5647_s14, 1  ;;  %p5648_p5 = scmp.ge.s32.totalorder %s6974_s12, 1 }
   0x9   : > { %p7044_p4 = por %p8056_p1, %p60_p0  ;;  %p97_p7 = scmp.lt.s32.totalorder %s6974_s12, 3 }
   0xa   : > { %p7049_p6 = por %p90_p3, %p60_p0  ;;  %s6976_s18 = smov [#allocation2]  }
   0xb   : > { %s8060_s15 = scalar_select %p7044_p4, 1, 0 }
   0xc   : > { %s8061_s16 = scalar_select %p7049_p6, 1, 0 }
   0xd   : > { %p7054_p8 = pnand %p5648_p5, %p97_p7  ;;  %s109_s19 = sshll.u32 %s6976_s18, 4  ;;  %s110_s19 = int_to_ptr.vmem [resolvable:$true] %s109_s19 }
   0xe   : > { %s7068_s21 = sadd.s32 1, %s6974_s12   ;;  %s47_s22 = sadd.s32 1, %s6970_s11 }
   0xf   : > { %s8062_s17 = scalar_select %p7054_p8, 1, 0 }
  0x10   : > { %p6587_p9 = pneg %p7054_p8  ;;  %s44_s23 = ssub.s32 %s6974_s12, %s7068_s21 }
  0x11   : > { %s6863_s24 = scalar_lea.vmem %s110_s19, 21760  ;;  %p6871_p5 = scmp.lt.s32.totalorder %s110_s19, %s110_s19 }
  0x12   : > { %p7063_p11 = pnand %p6587_p9, %p8056_p1  ;;  %p6864_p13 = scmp.ne.s32.totalorder %s110_s19, %s6863_s24 }
  0x13   : > { %p6872_p7 = scmp.lt.s32.totalorder %s6863_s24, %s6863_s24 }
  0x14   : > { %p6854_p12 = pneg %p7063_p11 }
  0x15   : > { %p6873_p10 = por %p6872_p7, %p6871_p5 }
  0x16   : > { %p6866_p0 = pnand %p6864_p13, %p6854_p12 }
  0x18   : > { %p6867_p3 = pneg %p6866_p0 }
  0x1a   : > { %p6874_p2 = pnand %p6873_p10, %p6867_p3 }
  0x1c   : > { %6877 = shalt.err (!%p6874_p2)
}
  0x1d   : > { %s6977_s25 = smov 128   ;;  %s6978_s26 = smov 8  }
  0x1e   : > { %6590 = dma.hbm_to_vmem [thread:$0]  (!%p7063_p11), %s8053_s0, 21760, %s110_s19, [#allocation3], %s6977_s25, %s6977_s25, %s6978_s26  }
  0x1f   : > { %p45_p2 = scmp.eq.s32.totalorder %s44_s23, 0  ;;  %p54_p9 = scmp.ne.s32.totalorder %s6970_s11, %s6966_s10 }
  0x20   : > { %p55_p10 = scmp.eq.s32.totalorder %s6974_s12, 0  ;;  %p6600_p12 = scmp.lt.s32.totalorder %s6974_s12, 2 }
  0x21   : > { %s7088_s29 = scalar_select %p45_p2, %s6970_s11, %s47_s22  }
  0x22   : > { %p56_p13 = por %p55_p10, %p54_p9  ;;  %p8064_p0 = scmp.eq.s32.totalorder %s7035_s13, 1 }
  0x23   : > { %s123_s3 = sand.u32 1, %s6970_s11   ;;  %s6571_s4 = smul.u32 1280, %s6974_s12 }
  0x24   : > { %p7092_p3 = por %p8064_p0, %p54_p9  ;;  %s6570_s5 = smul.u32 80, %s123_s3 }
  0x25   : > { %p7098_p5 = pnand %p6600_p12, %p56_p13  ;;  %s7105_s14 = scalar_lea.hbm %s8054_s1, %s6571_s4 }
  0x26   : > { %s8065_s30 = scalar_select %p7092_p3, 1, 0 }
  0x27   : > { %s127_s18 = scalar_lea.vmem [#allocation5], %s6570_s5  ;;  %s7109_s20 = scalar_lea.sflag [#allocation6], %s123_s3 }
  0x28   : > { %s134_s19 = sshll.u32 %s127_s18, 4  ;;  %s6878_s22 = scalar_lea.hbm %s7105_s14, 1280  ;;  %s7107_s19 = int_to_ptr.vmem [resolvable:$true] %s134_s19 }
  0x29   : > { %p6879_p11 = scmp.ne.s32.totalorder %s7105_s14, %s6878_s22  ;;  %p6880_p7 = pneg %p7098_p5 }
  0x2a   : > { %s6883_s27 = scalar_lea.hbm %s8054_s1, 2560  ;;  %p6884_p10 = scmp.lt.s32.totalorder %s7105_s14, %s8054_s1 }
  0x2b   : > { %p6881_p2 = pnand %p6880_p7, %p6879_p11  ;;  %p6885_p12 = scmp.lt.s32.totalorder %s6883_s27, %s6878_s22 }
  0x2d   : > { %p6882_p9 = pneg %p6881_p2  ;;  %p6886_p13 = por %p6885_p12, %p6884_p10 }
  0x2f   : > { %p6887_p0 = pnand %p6886_p13, %p6882_p9 }
  0x31   : > { %6890 = shalt.err (!%p6887_p0)
}
  0x32   : > { %s6891_s3 = scalar_lea.vmem %s7107_s19, 1280  ;;  %s6979_s5 = smov [#allocation5]  }
  0x33   : > { %p6892_p1 = scmp.ne.s32.totalorder %s7107_s19, %s6891_s3  ;;  %s6896_s7 = sshll.u32 %s6979_s5, 4  ;;  %s6897_s7 = int_to_ptr.vmem [resolvable:$false] %s6896_s7 }
  0x34   : > { %s6898_s8 = scalar_lea.vmem %s6897_s7, 2560  ;;  %p6899_p2 = scmp.lt.s32.totalorder %s7107_s19, %s6897_s7 }
  0x35   : > { %p6894_p6 = pnand %p6892_p1, %p6880_p7  ;;  %p6900_p3 = scmp.lt.s32.totalorder %s6898_s8, %s6891_s3 }
  0x37   : > { %p6895_p11 = pneg %p6894_p6  ;;  %p6901_p4 = por %p6900_p3, %p6899_p2 }
  0x39   : > { %p6902_p8 = pnand %p6901_p4, %p6895_p11 }
  0x3b   : > { %6905 = shalt.err (!%p6902_p8)
}
  0x3c   : > { %6594 = dma.hbm_to_vmem [thread:$0]  (!%p7098_p5), %s7105_s14, 1280, %s7107_s19, %s7109_s20, %s6977_s25, %s6977_s25, %s6978_s26  }
  0x3d   : > { %p8067_p1 = scmp.ne.s32.totalorder %s8062_s17, 0 }
  0x3e   : > { %p8068_p6 = scmp.eq.s32.totalorder (!%p8067_p1), %s7035_s13, 0 }
  0x3f   : > { %146 = sbr.rel (%p8067_p1) target bundleno = 13994 (0x36aa), region = 28 }
  0x44   : > { %6949 = dma.done.wait (%p8068_p6), [#allocation3], 21760   ;;  %p8069_p7 = pmov %p8068_p6 }
  0x45   : > { %s7140_s18 = sand.u32 1, %s6966_s10   ;;  %p8070_p4 = scmp.ne.s32.totalorder %s8060_s15, 0 }
  0x46   : > { %6951 = vsyncadd (%p8069_p7), [#allocation3], 4294945536  ;;  %s6572_s6 = smul.u32 80, %s7140_s18  ;;  %s153_s22 = scalar_lea.sflag [#allocation6], %s7140_s18 }
  0x48   : > { %s7144_s23 = scalar_lea.vmem [#allocation5], %s6572_s6 }
  0x49   : > { %6953 = dma.done.wait (%p8070_p4), %s153_s22, 1280  }
  0x4a   : > { %6955 = vsyncadd (%p8070_p4), %s153_s22, 4294966016  ;;  %v6980_v0 = vmov 0.0   ;;  %vm6981_vm0 = vmmov 0   ;;  %v191_v1 = vld [vmem:[#allocation2] sm:$0xff]  ;;  %vm203_vm1 = vcmask 1043456   ;;  %vm199_vm2 = vcmask 64512  }
  0x4b   : > { %6001 = vmatprep.subr.bf16.mxu0 %v6980_v0  ;;  %6003 = vmatprep.mubr.msk.bf16.mxu0 %vm6981_vm0, %v6980_v0  ;;  %v178_v2 = vld [vmem:[%s7144_s23] sm:$0xff]  ;;  %v179_v3 = vld [vmem:[%s7144_s23 + $0x8] sm:$0x3]  ;;  %v193_v4 = vpack.c.bf16 %v191_v1, %v191_v1  ;;  %vm260_vm3 = vcmask 261120   ;;  %s6982_s15 = smov 120   ;;  %s6983_s17 = smov 96  }
  0x4c   : > { %6007 = vmatprep.subr.bf16.mxu1 %v6980_v0  ;;  %6011 = vmatprep.mubr.msk.bf16.mxu1 %vm6981_vm0, %v6980_v0  ;;  %v192_v6 = vpack.c.bf16 %v179_v3, %v178_v2  ;;  %v250_v7 = vld [vmem:[#allocation2 + $0x120] sm:$0xff]  ;;  %v251_v8 = vld [vmem:[#allocation2 + $0x128] sm:$0xff]  ;;  %v248_v10 = vld [vmem:[#allocation2 + $0x110] sm:$0xff]  ;;  %s6984_s25 = smov 80   ;;  %s6985_s26 = smov 88   ;;  %vm364_vm4 = vcmask 80896  }
  0x4d   : > { %v205_v5 = vsel %vm203_vm1, %v193_v4, 0  ;;  %v255_v9 = vpack.c.bf16 %v251_v8, %v250_v7  ;;  %v249_v11 = vld [vmem:[#allocation2 + $0x118] sm:$0xff]  ;;  %v5655_v14 = vld [vmem:[#allocation2 + $0x8] ss:$0 sm:$0xff]  ;;  %v5657_v22 = vld [vmem:[#allocation2 + $0x130] ss:$0 sm:$0xff] }
  0x4e   : > { %6002 = vmatpush3.bf16.msra.mxu0 %v205_v5  ;;  %v254_v12 = vpack.c.bf16 %v249_v11, %v248_v10  ;;  %s6986_s14 = smov 72   ;;  %s6987_s19 = smov 112   ;;  %v7212_v41 = vld [vmem:[%s7144_s23 + $0x40] ss:$0 sm:$0xff]  ;;  %vm368_vm5 = vcmask 74752   ;;  %vm394_vm6 = vcmask 1044480  }
  0x4f   : > { %6015 = vmatprep.subr.bf16.mxu0 %v6980_v0  ;;  %6008 = vmatpush3.bf16.msra.mxu1 %v255_v9  ;;  %s6988_s20 = smov 104   ;;  %s6989_s24 = smov 56   ;;  %vm846_vm7 = vcmask 130048   ;;  %vm849_vm8 = vcmask 195584   ;;  %vm913_vm9 = vcmask 254976   ;;  %vm1028_vm10 = vcmask 523264  }
  0x50   : > { %6009 = vmatprep.subr.bf16.mxu1 %v6980_v0  ;;  %s6990_s27 = smov 64   ;;  %s6991_s28 = smov 48   ;;  %vm5134_vm13 = vcmask 1041408  }
  0x51   : > { %6004 = vmatmul.mubr.msk.bf16.vlgmr.msra.gmra.mxu0 %vm199_vm2, %v192_v6  ;;  %s6992_s4 = smov 40   ;;  %s6993_s3 = smov 8  }
  0x52   : > { %6017 = vmatprep.mubr.msk.bf16.mxu0 %vm6981_vm0, %v6980_v0  ;;  %s6994_s5 = smov 16   ;;  %s6995_s7 = smov 24  }
  0x53   : > { %6010 = vmatpush3.bf16.msra.mxu1 %v254_v12  ;;  %s5654_s8 = sshll.u32 %s7140_s18, 3  ;;  %s5795_s6 = sshll.u32 %s7035_s13, 7 }
  0x54   : > { %6021 = vmatprep.subr.bf16.mxu1 %v6980_v0  ;;  %s176_s22 = scalar_lea.vmem [#allocation7], %s5654_s8  ;;  %p8071_p3 = scmp.ne.s32.totalorder %s8065_s30, 0 }
  0x55   : > { %s6998_s13 = smov [#allocation7]  }
 0x111   : > { %v241_v13 = vpop.f32.mrf.mxu0 }
 0x112   : > { %v7165_v17 = vadd.f32 %v5655_v14, %v241_v13 }
 0x113   : > { %v6005_v15 = vpop.f32.mrf.mxu0 }
 0x115   : > { %v244_v16 = vpop.f32.mrf.mxu0 }
 0x116   : > { %v7167_v18 = vadd.f32 %v5655_v14, %v244_v16 }
 0x117   : > { %v6006_v19 = vpop.f32.mrf.mxu0 }
 0x118   : > { %v253_v20 = vpack.c.bf16 %v7167_v18, %v7165_v17 }
 0x11a   : > { %6012 = vmatmul.mubr.msk.bf16.vlgmr.msra.gmra.mxu1 %vm260_vm3, %v253_v20 }
 0x11b   : > { %6023 = vmatprep.mubr.msk.bf16.mxu1 %vm6981_vm0, %v6980_v0 }
 0x1da   : > { %v298_v21 = vpop.f32.mrf.mxu1 }
 0x1db   : > { %v299_v25 = vadd.f32 %v5657_v22, %v298_v21 }
 0x1dc   : > { %v6013_v23 = vpop.f32.mrf.mxu1 }
 0x1de   : > { %v301_v24 = vpop.f32.mrf.mxu1 }
 0x1df   : > { %v302_v26 = vadd.f32 %v5657_v22, %v301_v24 }
 0x1e0   : > { %v6014_v27 = vpop.f32.mrf.mxu1 }
 0x1e1   : > { %v7174_v28 = vpack.c.bf16 %v302_v26, %v299_v25 }
 0x1e3   : > { %439 = vrot.lane.b32.xlu1 %v7174_v28, %s6982_s15  ;;  %307 = vrot.lane.b32.xlu0 %v7174_v28, %s6983_s17 }
 0x1e7   : > { %568 = vrot.lane.b32.xlu1 %v7174_v28, %s6984_s25  ;;  %441 = vrot.lane.b32.xlu0 %v7174_v28, %s6985_s26 }
 0x1eb   : > { %695 = vrot.lane.b32.xlu1 %v7174_v28, %s6986_s14  ;;  %566 = vrot.lane.b32.xlu0 %v7174_v28, %s6987_s19 }
 0x1ef   : > { %693 = vrot.lane.b32.xlu0 %v7174_v28, %s6988_s20 }
 0x255   : > { %v308_v29 = vpop.permute.xlu0 %307  ;;  %v440_v32 = vpop.permute.xlu1 %439 }
 0x256   : > { %v313_v30 = vsel %vm199_vm2, %v308_v29, 0 }
 0x257   : > { %6016 = vmatpush3.bf16.xpose.msra.mxu0 %v313_v30 }
 0x258   : > { %6027 = vmatprep.subr.bf16.mxu0 %v6980_v0 }
 0x259   : > { %v442_v31 = vpop.permute.xlu0 %441  ;;  %v569_v34 = vpop.permute.xlu1 %568 }
 0x25a   : > { %v447_v33 = vsel %vm199_vm2, %v442_v31, 0  ;;  %v574_v35 = vsel %vm199_vm2, %v569_v34, 0 }
 0x25d   : > { %v696_v36 = vpop.permute.xlu1 %695  ;;  %v567_v37 = vpop.permute.xlu0 %566 }
 0x25e   : > { %6018 = vmatmul.mubr.msk.bf16.vlgmr.msra.gmra.mxu0 %vm199_vm2, %v7174_v28  ;;  %v701_v38 = vsel %vm199_vm2, %v696_v36, 0 }
 0x25f   : > { %6028 = vmatpush3.bf16.xpose.msra.mxu0 %v447_v33  ;;  %6029 = vmatprep.mubr.msk.bf16.mxu0 %vm6981_vm0, %v6980_v0 }
 0x260   : > { %6039 = vmatprep.subr.bf16.mxu0 %v6980_v0 }
 0x261   : > { %v694_v39 = vpop.permute.xlu0 %693 }
 0x266   : > { %6030 = vmatmul.mubr.msk.bf16.vlgmr.msra.gmra.mxu0 %vm199_vm2, %v440_v32 }
 0x267   : > { %6040 = vmatpush3.bf16.xpose.msra.mxu0 %v574_v35  ;;  %6041 = vmatprep.mubr.msk.bf16.mxu0 %vm6981_vm0, %v6980_v0 }
 0x268   : > { %6051 = vmatprep.subr.bf16.mxu0 %v6980_v0 }
 0x26e   : > { %6042 = vmatmul.mubr.msk.bf16.vlgmr.msra.gmra.mxu0 %vm199_vm2, %v567_v37 }
 0x26f   : > { %6052 = vmatpush3.bf16.xpose.msra.mxu0 %v701_v38  ;;  %6053 = vmatprep.mubr.msk.bf16.mxu0 %vm6981_vm0, %v6980_v0 }
 0x270   : > { %6063 = vmatprep.subr.bf16.mxu0 %v6980_v0 }
 0x276   : > { %6054 = vmatmul.mubr.msk.bf16.vlgmr.msra.gmra.mxu0 %vm199_vm2, %v694_v39 }
 0x277   : > { %6067 = vmatprep.mubr.msk.bf16.mxu0 %vm6981_vm0, %v6980_v0 }
 0x31e   : > { %v349_v40 = vpop.f32.mrf.mxu0 }
 0x31f   : > { %v356_v42 = vmul.f32 0.35355338, %v349_v40 }
 0x320   : > { %v6019_v43 = vpop.f32.mrf.mxu0 }
 0x321   : > { %v362_v44 = vadd.f32 %v7212_v41, %v356_v42 }
 0x322   : > { %v352_v45 = vpop.f32.mrf.mxu0 }
 0x323   : > { %v357_v46 = vmul.f32 0.35355338, %v352_v45  ;;  %v365_v47 = vsel %vm364_vm4, %v362_v44, -inf }
 0x324   : > { %366 = vmax.xlane.f32.xlu1 %v365_v47  ;;  %v6020_v48 = vpop.f32.mrf.mxu0 }
 0x325   : > { %v363_v49 = vadd.f32 %v7212_v41, %v357_v46 }
 0x326   : > { %v483_v50 = vpop.f32.mrf.mxu0 }
 0x327   : > { %v490_v51 = vmul.f32 0.35355338, %v483_v50  ;;  %v369_v52 = vsel %vm368_vm5, %v363_v49, -inf }
 0x328   : > { %370 = vmax.xlane.f32.xlu0 %v369_v52  ;;  %v6031_v53 = vpop.f32.mrf.mxu0 }
 0x329   : > { %v492_v54 = vadd.f32 %v7212_v41, %v490_v51 }
 0x32a   : > { %v486_v55 = vpop.f32.mrf.mxu0 }
 0x32b   : > { %v491_v56 = vmul.f32 0.35355338, %v486_v55  ;;  %v494_v57 = vsel %vm364_vm4, %v492_v54, -inf }
 0x32c   : > { %495 = vmax.xlane.f32.xlu0 %v494_v57  ;;  %v6032_v58 = vpop.f32.mrf.mxu0 }
 0x32d   : > { %v493_v59 = vadd.f32 %v7212_v41, %v491_v56 }
 0x32e   : > { %v610_v60 = vpop.f32.mrf.mxu0 }
 0x32f   : > { %v617_v61 = vmul.f32 0.35355338, %v610_v60  ;;  %v497_v62 = vsel %vm368_vm5, %v493_v59, -inf }
 0x330   : > { %498 = vmax.xlane.f32.xlu1 %v497_v62  ;;  %v6043_v63 = vpop.f32.mrf.mxu0 }
 0x331   : > { %v619_v1 = vadd.f32 %v7212_v41, %v617_v61 }
 0x332   : > { %v613_v2 = vpop.f32.mrf.mxu0 }
 0x333   : > { %v618_v3 = vmul.f32 0.35355338, %v613_v2  ;;  %v621_v4 = vsel %vm364_vm4, %v619_v1, -inf }
 0x334   : > { %622 = vmax.xlane.f32.xlu0 %v621_v4  ;;  %v6044_v5 = vpop.f32.mrf.mxu0 }
 0x335   : > { %v620_v6 = vadd.f32 %v7212_v41, %v618_v3 }
 0x336   : > { %v737_v7 = vpop.f32.mrf.mxu0 }
 0x337   : > { %v744_v8 = vmul.f32 0.35355338, %v737_v7  ;;  %v624_v9 = vsel %vm368_vm5, %v620_v6, -inf }
 0x338   : > { %625 = vmax.xlane.f32.xlu1 %v624_v9  ;;  %v6055_v10 = vpop.f32.mrf.mxu0 }
 0x339   : > { %v746_v11 = vadd.f32 %v7212_v41, %v744_v8 }
 0x33a   : > { %v740_v12 = vpop.f32.mrf.mxu0 }
 0x33b   : > { %v745_v13 = vmul.f32 0.35355338, %v740_v12  ;;  %v748_v14 = vsel %vm364_vm4, %v746_v11, -inf }
 0x33c   : > { %749 = vmax.xlane.f32.xlu0 %v748_v14  ;;  %v6056_v15 = vpop.f32.mrf.mxu0 }
 0x33d   : > { %v747_v16 = vadd.f32 %v7212_v41, %v745_v13 }
 0x33f   : > { %v751_v19 = vsel %vm368_vm5, %v747_v16, -inf }
 0x340   : > { %752 = vmax.xlane.f32.xlu1 %v751_v19 }
 0x3ad   : > { %v367_v20 = vpop.xlane.xlu1 %366 }
 0x3ae   : > { %v372_v21 = vsub.f32 %v362_v44, %v367_v20 }
 0x3b0   : > { %v374_v22 = vmul.f32 1.442695, %v372_v21 }
 0x3b1   : > { %v371_v23 = vpop.xlane.xlu0 %370 }
 0x3b2   : > { %6688 = vpow2.f32 %v374_v22  ;;  %v373_v24 = vsub.f32 %v363_v49, %v371_v23 }
 0x3b4   : > { %v376_v25 = vmul.f32 1.442695, %v373_v24 }
 0x3b5   : > { %v496_v26 = vpop.xlane.xlu0 %495 }
 0x3b6   : > { %6690 = vpow2.f32 %v376_v25  ;;  %v500_v27 = vsub.f32 %v492_v54, %v496_v26 }
 0x3b8   : > { %v502_v29 = vmul.f32 1.442695, %v500_v27 }
 0x3b9   : > { %v499_v36 = vpop.xlane.xlu1 %498 }
 0x3ba   : > { %6692 = vpow2.f32 %v502_v29  ;;  %v501_v37 = vsub.f32 %v493_v59, %v499_v36 }
 0x3bc   : > { %v504_v42 = vmul.f32 1.442695, %v501_v37 }
 0x3bd   : > { %v623_v38 = vpop.xlane.xlu0 %622 }
 0x3be   : > { %v627_v40 = vsub.f32 %v619_v1, %v623_v38  ;;  %6694 = vpow2.f32 %v504_v42 }
 0x3bf   : > { %v7230_v30 = vpop.eup %6688 }
 0x3c0   : > { %v378_v31 = vsel %vm364_vm4, %v7230_v30, 0.0  ;;  %v629_v46 = vmul.f32 1.442695, %v627_v40 }
 0x3c1   : > { %379 = vadd.xlane.f32.xlu0 %v378_v31  ;;  %v626_v39 = vpop.xlane.xlu1 %625 }
 0x3c2   : > { %v628_v43 = vsub.f32 %v620_v6, %v626_v39  ;;  %6696 = vpow2.f32 %v629_v46  ;;  %v855_v46 = vld [vmem:[#allocation2 + $0x150] sm:$0xff] }
 0x3c3   : > { %v6691_v32 = vpop.eup %6690 }
 0x3c4   : > { %v381_v33 = vsel %vm368_vm5, %v6691_v32, 0.0  ;;  %v631_v48 = vmul.f32 1.442695, %v628_v43 }
 0x3c5   : > { %382 = vadd.xlane.f32.xlu1 %v381_v33  ;;  %v750_v44 = vpop.xlane.xlu0 %749 }
 0x3c6   : > { %v754_v47 = vsub.f32 %v746_v11, %v750_v44  ;;  %6698 = vpow2.f32 %v631_v48 }
 0x3c7   : > { %v7235_v34 = vpop.eup %6692 }
 0x3c8   : > { %v506_v35 = vsel %vm364_vm4, %v7235_v34, 0.0  ;;  %v756_v50 = vmul.f32 1.442695, %v754_v47 }
 0x3c9   : > { %507 = vadd.xlane.f32.xlu0 %v506_v35  ;;  %v753_v45 = vpop.xlane.xlu1 %752 }
 0x3ca   : > { %v755_v49 = vsub.f32 %v747_v16, %v753_v45  ;;  %6700 = vpow2.f32 %v756_v50  ;;  %v854_v45 = vld [vmem:[#allocation2 + $0x148] sm:$0xff] }
 0x3cb   : > { %v6695_v52 = vpop.eup %6694  ;;  %v858_v48 = vpack.c.bf16 %v855_v46, %v854_v45  ;;  %v1017_v45 = vld [vmem:[#allocation2 + $0x1d0] sm:$0xff] }
 0x3cc   : > { %v758_v51 = vmul.f32 1.442695, %v755_v49  ;;  %v509_v54 = vsel %vm368_vm5, %v6695_v52, 0.0 }
 0x3cd   : > { %6064 = vmatpush3.bf16.msra.mxu0 %v858_v48 }
 0x3ce   : > { %6702 = vpow2.f32 %v758_v51  ;;  %6065 = vmatprep.subr.bf16.mxu0 %v6980_v0 }
 0x3cf   : > { %v7243_v53 = vpop.eup %6696 }
 0x3d0   : > { %v633_v57 = vsel %vm364_vm4, %v7243_v53, 0.0 }
 0x3d3   : > { %v6699_v55 = vpop.eup %6698 }
 0x3d4   : > { %v636_v58 = vsel %vm368_vm5, %v6699_v55, 0.0 }
 0x3d6   : > { %517 = vrot.lane.b32.xlu1 %v7174_v28, %s6989_s24 }
 0x3d7   : > { %v7246_v56 = vpop.eup %6700 }
 0x3d8   : > { %v760_v60 = vsel %vm364_vm4, %v7246_v56, 0.0 }
 0x3db   : > { %v7251_v59 = vpop.eup %6702 }
 0x3dc   : > { %v763_v61 = vsel %vm368_vm5, %v7251_v59, 0.0 }
 0x3df   : > { %389 = vrot.lane.b32.xlu0 %v7174_v28, %s6990_s27 }
 0x3fa   : > { %510 = vadd.xlane.f32.xlu1 %v509_v54 }
 0x3fe   : > { %634 = vadd.xlane.f32.xlu0 %v633_v57  ;;  %637 = vadd.xlane.f32.xlu1 %v636_v58 }
 0x402   : > { %761 = vadd.xlane.f32.xlu0 %v760_v60  ;;  %764 = vadd.xlane.f32.xlu1 %v763_v61 }
 0x413   : > { %644 = vrot.lane.b32.xlu1 %v7174_v28, %s6991_s28 }
 0x418   : > { %771 = vrot.lane.b32.xlu0 %v7174_v28, %s6992_s4 }
 0x44a   : > { %v380_v62 = vpop.xlane.xlu0 %379 }
 0x44b   : > { %6704 = vrcp.f32 %v380_v62 }
 0x44e   : > { %v383_v63 = vpop.xlane.xlu1 %382 }
 0x44f   : > { %6706 = vrcp.f32 %v383_v63 }
 0x452   : > { %v508_v1 = vpop.xlane.xlu0 %507  ;;  %v518_v8 = vpop.permute.xlu1 %517 }
 0x453   : > { %v523_v28 = vsel %vm394_vm6, %v518_v8, 0  ;;  %6708 = vrcp.f32 %v508_v1 }
 0x456   : > { %v390_v2 = vpop.permute.xlu0 %389 }
 0x457   : > { %v396_v3 = vsel %vm394_vm6, %v390_v2, 0 }
 0x458   : > { %6022 = vmatpush3.bf16.msra.mxu1 %v396_v3  ;;  %v6705_v4 = vpop.eup %6704 }
 0x459   : > { %6033 = vmatprep.subr.bf16.mxu1 %v6980_v0  ;;  %v386_v6 = vmul.f32 %v6705_v4, %v7230_v30 }
 0x45c   : > { %v6707_v5 = vpop.eup %6706 }
 0x45d   : > { %v387_v7 = vmul.f32 %v6707_v5, %v6691_v32 }
 0x45f   : > { %v388_v9 = vpack.c.bf16 %v387_v7, %v386_v6 }
 0x460   : > { %v6709_v15 = vpop.eup %6708 }
 0x461   : > { %6024 = vmatmul.mubr.msk.bf16.vlgmr.msra.gmra.mxu1 %vm364_vm4, %v388_v9  ;;  %v514_v19 = vmul.f32 %v6709_v15, %v7235_v34  ;;  %v5668_v15 = vld [vmem:[#allocation2 + $0x158] ss:$0 sm:$0xff] }
 0x462   : > { %6034 = vmatpush3.bf16.msra.mxu1 %v523_v28  ;;  %6035 = vmatprep.mubr.msk.bf16.mxu1 %vm6981_vm0, %v6980_v0 }
 0x463   : > { %6045 = vmatprep.subr.bf16.mxu1 %v6980_v0 }
 0x483   : > { %v511_v10 = vpop.xlane.xlu1 %510 }
 0x484   : > { %6710 = vrcp.f32 %v511_v10 }
 0x487   : > { %v635_v11 = vpop.xlane.xlu0 %634  ;;  %v638_v12 = vpop.xlane.xlu1 %637 }
 0x488   : > { %6712 = vrcp.f32 %v635_v11 }
 0x489   : > { %6714 = vrcp.f32 %v638_v12 }
 0x48b   : > { %v762_v13 = vpop.xlane.xlu0 %761  ;;  %v765_v14 = vpop.xlane.xlu1 %764 }
 0x48c   : > { %6716 = vrcp.f32 %v762_v13 }
 0x48d   : > { %6718 = vrcp.f32 %v765_v14 }
 0x48f   : > { %v645_v21 = vpop.permute.xlu1 %644  ;;  %v772_v29 = vpop.permute.xlu0 %771 }
 0x490   : > { %v650_v25 = vsel %vm394_vm6, %v645_v21, 0  ;;  %v777_v33 = vsel %vm394_vm6, %v772_v29, 0 }
 0x491   : > { %v6711_v16 = vpop.eup %6710 }
 0x492   : > { %v515_v20 = vmul.f32 %v6711_v16, %v6695_v52  ;;  %v852_v52 = vld [vmem:[#allocation2 + $0x138] sm:$0xff] }
 0x494   : > { %v516_v22 = vpack.c.bf16 %v515_v20, %v514_v19 }
 0x495   : > { %v6713_v23 = vpop.eup %6712 }
 0x496   : > { %v6715_v24 = vpop.eup %6714  ;;  %6036 = vmatmul.mubr.msk.bf16.vlgmr.msra.gmra.mxu1 %vm364_vm4, %v516_v22  ;;  %v641_v26 = vmul.f32 %v6713_v23, %v7243_v53  ;;  %v853_v53 = vld [vmem:[#allocation2 + $0x140] sm:$0xff] }
 0x497   : > { %6046 = vmatpush3.bf16.msra.mxu1 %v650_v25  ;;  %6047 = vmatprep.mubr.msk.bf16.mxu1 %vm6981_vm0, %v6980_v0  ;;  %v642_v27 = vmul.f32 %v6715_v24, %v6699_v55  ;;  %v857_v54 = vpack.c.bf16 %v853_v53, %v852_v52 }
 0x498   : > { %6057 = vmatprep.subr.bf16.mxu1 %v6980_v0 }
 0x499   : > { %v6717_v30 = vpop.eup %6716  ;;  %v643_v31 = vpack.c.bf16 %v642_v27, %v641_v26  ;;  %6066 = vmatpush3.bf16.msra.mxu0 %v857_v54 }
 0x49a   : > { %v6719_v32 = vpop.eup %6718  ;;  %v768_v34 = vmul.f32 %v6717_v30, %v7246_v56  ;;  %6079 = vmatprep.subr.bf16.mxu0 %v6980_v0 }
 0x49b   : > { %v769_v35 = vmul.f32 %v6719_v32, %v7251_v59 }
 0x49d   : > { %v770_v36 = vpack.c.bf16 %v769_v35, %v768_v34 }
 0x49e   : > { %6048 = vmatmul.mubr.msk.bf16.vlgmr.msra.gmra.mxu1 %vm364_vm4, %v643_v31 }
 0x49f   : > { %6058 = vmatpush3.bf16.msra.mxu1 %v777_v33  ;;  %6059 = vmatprep.mubr.msk.bf16.mxu1 %vm6981_vm0, %v6980_v0 }
 0x4a0   : > { %6071 = vmatprep.subr.bf16.mxu1 %v6980_v0 }
 0x4a6   : > { %6060 = vmatmul.mubr.msk.bf16.vlgmr.msra.gmra.mxu1 %vm364_vm4, %v770_v36 }
 0x4a7   : > { %6075 = vmatprep.mubr.msk.bf16.mxu1 %vm6981_vm0, %v6980_v0 }
 0x521   : > { %v432_v37 = vpop.f32.mrf.mxu1 }
 0x523   : > { %v6025_v38 = vpop.f32.mrf.mxu1 }
 0x524   : > { %v954_v38 = vld [vmem:[#allocation2 + $0x180] sm:$0xff] }
 0x525   : > { %v435_v39 = vpop.f32.mrf.mxu1 }
 0x527   : > { %v6026_v40 = vpop.f32.mrf.mxu1 }
 0x528   : > { %v952_v40 = vld [vmem:[#allocation2 + $0x170] sm:$0xff] }
 0x556   : > { %v559_v42 = vpop.f32.mrf.mxu1 }
 0x558   : > { %v6037_v43 = vpop.f32.mrf.mxu1 }
 0x55a   : > { %v562_v44 = vpop.f32.mrf.mxu1 }
 0x55b   : > { %v6656_v47 = vpack.i.bf16 %v562_v44, %v559_v42  ;;  %v953_v42 = vld [vmem:[#allocation2 + $0x178] sm:$0xff]  ;;  %v1016_v44 = vld [vmem:[#allocation2 + $0x1c8] sm:$0xff] }
 0x55c   : > { %v6038_v49 = vpop.f32.mrf.mxu1  ;;  %v957_v43 = vpack.c.bf16 %v953_v42, %v952_v40  ;;  %v1022_v46 = vpack.c.bf16 %v1017_v45, %v1016_v44  ;;  %v1117_v42 = vld [vmem:[#allocation2 + $0x200] sm:$0xff]  ;;  %v1115_v45 = vld [vmem:[#allocation2 + $0x1f0] sm:$0xff] }
 0x55d   : > { %6657 = vrot.lane.b32.xlu1 %v6656_v47, %s6993_s3 }
 0x55e   : > { %v686_v50 = vpop.f32.mrf.mxu1 }
 0x560   : > { %v6049_v51 = vpop.f32.mrf.mxu1 }
 0x562   : > { %v689_v55 = vpop.f32.mrf.mxu1 }
 0x563   : > { %v6661_v56 = vpack.i.bf16 %v689_v55, %v686_v50  ;;  %v5670_v55 = vld [vmem:[#allocation2 + $0x160] ss:$0 sm:$0xff] }
 0x564   : > { %v6050_v57 = vpop.f32.mrf.mxu1 }
 0x565   : > { %6662 = vrot.lane.b32.xlu0 %v6661_v56, %s6994_s5 }
 0x566   : > { %v813_v58 = vpop.f32.mrf.mxu1 }
 0x568   : > { %v6061_v59 = vpop.f32.mrf.mxu1 }
 0x569   : > { %v5671_v59 = vld [vmem:[#allocation2 + $0x168] ss:$0 sm:$0xff] }
 0x56a   : > { %v816_v60 = vpop.f32.mrf.mxu1 }
 0x56b   : > { %v6666_v61 = vpack.i.bf16 %v816_v60, %v813_v58 }
 0x56c   : > { %v6062_v62 = vpop.f32.mrf.mxu1 }
 0x56d   : > { %6667 = vrot.lane.b32.xlu1 %v6666_v61, %s6995_s7 }
 0x5cf   : > { %v6658_v63 = vpop.permute.xlu1 %6657 }
 0x5d0   : > { %v6660_v2 = vunpack.i.h.bf16 %v6658_v63  ;;  %v6659_v3 = vunpack.i.l.bf16 %v6658_v63 }
 0x5d2   : > { %v845_v7 = vsel %vm199_vm2, %v435_v39, %v6660_v2  ;;  %v844_v8 = vsel %vm199_vm2, %v432_v37, %v6659_v3  ;;  %v955_v39 = vld [vmem:[#allocation2 + $0x188] sm:$0xff]  ;;  %v1015_v2 = vld [vmem:[#allocation2 + $0x1c0] sm:$0xff] }
 0x5d7   : > { %v6663_v1 = vpop.permute.xlu0 %6662 }
 0x5d8   : > { %v6665_v4 = vunpack.i.h.bf16 %v6663_v1  ;;  %v6664_v5 = vunpack.i.l.bf16 %v6663_v1  ;;  %v1014_v1 = vld [vmem:[#allocation2 + $0x1b8] sm:$0xff] }
 0x5d9   : > { %v1021_v3 = vpack.c.bf16 %v1015_v2, %v1014_v1 }
 0x5da   : > { %v847_v10 = vsel %vm846_vm7, %v844_v8, %v6664_v5  ;;  %v848_v11 = vsel %vm846_vm7, %v845_v7, %v6665_v4  ;;  %v1012_v4 = vld [vmem:[#allocation2 + $0x1a8] sm:$0xff]  ;;  %v1013_v5 = vld [vmem:[#allocation2 + $0x1b0] sm:$0xff]  ;;  %v1010_v7 = vld [vmem:[#allocation2 + $0x198] sm:$0xff] }
 0x5db   : > { %v1011_v8 = vld [vmem:[#allocation2 + $0x1a0] sm:$0xff] }
 0x5df   : > { %v6668_v6 = vpop.permute.xlu1 %6667 }
 0x5e0   : > { %v6670_v9 = vunpack.i.h.bf16 %v6668_v6  ;;  %v6669_v28 = vunpack.i.l.bf16 %v6668_v6  ;;  %v1020_v6 = vpack.c.bf16 %v1013_v5, %v1012_v4 }
 0x5e2   : > { %v850_v12 = vsel %vm849_vm8, %v847_v10, %v6669_v28  ;;  %v851_v13 = vsel %vm849_vm8, %v848_v11, %v6670_v9  ;;  %v1019_v9 = vpack.c.bf16 %v1011_v8, %v1010_v7  ;;  %v5672_v28 = vld [vmem:[#allocation2 + $0x190] ss:$0 sm:$0xff] }
 0x5e3   : > { %v856_v14 = vpack.c.bf16 %v851_v13, %v850_v12 }
 0x5e5   : > { %6068 = vmatmul.mubr.msk.bf16.vlgmr.msra.gmra.mxu0 %vm260_vm3, %v856_v14 }
 0x5e6   : > { %6087 = vmatprep.mubr.msk.bf16.mxu0 %vm6981_vm0, %v6980_v0  ;;  %6080 = vmatpush3.bf16.msra.mxu0 %v1022_v46  ;;  %v1116_v46 = vld [vmem:[#allocation2 + $0x1f8] sm:$0xff] }
 0x5e7   : > { %6081 = vmatprep.subr.bf16.mxu0 %v6980_v0 }
 0x5ea   : > { %6082 = vmatpush3.bf16.msra.mxu0 %v1021_v3  ;;  %v5678_v3 = vld [vmem:[#allocation2 + $0x210] ss:$0 sm:$0xff] }
 0x5eb   : > { %6083 = vmatprep.subr.bf16.mxu0 %v6980_v0 }
 0x5ee   : > { %6084 = vmatpush3.bf16.msra.mxu0 %v1020_v6 }
 0x5ef   : > { %6085 = vmatprep.subr.bf16.mxu0 %v6980_v0 }
 0x5f2   : > { %6086 = vmatpush3.bf16.msra.mxu0 %v1019_v9 }
 0x5f3   : > { %6105 = vmatprep.subr.bf16.mxu0 %v6980_v0 }
 0x6a5   : > { %v901_v16 = vpop.f32.mrf.mxu0 }
 0x6a6   : > { %v902_v19 = vadd.f32 %v5668_v15, %v901_v16 }
 0x6a7   : > { %v6069_v20 = vpop.f32.mrf.mxu0 }
 0x6a8   : > { %v908_v21 = vadd.f32 %v902_v19, %v7165_v17 }
 0x6a9   : > { %v904_v22 = vpop.f32.mrf.mxu0 }
 0x6aa   : > { %v905_v23 = vadd.f32 %v5668_v15, %v904_v22  ;;  %v910_v24 = vsel %vm260_vm3, %v908_v21, 0.0 }
 0x6ab   : > { %911 = vadd.xlane.f32.xlu0 %v910_v24  ;;  %v6070_v25 = vpop.f32.mrf.mxu0 }
 0x6ac   : > { %v909_v26 = vadd.f32 %v905_v23, %v7167_v18  ;;  %v958_v18 = vpack.c.bf16 %v955_v39, %v954_v38 }
 0x6ae   : > { %v914_v27 = vsel %vm913_vm9, %v909_v26, 0.0  ;;  %6072 = vmatpush3.bf16.msra.mxu1 %v958_v18 }
 0x6af   : > { %915 = vadd.xlane.f32.xlu1 %v914_v27  ;;  %6073 = vmatprep.subr.bf16.mxu1 %v6980_v0 }
 0x6b2   : > { %6074 = vmatpush3.bf16.msra.mxu1 %v957_v43  ;;  %v1118_v43 = vld [vmem:[#allocation2 + $0x208] sm:$0xff] }
 0x6b3   : > { %6091 = vmatprep.subr.bf16.mxu1 %v6980_v0  ;;  %v1122_v44 = vpack.c.bf16 %v1118_v43, %v1117_v42 }
 0x734   : > { %v912_v29 = vpop.xlane.xlu0 %911 }
 0x735   : > { %v918_v30 = vmul.f32 0.03125, %v912_v29 }
 0x737   : > { %v920_v31 = vsub.f32 %v908_v21, %v918_v30  ;;  %v5674_v21 = vld [vmem:[#allocation2 + $0x1d8] ss:$0 sm:$0xff] }
 0x738   : > { %v916_v32 = vpop.xlane.xlu1 %915 }
 0x739   : > { %v919_v33 = vmul.f32 0.03125, %v916_v32  ;;  %v922_v34 = vmul.f32 %v920_v31, %v920_v31 }
 0x73b   : > { %v921_v35 = vsub.f32 %v909_v26, %v919_v33  ;;  %v924_v17 = vsel %vm260_vm3, %v922_v34, 0.0 }
 0x73c   : > { %925 = vadd.xlane.f32.xlu0 %v924_v17 }
 0x73d   : > { %v923_v36 = vmul.f32 %v921_v35, %v921_v35 }
 0x73f   : > { %v927_v37 = vsel %vm913_vm9, %v923_v36, 0.0 }
 0x740   : > { %928 = vadd.xlane.f32.xlu0 %v927_v37 }
 0x7c5   : > { %v926_v47 = vpop.xlane.xlu0 %925 }
 0x7c6   : > { %v930_v48 = vmul.f32 0.03125, %v926_v47  ;;  %v1121_v47 = vpack.c.bf16 %v1116_v46, %v1115_v45 }
 0x7c8   : > { %v932_v49 = vadd.f32 1e-05, %v930_v48 }
 0x7c9   : > { %v929_v50 = vpop.xlane.xlu0 %928 }
 0x7ca   : > { %6720 = vrsqrt.f32 %v932_v49  ;;  %v931_v51 = vmul.f32 0.03125, %v929_v50 }
 0x7cc   : > { %v933_v52 = vadd.f32 1e-05, %v931_v51 }
 0x7ce   : > { %6722 = vrsqrt.f32 %v933_v52 }
 0x7d7   : > { %v6721_v53 = vpop.eup %6720 }
 0x7d8   : > { %v936_v54 = vmul.f32 %v6721_v53, %v920_v31 }
 0x7da   : > { %v943_v58 = vmul.f32 %v5670_v55, %v936_v54 }
 0x7db   : > { %v6723_v56 = vpop.eup %6722 }
 0x7dc   : > { %v937_v57 = vmul.f32 %v6723_v56, %v921_v35  ;;  %v950_v61 = vadd.f32 %v5671_v59, %v943_v58  ;;  %v5676_v56 = vld [vmem:[#allocation2 + $0x1e0] ss:$0 sm:$0xff] }
 0x7de   : > { %v944_v60 = vmul.f32 %v5670_v55, %v937_v57 }
 0x7e0   : > { %v951_v62 = vadd.f32 %v5671_v59, %v944_v60  ;;  %v5677_v60 = vld [vmem:[#allocation2 + $0x1e8] ss:$0 sm:$0xff] }
 0x7e2   : > { %v956_v63 = vpack.c.bf16 %v951_v62, %v950_v61 }
 0x7e4   : > { %6076 = vmatmul.mubr.msk.bf16.vlgmr.msra.gmra.mxu1 %vm260_vm3, %v956_v63 }
 0x7e5   : > { %6095 = vmatprep.mubr.msk.bf16.mxu1 %vm6981_vm0, %v6980_v0  ;;  %6092 = vmatpush3.bf16.msra.mxu1 %v1122_v44 }
 0x7e6   : > { %6093 = vmatprep.subr.bf16.mxu1 %v6980_v0 }
 0x7e9   : > { %6094 = vmatpush3.bf16.msra.mxu1 %v1121_v47 }
 0x7ea   : > { %6099 = vmatprep.subr.bf16.mxu1 %v6980_v0 }
 0x8a4   : > { %v1001_v10 = vpop.f32.mrf.mxu1 }
 0x8a5   : > { %v1002_v12 = vadd.f32 %v5672_v28, %v1001_v10 }
 0x8a6   : > { %v6077_v11 = vpop.f32.mrf.mxu1 }
 0x8a7   : > { %v1008_v16 = vmax.f32 %v1002_v12, 0.0 }
 0x8a8   : > { %v1004_v13 = vpop.f32.mrf.mxu1 }
 0x8a9   : > { %v1005_v14 = vadd.f32 %v5672_v28, %v1004_v13 }
 0x8aa   : > { %v6078_v15 = vpop.f32.mrf.mxu1 }
 0x8ab   : > { %v1009_v19 = vmax.f32 %v1005_v14, 0.0 }
 0x8ad   : > { %v1018_v20 = vpack.c.bf16 %v1009_v19, %v1008_v16 }
 0x8af   : > { %6088 = vmatmul.mubr.msk.bf16.vlgmr.msra.gmra.mxu0 %vm1028_vm10, %v1018_v20 }
 0x8b0   : > { %6107 = vmatprep.mubr.msk.bf16.mxu0 %vm6981_vm0, %v6980_v0 }
 0x96f   : > { %v1066_v22 = vpop.f32.mrf.mxu0 }
 0x970   : > { %v1067_v23 = vadd.f32 %v5674_v21, %v1066_v22 }
 0x971   : > { %v6089_v24 = vpop.f32.mrf.mxu0 }
 0x972   : > { %v1073_v25 = vadd.f32 %v1067_v23, %v950_v61 }
 0x973   : > { %v1069_v26 = vpop.f32.mrf.mxu0 }
 0x974   : > { %v1070_v27 = vadd.f32 %v5674_v21, %v1069_v26  ;;  %v1075_v29 = vsel %vm260_vm3, %v1073_v25, 0.0 }
 0x975   : > { %1076 = vadd.xlane.f32.xlu1 %v1075_v29  ;;  %v6090_v30 = vpop.f32.mrf.mxu0 }
 0x976   : > { %v1074_v31 = vadd.f32 %v1070_v27, %v951_v62 }
 0x978   : > { %v1078_v32 = vsel %vm913_vm9, %v1074_v31, 0.0 }
 0x979   : > { %1079 = vadd.xlane.f32.xlu0 %v1078_v32 }
 0x9fe   : > { %v1077_v33 = vpop.xlane.xlu1 %1076 }
 0x9ff   : > { %v1081_v34 = vmul.f32 0.03125, %v1077_v33 }
 0xa01   : > { %v1083_v35 = vsub.f32 %v1073_v25, %v1081_v34 }
 0xa02   : > { %v1080_v17 = vpop.xlane.xlu0 %1079 }
 0xa03   : > { %v1082_v36 = vmul.f32 0.03125, %v1080_v17  ;;  %v1085_v37 = vmul.f32 %v1083_v35, %v1083_v35 }
 0xa05   : > { %v1084_v38 = vsub.f32 %v1074_v31, %v1082_v36  ;;  %v1087_v39 = vsel %vm260_vm3, %v1085_v37, 0.0 }
 0xa06   : > { %1088 = vadd.xlane.f32.xlu1 %v1087_v39 }
 0xa07   : > { %v1086_v18 = vmul.f32 %v1084_v38, %v1084_v38 }
 0xa09   : > { %v1090_v40 = vsel %vm913_vm9, %v1086_v18, 0.0 }
 0xa0a   : > { %1091 = vadd.xlane.f32.xlu0 %v1090_v40 }
 0xa8f   : > { %v1089_v48 = vpop.xlane.xlu1 %1088 }
 0xa90   : > { %v1093_v49 = vmul.f32 0.03125, %v1089_v48 }
 0xa92   : > { %v1095_v50 = vadd.f32 1e-05, %v1093_v49 }
 0xa93   : > { %v1092_v51 = vpop.xlane.xlu0 %1091 }
 0xa94   : > { %6724 = vrsqrt.f32 %v1095_v50  ;;  %v1094_v52 = vmul.f32 0.03125, %v1092_v51 }
 0xa96   : > { %v1096_v53 = vadd.f32 1e-05, %v1094_v52 }
 0xa98   : > { %6726 = vrsqrt.f32 %v1096_v53 }
 0xaa1   : > { %v6725_v54 = vpop.eup %6724 }
 0xaa2   : > { %v1099_v55 = vmul.f32 %v6725_v54, %v1083_v35 }
 0xaa4   : > { %v1106_v59 = vmul.f32 %v5676_v56, %v1099_v55 }
 0xaa5   : > { %v6727_v57 = vpop.eup %6726 }
 0xaa6   : > { %v1100_v58 = vmul.f32 %v6727_v57, %v1084_v38  ;;  %v7324_v62 = vadd.f32 %v5677_v60, %v1106_v59 }
 0xaa8   : > { %v1107_v61 = vmul.f32 %v5676_v56, %v1100_v58 }
 0xaaa   : > { %v7326_v63 = vadd.f32 %v5677_v60, %v1107_v61 }
 0xaac   : > { %v1120_v1 = vpack.c.bf16 %v7326_v63, %v7324_v62 }
 0xaae   : > { %6096 = vmatmul.mubr.msk.bf16.vlgmr.msra.gmra.mxu1 %vm260_vm3, %v1120_v1 }
 0xaaf   : > { %6101 = vmatprep.mubr.msk.bf16.mxu1 %vm6981_vm0, %v6980_v0 }
 0xb6e   : > { %v1164_v2 = vpop.f32.mrf.mxu1 }
 0xb6f   : > { %v1165_v6 = vadd.f32 %v5678_v3, %v1164_v2 }
 0xb70   : > { %v6097_v4 = vpop.f32.mrf.mxu1 }
 0xb72   : > { %v1167_v5 = vpop.f32.mrf.mxu1 }
 0xb73   : > { %v1168_v7 = vadd.f32 %v5678_v3, %v1167_v5 }
 0xb74   : > { %v6098_v8 = vpop.f32.mrf.mxu1 }
 0xb75   : > { %v7333_v9 = vpack.c.bf16 %v1168_v7, %v1165_v6 }
 0xb77   : > { %1300 = vrot.lane.b32.xlu0 %v7333_v9, %s6985_s26  ;;  %1173 = vrot.lane.b32.xlu1 %v7333_v9, %s6983_s17 }
 0xb7b   : > { %1425 = vrot.lane.b32.xlu0 %v7333_v9, %s6987_s19  ;;  %1298 = vrot.lane.b32.xlu1 %v7333_v9, %s6982_s15 }
 0xb7f   : > { %1552 = vrot.lane.b32.xlu0 %v7333_v9, %s6988_s20  ;;  %1427 = vrot.lane.b32.xlu1 %v7333_v9, %s6984_s25 }
 0xb83   : > { %1554 = vrot.lane.b32.xlu1 %v7333_v9, %s6986_s14 }
 0xbe9   : > { %v1174_v28 = vpop.permute.xlu1 %1173  ;;  %v1301_v11 = vpop.permute.xlu0 %1300 }
 0xbea   : > { %v1179_v10 = vsel %vm199_vm2, %v1174_v28, 0  ;;  %v1306_v13 = vsel %vm199_vm2, %v1301_v11, 0 }
 0xbeb   : > { %6100 = vmatpush3.bf16.xpose.msra.mxu1 %v1179_v10 }
 0xbec   : > { %6111 = vmatprep.subr.bf16.mxu1 %v6980_v0 }
 0xbed   : > { %v1299_v12 = vpop.permute.xlu1 %1298  ;;  %v1426_v19 = vpop.permute.xlu0 %1425 }
 0xbf1   : > { %v1428_v14 = vpop.permute.xlu1 %1427  ;;  %v1553_v21 = vpop.permute.xlu0 %1552 }
 0xbf2   : > { %6102 = vmatmul.mubr.msk.bf16.vlgmr.msra.gmra.mxu1 %vm199_vm2, %v7333_v9  ;;  %v1433_v15 = vsel %vm199_vm2, %v1428_v14, 0 }
 0xbf3   : > { %6112 = vmatpush3.bf16.xpose.msra.mxu1 %v1306_v13  ;;  %6113 = vmatprep.mubr.msk.bf16.mxu1 %vm6981_vm0, %v6980_v0 }
 0xbf4   : > { %6123 = vmatprep.subr.bf16.mxu1 %v6980_v0 }
 0xbf5   : > { %v1555_v16 = vpop.permute.xlu1 %1554 }
 0xbf6   : > { %v1560_v20 = vsel %vm199_vm2, %v1555_v16, 0 }
 0xbfa   : > { %6114 = vmatmul.mubr.msk.bf16.vlgmr.msra.gmra.mxu1 %vm199_vm2, %v1299_v12 }
 0xbfb   : > { %6124 = vmatpush3.bf16.xpose.msra.mxu1 %v1433_v15  ;;  %6125 = vmatprep.mubr.msk.bf16.mxu1 %vm6981_vm0, %v6980_v0 }
 0xbfc   : > { %6135 = vmatprep.subr.bf16.mxu1 %v6980_v0 }
 0xc02   : > { %6126 = vmatmul.mubr.msk.bf16.vlgmr.msra.gmra.mxu1 %vm199_vm2, %v1426_v19 }
 0xc03   : > { %6136 = vmatpush3.bf16.xpose.msra.mxu1 %v1560_v20  ;;  %6137 = vmatprep.mubr.msk.bf16.mxu1 %vm6981_vm0, %v6980_v0 }
 0xc04   : > { %6147 = vmatprep.subr.bf16.mxu1 %v6980_v0 }
 0xc0a   : > { %6138 = vmatmul.mubr.msk.bf16.vlgmr.msra.gmra.mxu1 %vm199_vm2, %v1553_v21 }
 0xc0b   : > { %6151 = vmatprep.mubr.msk.bf16.mxu1 %vm6981_vm0, %v6980_v0 }
 0xcb2   : > { %v1215_v22 = vpop.f32.mrf.mxu1 }
 0xcb3   : > { %v1222_v23 = vmul.f32 0.35355338, %v1215_v22 }
 0xcb4   : > { %v6103_v24 = vpop.f32.mrf.mxu1 }
 0xcb5   : > { %v1224_v25 = vadd.f32 %v7212_v41, %v1222_v23 }
 0xcb6   : > { %v1218_v26 = vpop.f32.mrf.mxu1 }
 0xcb7   : > { %v1223_v27 = vmul.f32 0.35355338, %v1218_v26  ;;  %v1226_v29 = vsel %vm364_vm4, %v1224_v25, -inf }
 0xcb8   : > { %1227 = vmax.xlane.f32.xlu1 %v1226_v29  ;;  %v6104_v30 = vpop.f32.mrf.mxu1 }
 0xcb9   : > { %v1225_v31 = vadd.f32 %v7212_v41, %v1223_v27 }
 0xcba   : > { %v1342_v32 = vpop.f32.mrf.mxu1 }
 0xcbb   : > { %v1349_v33 = vmul.f32 0.35355338, %v1342_v32  ;;  %v1229_v34 = vsel %vm368_vm5, %v1225_v31, -inf }
 0xcbc   : > { %1230 = vmax.xlane.f32.xlu0 %v1229_v34  ;;  %v6115_v35 = vpop.f32.mrf.mxu1 }
 0xcbd   : > { %v1351_v17 = vadd.f32 %v7212_v41, %v1349_v33 }
 0xcbe   : > { %v1345_v36 = vpop.f32.mrf.mxu1 }
 0xcbf   : > { %v1350_v37 = vmul.f32 0.35355338, %v1345_v36  ;;  %v1353_v38 = vsel %vm364_vm4, %v1351_v17, -inf }
 0xcc0   : > { %1354 = vmax.xlane.f32.xlu0 %v1353_v38  ;;  %v6116_v39 = vpop.f32.mrf.mxu1 }
 0xcc1   : > { %v1352_v18 = vadd.f32 %v7212_v41, %v1350_v37 }
 0xcc2   : > { %v1469_v40 = vpop.f32.mrf.mxu1 }
 0xcc3   : > { %v1476_v42 = vmul.f32 0.35355338, %v1469_v40  ;;  %v1356_v43 = vsel %vm368_vm5, %v1352_v18, -inf }
 0xcc4   : > { %1357 = vmax.xlane.f32.xlu1 %v1356_v43  ;;  %v6127_v44 = vpop.f32.mrf.mxu1 }
 0xcc5   : > { %v1478_v45 = vadd.f32 %v7212_v41, %v1476_v42 }
 0xcc6   : > { %v1472_v46 = vpop.f32.mrf.mxu1 }
 0xcc7   : > { %v1477_v47 = vmul.f32 0.35355338, %v1472_v46  ;;  %v1480_v48 = vsel %vm364_vm4, %v1478_v45, -inf }
 0xcc8   : > { %1481 = vmax.xlane.f32.xlu0 %v1480_v48  ;;  %v6128_v49 = vpop.f32.mrf.mxu1 }
 0xcc9   : > { %v1479_v50 = vadd.f32 %v7212_v41, %v1477_v47 }
 0xcca   : > { %v1596_v51 = vpop.f32.mrf.mxu1 }
 0xccb   : > { %v1603_v52 = vmul.f32 0.35355338, %v1596_v51  ;;  %v1483_v53 = vsel %vm368_vm5, %v1479_v50, -inf }
 0xccc   : > { %1484 = vmax.xlane.f32.xlu1 %v1483_v53  ;;  %v6139_v54 = vpop.f32.mrf.mxu1 }
 0xccd   : > { %v1605_v55 = vadd.f32 %v7212_v41, %v1603_v52 }
 0xcce   : > { %v1599_v56 = vpop.f32.mrf.mxu1 }
 0xccf   : > { %v1604_v57 = vmul.f32 0.35355338, %v1599_v56  ;;  %v1607_v58 = vsel %vm364_vm4, %v1605_v55, -inf }
 0xcd0   : > { %1608 = vmax.xlane.f32.xlu0 %v1607_v58  ;;  %v6140_v59 = vpop.f32.mrf.mxu1 }
 0xcd1   : > { %v1606_v60 = vadd.f32 %v7212_v41, %v1604_v57 }
 0xcd3   : > { %v1610_v61 = vsel %vm368_vm5, %v1606_v60, -inf }
 0xcd4   : > { %1611 = vmax.xlane.f32.xlu1 %v1610_v61 }
 0xd41   : > { %v1228_v1 = vpop.xlane.xlu1 %1227 }
 0xd42   : > { %v1232_v2 = vsub.f32 %v1224_v25, %v1228_v1 }
 0xd44   : > { %v1234_v3 = vmul.f32 1.442695, %v1232_v2 }
 0xd45   : > { %v1231_v4 = vpop.xlane.xlu0 %1230 }
 0xd46   : > { %6728 = vpow2.f32 %v1234_v3  ;;  %v1233_v5 = vsub.f32 %v1225_v31, %v1231_v4 }
 0xd48   : > { %v1236_v6 = vmul.f32 1.442695, %v1233_v5 }
 0xd49   : > { %v1355_v7 = vpop.xlane.xlu0 %1354 }
 0xd4a   : > { %6730 = vpow2.f32 %v1236_v6  ;;  %v1359_v8 = vsub.f32 %v1351_v17, %v1355_v7 }
 0xd4c   : > { %v1361_v28 = vmul.f32 1.442695, %v1359_v8 }
 0xd4d   : > { %v1358_v15 = vpop.xlane.xlu1 %1357 }
 0xd4e   : > { %6732 = vpow2.f32 %v1361_v28  ;;  %v1360_v16 = vsub.f32 %v1352_v18, %v1358_v15 }
 0xd50   : > { %v1363_v22 = vmul.f32 1.442695, %v1360_v16 }
 0xd51   : > { %v1482_v19 = vpop.xlane.xlu0 %1481 }
 0xd52   : > { %v1486_v21 = vsub.f32 %v1478_v45, %v1482_v19  ;;  %6734 = vpow2.f32 %v1363_v22 }
 0xd53   : > { %v6729_v10 = vpop.eup %6728 }
 0xd54   : > { %v1238_v11 = vsel %vm364_vm4, %v6729_v10, 0.0  ;;  %v1488_v26 = vmul.f32 1.442695, %v1486_v21 }
 0xd55   : > { %1239 = vadd.xlane.f32.xlu0 %v1238_v11  ;;  %v1485_v20 = vpop.xlane.xlu1 %1484 }
 0xd56   : > { %v1487_v23 = vsub.f32 %v1479_v50, %v1485_v20  ;;  %6736 = vpow2.f32 %v1488_v26 }
 0xd57   : > { %v6731_v41 = vpop.eup %6730 }
 0xd58   : > { %v1241_v12 = vsel %vm368_vm5, %v6731_v41, 0.0  ;;  %v1490_v29 = vmul.f32 1.442695, %v1487_v23 }
 0xd59   : > { %1242 = vadd.xlane.f32.xlu1 %v1241_v12  ;;  %v1609_v24 = vpop.xlane.xlu0 %1608 }
 0xd5a   : > { %v1613_v27 = vsub.f32 %v1605_v55, %v1609_v24  ;;  %6738 = vpow2.f32 %v1490_v29  ;;  %v1711_v24 = vld [vmem:[#allocation2 + $0x228] sm:$0xff] }
 0xd5b   : > { %v7388_v13 = vpop.eup %6732 }
 0xd5c   : > { %v1365_v14 = vsel %vm364_vm4, %v7388_v13, 0.0  ;;  %v1615_v31 = vmul.f32 1.442695, %v1613_v27 }
 0xd5d   : > { %1366 = vadd.xlane.f32.xlu0 %v1365_v14  ;;  %v1612_v25 = vpop.xlane.xlu1 %1611 }
 0xd5e   : > { %v1614_v30 = vsub.f32 %v1606_v60, %v1612_v25  ;;  %6740 = vpow2.f32 %v1615_v31  ;;  %v1712_v25 = vld [vmem:[#allocation2 + $0x230] sm:$0xff] }
 0xd5f   : > { %v6735_v33 = vpop.eup %6734  ;;  %v1715_v27 = vpack.c.bf16 %v1712_v25, %v1711_v24  ;;  %v1808_v24 = vld [vmem:[#allocation2 + $0x258] sm:$0xff] }
 0xd60   : > { %v1617_v32 = vmul.f32 1.442695, %v1614_v30  ;;  %v1368_v35 = vsel %vm368_vm5, %v6735_v33, 0.0 }
 0xd61   : > { %6148 = vmatpush3.bf16.msra.mxu1 %v1715_v27  ;;  %v1872_v27 = vld [vmem:[#allocation2 + $0x2b0] sm:$0xff] }
 0xd62   : > { %6742 = vpow2.f32 %v1617_v32  ;;  %6149 = vmatprep.subr.bf16.mxu1 %v6980_v0  ;;  %v1709_v32 = vld [vmem:[#allocation2 + $0x218] sm:$0xff] }
 0xd63   : > { %v6737_v34 = vpop.eup %6736 }
 0xd64   : > { %v1492_v37 = vsel %vm364_vm4, %v6737_v34, 0.0 }
 0xd67   : > { %v6739_v17 = vpop.eup %6738 }
 0xd68   : > { %v1495_v38 = vsel %vm368_vm5, %v6739_v17, 0.0 }
 0xd6a   : > { %1376 = vrot.lane.b32.xlu1 %v7333_v9, %s6989_s24 }
 0xd6b   : > { %v7397_v36 = vpop.eup %6740 }
 0xd6c   : > { %v1619_v18 = vsel %vm364_vm4, %v7397_v36, 0.0 }
 0xd6f   : > { %v7401_v39 = vpop.eup %6742 }
 0xd70   : > { %v1622_v40 = vsel %vm368_vm5, %v7401_v39, 0.0 }
 0xd73   : > { %1249 = vrot.lane.b32.xlu0 %v7333_v9, %s6990_s27 }
 0xd8e   : > { %1369 = vadd.xlane.f32.xlu1 %v1368_v35 }
 0xd92   : > { %1493 = vadd.xlane.f32.xlu0 %v1492_v37  ;;  %1496 = vadd.xlane.f32.xlu1 %v1495_v38 }
 0xd96   : > { %1620 = vadd.xlane.f32.xlu0 %v1619_v18  ;;  %1623 = vadd.xlane.f32.xlu1 %v1622_v40 }
 0xda7   : > { %1503 = vrot.lane.b32.xlu1 %v7333_v9, %s6991_s28 }
 0xdac   : > { %1630 = vrot.lane.b32.xlu0 %v7333_v9, %s6992_s4 }
 0xdde   : > { %v1240_v42 = vpop.xlane.xlu0 %1239 }
 0xddf   : > { %6744 = vrcp.f32 %v1240_v42 }
 0xde2   : > { %v1243_v43 = vpop.xlane.xlu1 %1242 }
 0xde3   : > { %6746 = vrcp.f32 %v1243_v43 }
 0xde6   : > { %v1367_v44 = vpop.xlane.xlu0 %1366  ;;  %v1377_v51 = vpop.permute.xlu1 %1376 }
 0xde7   : > { %v1382_v53 = vsel %vm394_vm6, %v1377_v51, 0  ;;  %6748 = vrcp.f32 %v1367_v44 }
 0xdea   : > { %v1250_v45 = vpop.permute.xlu0 %1249 }
 0xdeb   : > { %v1255_v46 = vsel %vm394_vm6, %v1250_v45, 0 }
 0xdec   : > { %6106 = vmatpush3.bf16.msra.mxu0 %v1255_v46  ;;  %v6745_v47 = vpop.eup %6744 }
 0xded   : > { %6117 = vmatprep.subr.bf16.mxu0 %v6980_v0  ;;  %v1246_v49 = vmul.f32 %v6745_v47, %v6729_v10 }
 0xdf0   : > { %v6747_v48 = vpop.eup %6746 }
 0xdf1   : > { %v1247_v50 = vmul.f32 %v6747_v48, %v6731_v41 }
 0xdf3   : > { %v1248_v52 = vpack.c.bf16 %v1247_v50, %v1246_v49 }
 0xdf4   : > { %v6749_v58 = vpop.eup %6748 }
 0xdf5   : > { %6108 = vmatmul.mubr.msk.bf16.vlgmr.msra.gmra.mxu0 %vm364_vm4, %v1248_v52  ;;  %v1373_v60 = vmul.f32 %v6749_v58, %v7388_v13 }
 0xdf6   : > { %6118 = vmatpush3.bf16.msra.mxu0 %v1382_v53  ;;  %6119 = vmatprep.mubr.msk.bf16.mxu0 %vm6981_vm0, %v6980_v0 }
 0xdf7   : > { %6129 = vmatprep.subr.bf16.mxu0 %v6980_v0 }
 0xe17   : > { %v1370_v9 = vpop.xlane.xlu1 %1369 }
 0xe18   : > { %6750 = vrcp.f32 %v1370_v9 }
 0xe1b   : > { %v1494_v54 = vpop.xlane.xlu0 %1493  ;;  %v1497_v55 = vpop.xlane.xlu1 %1496 }
 0xe1c   : > { %6752 = vrcp.f32 %v1494_v54 }
 0xe1d   : > { %6754 = vrcp.f32 %v1497_v55 }
 0xe1f   : > { %v1621_v56 = vpop.xlane.xlu0 %1620  ;;  %v1624_v57 = vpop.xlane.xlu1 %1623 }
 0xe20   : > { %6756 = vrcp.f32 %v1621_v56 }
 0xe21   : > { %6758 = vrcp.f32 %v1624_v57  ;;  %v5688_v57 = vld [vmem:[#allocation2 + $0x238] ss:$0 sm:$0xff] }
 0xe23   : > { %v1504_v1 = vpop.permute.xlu1 %1503  ;;  %v1631_v8 = vpop.permute.xlu0 %1630 }
 0xe24   : > { %v1509_v5 = vsel %vm394_vm6, %v1504_v1, 0  ;;  %v1636_v41 = vsel %vm394_vm6, %v1631_v8, 0  ;;  %v6996_v8 = vmov 0  }
 0xe25   : > { %v6751_v59 = vpop.eup %6750  ;;  %6686 = vset.pattern.permute.xlu1 %v6996_v8  ;;  %6687 = vset.pattern.permute.xlu0 %v6996_v8 }
 0xe26   : > { %v1374_v61 = vmul.f32 %v6751_v59, %v6735_v33  ;;  %v1710_v33 = vld [vmem:[#allocation2 + $0x220] sm:$0xff] }
 0xe28   : > { %v1375_v2 = vpack.c.bf16 %v1374_v61, %v1373_v60 }
 0xe29   : > { %v6753_v3 = vpop.eup %6752 }
 0xe2a   : > { %v6755_v4 = vpop.eup %6754  ;;  %6120 = vmatmul.mubr.msk.bf16.vlgmr.msra.gmra.mxu0 %vm364_vm4, %v1375_v2  ;;  %v1500_v6 = vmul.f32 %v6753_v3, %v6737_v34  ;;  %v1714_v34 = vpack.c.bf16 %v1710_v33, %v1709_v32 }
 0xe2b   : > { %6130 = vmatpush3.bf16.msra.mxu0 %v1509_v5  ;;  %6131 = vmatprep.mubr.msk.bf16.mxu0 %vm6981_vm0, %v6980_v0  ;;  %v1501_v7 = vmul.f32 %v6755_v4, %v6739_v17 }
 0xe2c   : > { %6141 = vmatprep.subr.bf16.mxu0 %v6980_v0  ;;  %6150 = vmatpush3.bf16.msra.mxu1 %v1714_v34 }
 0xe2d   : > { %v6757_v28 = vpop.eup %6756  ;;  %v1502_v10 = vpack.c.bf16 %v1501_v7, %v1500_v6  ;;  %6163 = vmatprep.subr.bf16.mxu1 %v6980_v0  ;;  %v183_v7 = vld [vmem:[%s7144_s23 + $0x28] sm:$0xff] }
 0xe2e   : > { %v6759_v11 = vpop.eup %6758  ;;  %v1627_v12 = vmul.f32 %v6757_v28, %v7397_v36  ;;  %v6573_v28 = vtrunc.f32 %v183_v7  ;;  %v180_v7 = vld [vmem:[%s7144_s23 + $0x10] sm:$0xff] }
 0xe2f   : > { %v1628_v13 = vmul.f32 %v6759_v11, %v7401_v39  ;;  %v2093_v8 = vpack.c.bf16 %v180_v7, %v180_v7 }
 0xe31   : > { %v1629_v14 = vpack.c.bf16 %v1628_v13, %v1627_v12 }
 0xe32   : > { %6132 = vmatmul.mubr.msk.bf16.vlgmr.msra.gmra.mxu0 %vm364_vm4, %v1502_v10  ;;  %v6574_v10 = vcvt.f32.s32 %v6573_v28  ;;  %v5692_v28 = vld [vmem:[#allocation2 + $0x270] ss:$0 sm:$0xff] }
 0xe33   : > { %6142 = vmatpush3.bf16.msra.mxu0 %v1636_v41  ;;  %6143 = vmatprep.mubr.msk.bf16.mxu0 %vm6981_vm0, %v6980_v0 }
 0xe34   : > { %6155 = vmatprep.subr.bf16.mxu0 %v6980_v0 }
 0xe3a   : > { %6144 = vmatmul.mubr.msk.bf16.vlgmr.msra.gmra.mxu0 %vm364_vm4, %v1629_v14 }
 0xe3b   : > { %6159 = vmatprep.mubr.msk.bf16.mxu0 %vm6981_vm0, %v6980_v0 }
 0xeb5   : > { %v1291_v15 = vpop.f32.mrf.mxu0 }
 0xeb7   : > { %v6109_v16 = vpop.f32.mrf.mxu0 }
 0xeb9   : > { %v1294_v19 = vpop.f32.mrf.mxu0 }
 0xebb   : > { %v6110_v20 = vpop.f32.mrf.mxu0 }
 0xebc   : > { %v1809_v20 = vld [vmem:[#allocation2 + $0x260] sm:$0xff] }
 0xeea   : > { %v1418_v21 = vpop.f32.mrf.mxu0 }
 0xeec   : > { %v6121_v22 = vpop.f32.mrf.mxu0 }
 0xeee   : > { %v1421_v23 = vpop.f32.mrf.mxu0 }
 0xeef   : > { %v6671_v26 = vpack.i.bf16 %v1421_v23, %v1418_v21  ;;  %v1810_v21 = vld [vmem:[#allocation2 + $0x268] sm:$0xff]  ;;  %v1807_v23 = vld [vmem:[#allocation2 + $0x250] sm:$0xff] }
 0xef0   : > { %v6122_v29 = vpop.f32.mrf.mxu0  ;;  %v1813_v22 = vpack.c.bf16 %v1810_v21, %v1809_v20  ;;  %v1812_v25 = vpack.c.bf16 %v1808_v24, %v1807_v23 }
 0xef1   : > { %6672 = vrot.lane.b32.xlu1 %v6671_v26, %s6993_s3  ;;  %v1871_v26 = vld [vmem:[#allocation2 + $0x2a8] sm:$0xff] }
 0xef2   : > { %v1545_v30 = vpop.f32.mrf.mxu0  ;;  %6156 = vmatpush3.bf16.msra.mxu0 %v1813_v22  ;;  %v1877_v29 = vpack.c.bf16 %v1872_v27, %v1871_v26 }
 0xef3   : > { %6157 = vmatprep.subr.bf16.mxu0 %v6980_v0 }
 0xef4   : > { %v6133_v31 = vpop.f32.mrf.mxu0 }
 0xef6   : > { %v1548_v35 = vpop.f32.mrf.mxu0  ;;  %6158 = vmatpush3.bf16.msra.mxu0 %v1812_v25 }
 0xef7   : > { %v6676_v17 = vpack.i.bf16 %v1548_v35, %v1545_v30  ;;  %6175 = vmatprep.subr.mxu0 %v6980_v0 }
 0xef8   : > { %v6134_v36 = vpop.f32.mrf.mxu0 }
 0xef9   : > { %6677 = vrot.lane.b32.xlu0 %v6676_v17, %s6994_s5 }
 0xefa   : > { %v1672_v37 = vpop.f32.mrf.mxu0 }
 0xefc   : > { %v6145_v38 = vpop.f32.mrf.mxu0 }
 0xefe   : > { %v1675_v39 = vpop.f32.mrf.mxu0 }
 0xeff   : > { %v6681_v18 = vpack.i.bf16 %v1675_v39, %v1672_v37  ;;  %v5690_v37 = vld [vmem:[#allocation2 + $0x240] ss:$0 sm:$0xff] }
 0xf00   : > { %v6146_v40 = vpop.f32.mrf.mxu0 }
 0xf01   : > { %6682 = vrot.lane.b32.xlu1 %v6681_v18, %s6995_s7  ;;  %v5691_v40 = vld [vmem:[#allocation2 + $0x248] ss:$0 sm:$0xff] }
 0xf63   : > { %v6673_v42 = vpop.permute.xlu1 %6672 }
 0xf64   : > { %v6675_v44 = vunpack.i.h.bf16 %v6673_v42  ;;  %v6674_v45 = vunpack.i.l.bf16 %v6673_v42 }
 0xf66   : > { %v1704_v49 = vsel %vm199_vm2, %v1294_v19, %v6675_v44  ;;  %v1703_v50 = vsel %vm199_vm2, %v1291_v15, %v6674_v45 }
 0xf6b   : > { %v6678_v43 = vpop.permute.xlu0 %6677 }
 0xf6c   : > { %v6680_v46 = vunpack.i.h.bf16 %v6678_v43  ;;  %v6679_v47 = vunpack.i.l.bf16 %v6678_v43  ;;  %v2009_v43 = vlaneseq }
 0xf6e   : > { %v1706_v53 = vsel %vm846_vm7, %v1704_v49, %v6680_v46  ;;  %v1705_v9 = vsel %vm846_vm7, %v1703_v50, %v6679_v47  ;;  %v2018_v47 = vld [vmem:[#allocation2 + $0x18] sm:$0xff]  ;;  %v2095_v50 = vld [vmem:[#allocation2 + $0x28] sm:$0xff] }
 0xf73   : > { %v6683_v48 = vpop.permute.xlu1 %6682 }
 0xf74   : > { %v6685_v51 = vunpack.i.h.bf16 %v6683_v48  ;;  %v6684_v52 = vunpack.i.l.bf16 %v6683_v48  ;;  %v7465_v48 = vand.u32 127, %v2009_v43 }
 0xf76   : > { %v1708_v54 = vsel %vm849_vm8, %v1706_v53, %v6685_v51  ;;  %v1707_v55 = vsel %vm849_vm8, %v1705_v9, %v6684_v52  ;;  %v2017_v51 = vld [vmem:[#allocation2 + $0x10] sm:$0xff]  ;;  %v2097_v52 = vpack.c.bf16 %v2095_v50, %v2095_v50 }
 0xf77   : > { %v1713_v56 = vpack.c.bf16 %v1708_v54, %v1707_v55  ;;  %v1869_v54 = vld [vmem:[#allocation2 + $0x298] sm:$0xff]  ;;  %v1870_v55 = vld [vmem:[#allocation2 + $0x2a0] sm:$0xff] }
 0xf78   : > { %v2102_v9 = vsel %vm203_vm1, %v2097_v52, 0 }
 0xf79   : > { %6152 = vmatmul.mubr.msk.bf16.vlgmr.msra.gmra.mxu1 %vm260_vm3, %v1713_v56  ;;  %v1876_v56 = vpack.c.bf16 %v1870_v55, %v1869_v54  ;;  %v2308_v55 = vld [vmem:[#allocation2 + $0x2d0] sm:$0xff] }
 0xf7a   : > { %6171 = vmatprep.mubr.msk.bf16.mxu1 %vm6981_vm0, %v6980_v0  ;;  %6164 = vmatpush3.bf16.msra.mxu1 %v1877_v29 }
 0xf7b   : > { %6165 = vmatprep.subr.bf16.mxu1 %v6980_v0 }
 0xf7e   : > { %6166 = vmatpush3.bf16.msra.mxu1 %v1876_v56  ;;  %v2309_v56 = vld [vmem:[#allocation2 + $0x2d8] sm:$0xff] }
 0xf7f   : > { %6167 = vmatprep.subr.bf16.mxu1 %v6980_v0 }
0x1039   : > { %v1758_v58 = vpop.f32.mrf.mxu1 }
0x103a   : > { %v1759_v59 = vadd.f32 %v5688_v57, %v1758_v58 }
0x103b   : > { %v6153_v60 = vpop.f32.mrf.mxu1 }
0x103c   : > { %v1765_v61 = vadd.f32 %v1759_v59, %v7324_v62  ;;  %v1867_v59 = vld [vmem:[#allocation2 + $0x288] sm:$0xff]  ;;  %v1868_v60 = vld [vmem:[#allocation2 + $0x290] sm:$0xff] }
0x103d   : > { %v1761_v1 = vpop.f32.mrf.mxu1 }
0x103e   : > { %v1762_v2 = vadd.f32 %v5688_v57, %v1761_v1  ;;  %v1767_v3 = vsel %vm260_vm3, %v1765_v61, 0.0  ;;  %v181_v57 = vld [vmem:[%s7144_s23 + $0x18] sm:$0xff]  ;;  %v2092_v1 = vld [vmem:[#allocation2 + $0x20] sm:$0xff] }
0x103f   : > { %1768 = vadd.xlane.f32.xlu0 %v1767_v3  ;;  %v6154_v4 = vpop.f32.mrf.mxu1  ;;  %v2096_v58 = vpack.c.bf16 %v181_v57, %v181_v57  ;;  %v2314_v57 = vpack.c.bf16 %v2309_v56, %v2308_v55 }
0x1040   : > { %v1766_v5 = vadd.f32 %v1762_v2, %v7326_v63  ;;  %v2094_v2 = vpack.c.bf16 %v2092_v1, %v2092_v1  ;;  %v1865_v4 = vld [vmem:[#allocation2 + $0x278] sm:$0xff] }
0x1042   : > { %v1770_v6 = vsel %vm913_vm9, %v1766_v5, 0.0  ;;  %v2148_v3 = vsel %vm203_vm1, %v2094_v2, 0 }
0x1043   : > { %1771 = vadd.xlane.f32.xlu1 %v1770_v6 }
0x1054   : > { %2012 = vperm.xlu1 %6686, %v6574_v10  }
0x10c8   : > { %v1769_v11 = vpop.xlane.xlu0 %1768 }
0x10c9   : > { %v1773_v62 = vmul.f32 0.03125, %v1769_v11 }
0x10cb   : > { %v1775_v41 = vsub.f32 %v1765_v61, %v1773_v62  ;;  %v1875_v61 = vpack.c.bf16 %v1868_v60, %v1867_v59  ;;  %v2190_v62 = vld [vmem:[#allocation2 + $0x30] sm:$0xff] }
0x10cc   : > { %v1772_v12 = vpop.xlane.xlu1 %1771 }
0x10cd   : > { %v1774_v13 = vmul.f32 0.03125, %v1772_v12  ;;  %v1777_v14 = vmul.f32 %v1775_v41, %v1775_v41  ;;  %6168 = vmatpush3.bf16.msra.mxu1 %v1875_v61 }
0x10ce   : > { %6169 = vmatprep.subr.bf16.mxu1 %v6980_v0 }
0x10cf   : > { %v1776_v15 = vsub.f32 %v1766_v5, %v1774_v13  ;;  %v1779_v16 = vsel %vm260_vm3, %v1777_v14, 0.0  ;;  %v1866_v5 = vld [vmem:[#allocation2 + $0x280] sm:$0xff]  ;;  %v2192_v14 = vpack.c.bf16 %v2190_v62, %v2190_v62 }
0x10d0   : > { %1780 = vadd.xlane.f32.xlu0 %v1779_v16  ;;  %v2013_v49 = vpop.permute.xlu1 %2012  ;;  %v1874_v6 = vpack.c.bf16 %v1866_v5, %v1865_v4  ;;  %v5709_v4 = vld [vmem:[#allocation2 + $0x2f0] ss:$0 sm:$0xff] }
0x10d1   : > { %v1778_v63 = vmul.f32 %v1776_v15, %v1776_v15  ;;  %vm2014_vm11 = vcmp.eq.s32.totalorder %v2013_v49, %v7465_v48  ;;  %v2197_v21 = vsel %vm203_vm1, %v2192_v14, 0 }
0x10d2   : > { %v5700_v53 = vsel %vm2014_vm11, 1.0, %v6980_v0  ;;  %6170 = vmatpush3.bf16.msra.mxu1 %v1874_v6 }
0x10d3   : > { %v1782_v19 = vsel %vm913_vm9, %v1778_v63, 0.0  ;;  %6194 = vmatprep.subr.bf16.mxu1 %v6980_v0 }
0x10d4   : > { %1783 = vadd.xlane.f32.xlu0 %v1782_v19 }
0x1159   : > { %v1781_v30 = vpop.xlane.xlu0 %1780 }
0x115a   : > { %v1785_v31 = vmul.f32 0.03125, %v1781_v30 }
0x115c   : > { %v1787_v32 = vadd.f32 1e-05, %v1785_v31 }
0x115d   : > { %v1784_v33 = vpop.xlane.xlu0 %1783 }
0x115e   : > { %6760 = vrsqrt.f32 %v1787_v32  ;;  %v1786_v34 = vmul.f32 0.03125, %v1784_v33 }
0x1160   : > { %v1788_v35 = vadd.f32 1e-05, %v1786_v34  ;;  %v2247_v34 = vld [vmem:[#allocation2 + $0x40] sm:$0xff] }
0x1162   : > { %6762 = vrsqrt.f32 %v1788_v35  ;;  %v2248_v35 = vld [vmem:[#allocation2 + $0x48] sm:$0xff] }
0x116b   : > { %v6761_v17 = vpop.eup %6760 }
0x116c   : > { %v1791_v36 = vmul.f32 %v6761_v17, %v1775_v41  ;;  %v2250_v17 = vpack.c.bf16 %v2248_v35, %v2247_v34 }
0x116e   : > { %v1798_v18 = vmul.f32 %v5690_v37, %v1791_v36  ;;  %v2310_v36 = vld [vmem:[#allocation2 + $0x2e0] sm:$0xff] }
0x116f   : > { %v6763_v38 = vpop.eup %6762 }
0x1170   : > { %v1792_v39 = vmul.f32 %v6763_v38, %v1776_v15  ;;  %v7458_v44 = vadd.f32 %v5691_v40, %v1798_v18 }
0x1172   : > { %v1799_v42 = vmul.f32 %v5690_v37, %v1792_v39  ;;  %v2311_v37 = vld [vmem:[#allocation2 + $0x2e8] sm:$0xff] }
0x1173   : > { %v2315_v38 = vpack.c.bf16 %v2311_v37, %v2310_v36 }
0x1174   : > { %v7460_v45 = vadd.f32 %v5691_v40, %v1799_v42 }
0x1176   : > { %v1811_v46 = vpack.c.bf16 %v7460_v45, %v7458_v44 }
0x1178   : > { %6160 = vmatmul.mubr.msk.bf16.vlgmr.msra.gmra.mxu0 %vm260_vm3, %v1811_v46 }
0x1179   : > { %6176 = vmatpush3.msra.mxu0 %v2018_v47  ;;  %6179 = vmatprep.mubr.msk.f32.mxu0 %vm6981_vm0, %v6980_v0  ;;  %v5705_v47 = vld [vmem:[#allocation2 + $0x38] ss:$0 sm:$0xff] }
0x117a   : > { %6177 = vmatprep.subr.mxu0 %v6980_v0 }
0x117b   : > { %6178 = vmatpush3.msra.mxu0 %v2017_v51 }
0x117c   : > { %6182 = vmatprep.subr.bf16.mxu0 %v6980_v0 }
0x1180   : > { %6180 = vmatmul.mubr.msk.f32.vlgmr.msra.gmra.mxu0 %vm846_vm7, %v5700_v53 }
0x1181   : > { %6183 = vmatpush3.bf16.msra.mxu0 %v2102_v9  ;;  %6184 = vmatprep.mubr.msk.bf16.mxu0 %vm6981_vm0, %v6980_v0 }
0x1182   : > { %6188 = vmatprep.subr.bf16.mxu0 %v6980_v0 }
0x1184   : > { %6185 = vmatmul.mubr.msk.bf16.vlgmr.msra.gmra.mxu0 %vm199_vm2, %v2096_v58  ;;  %v5706_v58 = vld [vmem:[#allocation2 + $0x50] ss:$0 sm:$0xff] }
0x1185   : > { %6190 = vmatprep.mubr.msk.bf16.mxu0 %vm6981_vm0, %v6980_v0  ;;  %6189 = vmatpush3.bf16.msra.mxu0 %v2148_v3 }
0x1186   : > { %6200 = vmatprep.subr.bf16.mxu0 %v6980_v0 }
0x118c   : > { %6191 = vmatmul.mubr.msk.bf16.vlgmr.msra.gmra.mxu0 %vm199_vm2, %v2093_v8 }
0x118d   : > { %6202 = vmatprep.mubr.msk.bf16.mxu0 %vm6981_vm0, %v6980_v0  ;;  %6201 = vmatpush3.bf16.msra.mxu0 %v2250_v17 }
0x118e   : > { %6214 = vmatprep.subr.bf16.mxu0 %v6980_v0 }
0x1238   : > { %v1856_v10 = vpop.f32.mrf.mxu0 }
0x1239   : > { %v1857_v41 = vadd.f32 %v5692_v28, %v1856_v10 }
0x123a   : > { %v6161_v11 = vpop.f32.mrf.mxu0 }
0x123b   : > { %v1863_v16 = vmax.f32 %v1857_v41, 0.0 }
0x123c   : > { %v1859_v12 = vpop.f32.mrf.mxu0 }
0x123d   : > { %v1860_v13 = vadd.f32 %v5692_v28, %v1859_v12 }
0x123e   : > { %v6162_v15 = vpop.f32.mrf.mxu0 }
0x123f   : > { %v1864_v63 = vmax.f32 %v1860_v13, 0.0 }
0x1240   : > { %v2088_v19 = vpop.f32.mrf.mxu0 }
0x1241   : > { %v1873_v20 = vpack.c.bf16 %v1864_v63, %v1863_v16  ;;  %v2191_v23 = vpack.c.bf16 %v2088_v19, %v2088_v19 }
0x1242   : > { %v6181_v22 = vpop.f32.mrf.mxu0 }
0x1243   : > { %6172 = vmatmul.mubr.msk.bf16.vlgmr.msra.gmra.mxu1 %vm1028_vm10, %v1873_v20  ;;  %v5708_v22 = vld [vmem:[%s7144_s23 + $0x48] ss:$0 sm:$0xff] }
0x1244   : > { %6195 = vmatpush3.bf16.msra.mxu1 %v2197_v21  ;;  %6196 = vmatprep.mubr.msk.bf16.mxu1 %vm6981_vm0, %v6980_v0  ;;  %v2138_v24 = vpop.f32.mrf.mxu0  ;;  %v2300_v21 = vshrl.u32 %v2009_v43, 7 }
0x1245   : > { %6206 = vmatprep.subr.bf16.mxu1 %v6980_v0 }
0x1246   : > { %v6186_v25 = vpop.f32.mrf.mxu0  ;;  %vm2301_vm12 = vcmp.le.s32.totalorder %v7465_v48, %v2300_v21 }
0x1248   : > { %v2141_v26 = vpop.f32.mrf.mxu0 }
0x124a   : > { %v6187_v27 = vpop.f32.mrf.mxu0 }
0x124b   : > { %6197 = vmatmul.mubr.msk.bf16.vlgmr.msra.gmra.mxu1 %vm199_vm2, %v2191_v23  ;;  %v6997_v23 = vmov -1e+30  }
0x124c   : > { %6210 = vmatprep.mubr.msk.bf16.mxu1 %vm6981_vm0, %v6980_v0  ;;  %v2184_v29 = vpop.f32.mrf.mxu0  ;;  %6207 = vmatpush3.bf16.msra.mxu1 %v2315_v38 }
0x124d   : > { %v2185_v30 = vadd.f32 %v2184_v29, %v2138_v24  ;;  %6208 = vmatprep.subr.bf16.mxu1 %v6980_v0  ;;  %v2302_v24 = vsel %vm2301_vm12, 0.0, %v6997_v23 }
0x124e   : > { %v6192_v31 = vpop.f32.mrf.mxu0  ;;  %v7557_v25 = vadd.f32 %v5708_v22, %v2302_v24 }
0x1250   : > { %v2187_v32 = vpop.f32.mrf.mxu0  ;;  %6209 = vmatpush3.bf16.msra.mxu1 %v2314_v57 }
0x1251   : > { %6220 = vmatprep.subr.bf16.mxu1 %v6980_v0 }
0x1252   : > { %v6193_v33 = vpop.f32.mrf.mxu0 }
0x1303   : > { %v7502_v39 = vpop.f32.mrf.mxu1 }
0x1305   : > { %v6173_v18 = vpop.f32.mrf.mxu1 }
0x1307   : > { %v7504_v40 = vpop.f32.mrf.mxu1 }
0x1309   : > { %v6174_v42 = vpop.f32.mrf.mxu1 }
0x130b   : > { %v2233_v46 = vpop.f32.mrf.mxu1 }
0x130c   : > { %v2239_v49 = vadd.f32 %v2233_v46, %v2185_v30 }
0x130d   : > { %v6198_v50 = vpop.f32.mrf.mxu1 }
0x130e   : > { %v2245_v51 = vadd.f32 %v5705_v47, %v2239_v49 }
0x130f   : > { %v2236_v52 = vpop.f32.mrf.mxu1 }
0x1310   : > { %v2246_v53 = vmax.f32 %v2245_v51, 0.0 }
0x1311   : > { %v6199_v9 = vpop.f32.mrf.mxu1 }
0x1312   : > { %v2249_v54 = vpack.c.bf16 %v2246_v53, %v2246_v53 }
0x1314   : > { %6203 = vmatmul.mubr.msk.bf16.vlgmr.msra.gmra.mxu0 %vm846_vm7, %v2249_v54 }
0x1315   : > { %6216 = vmatprep.mubr.msk.bf16.mxu0 %vm6981_vm0, %v6980_v0 }
0x13d4   : > { %v2293_v59 = vpop.f32.mrf.mxu0 }
0x13d5   : > { %v7510_v60 = vadd.f32 %v5706_v58, %v2293_v59 }
0x13d6   : > { %v6204_v61 = vpop.f32.mrf.mxu0 }
0x13d7   : > { %v2313_v1 = vpack.c.bf16 %v7510_v60, %v7510_v60 }
0x13d8   : > { %v2296_v2 = vpop.f32.mrf.mxu0 }
0x13d9   : > { %6211 = vmatmul.mubr.msk.bf16.vlgmr.msra.gmra.mxu1 %vm260_vm3, %v2313_v1 }
0x13da   : > { %v6205_v3 = vpop.f32.mrf.mxu0  ;;  %6222 = vmatprep.mubr.msk.bf16.mxu1 %vm6981_vm0, %v6980_v0 }
0x1499   : > { %v2357_v5 = vpop.f32.mrf.mxu1 }
0x149a   : > { %v2358_v6 = vadd.f32 %v5709_v4, %v2357_v5 }
0x149b   : > { %v6212_v7 = vpop.f32.mrf.mxu1 }
0x149c   : > { %v7517_v8 = vpack.c.bf16 %v2358_v6, %v2358_v6 }
0x149d   : > { %v2360_v28 = vpop.f32.mrf.mxu1 }
0x149e   : > { %2477 = vrot.lane.b32.xlu1 %v7517_v8, %s6985_s26  ;;  %2365 = vrot.lane.b32.xlu0 %v7517_v8, %s6983_s17 }
0x149f   : > { %v6213_v10 = vpop.f32.mrf.mxu1 }
0x14a2   : > { %2475 = vrot.lane.b32.xlu1 %v7517_v8, %s6982_s15  ;;  %2589 = vrot.lane.b32.xlu0 %v7517_v8, %s6984_s25 }
0x14a6   : > { %2587 = vrot.lane.b32.xlu1 %v7517_v8, %s6987_s19  ;;  %2701 = vrot.lane.b32.xlu0 %v7517_v8, %s6986_s14 }
0x14aa   : > { %2699 = vrot.lane.b32.xlu1 %v7517_v8, %s6988_s20 }
0x1510   : > { %v2366_v11 = vpop.permute.xlu0 %2365  ;;  %v2478_v41 = vpop.permute.xlu1 %2477 }
0x1511   : > { %v2371_v62 = vsel %vm199_vm2, %v2366_v11, 0  ;;  %v2483_v12 = vsel %vm199_vm2, %v2478_v41, 0 }
0x1512   : > { %6215 = vmatpush3.bf16.xpose.msra.mxu0 %v2371_v62 }
0x1513   : > { %6226 = vmatprep.subr.bf16.mxu0 %v6980_v0 }
0x1514   : > { %v2590_v13 = vpop.permute.xlu0 %2589  ;;  %v2476_v14 = vpop.permute.xlu1 %2475 }
0x1515   : > { %v2595_v15 = vsel %vm199_vm2, %v2590_v13, 0 }
0x1518   : > { %v2702_v16 = vpop.permute.xlu0 %2701  ;;  %v2588_v63 = vpop.permute.xlu1 %2587 }
0x1519   : > { %6217 = vmatmul.mubr.msk.bf16.vlgmr.msra.gmra.mxu0 %vm199_vm2, %v7517_v8  ;;  %v2707_v19 = vsel %vm199_vm2, %v2702_v16, 0 }
0x151a   : > { %6227 = vmatpush3.bf16.xpose.msra.mxu0 %v2483_v12  ;;  %6228 = vmatprep.mubr.msk.bf16.mxu0 %vm6981_vm0, %v6980_v0 }
0x151b   : > { %6238 = vmatprep.subr.bf16.mxu0 %v6980_v0 }
0x151c   : > { %v2700_v20 = vpop.permute.xlu1 %2699 }
0x1521   : > { %6229 = vmatmul.mubr.msk.bf16.vlgmr.msra.gmra.mxu0 %vm199_vm2, %v2476_v14 }
0x1522   : > { %6239 = vmatpush3.bf16.xpose.msra.mxu0 %v2595_v15  ;;  %6240 = vmatprep.mubr.msk.bf16.mxu0 %vm6981_vm0, %v6980_v0 }
0x1523   : > { %6250 = vmatprep.subr.bf16.mxu0 %v6980_v0 }
0x1529   : > { %6241 = vmatmul.mubr.msk.bf16.vlgmr.msra.gmra.mxu0 %vm199_vm2, %v2588_v63 }
0x152a   : > { %6251 = vmatpush3.bf16.xpose.msra.mxu0 %v2707_v19  ;;  %6252 = vmatprep.mubr.msk.bf16.mxu0 %vm6981_vm0, %v6980_v0 }
0x152b   : > { %6262 = vmatprep.subr.bf16.mxu0 %v6980_v0 }
0x1531   : > { %6253 = vmatmul.mubr.msk.bf16.vlgmr.msra.gmra.mxu0 %vm199_vm2, %v2700_v20 }
0x1532   : > { %6266 = vmatprep.mubr.msk.bf16.mxu0 %vm6981_vm0, %v6980_v0 }
0x15d9   : > { %v2407_v26 = vpop.f32.mrf.mxu0 }
0x15da   : > { %v2413_v27 = vmul.f32 0.35355338, %v2407_v26 }
0x15db   : > { %v6218_v29 = vpop.f32.mrf.mxu0 }
0x15dc   : > { %v2414_v30 = vadd.f32 %v2413_v27, %v7557_v25 }
0x15dd   : > { %v2410_v31 = vpop.f32.mrf.mxu0 }
0x15de   : > { %v2415_v32 = vsel %vm199_vm2, %v2414_v30, -inf }
0x15df   : > { %2416 = vmax.xlane.f32.xlu0 %v2415_v32  ;;  %v6219_v33 = vpop.f32.mrf.mxu0 }
0x15e1   : > { %v2519_v34 = vpop.f32.mrf.mxu0 }
0x15e2   : > { %v2525_v35 = vmul.f32 0.35355338, %v2519_v34 }
0x15e3   : > { %v6230_v43 = vpop.f32.mrf.mxu0 }
0x15e4   : > { %v2526_v17 = vadd.f32 %v2525_v35, %v7557_v25 }
0x15e5   : > { %v2522_v36 = vpop.f32.mrf.mxu0 }
0x15e6   : > { %v2527_v37 = vsel %vm199_vm2, %v2526_v17, -inf }
0x15e7   : > { %2528 = vmax.xlane.f32.xlu1 %v2527_v37  ;;  %v6231_v38 = vpop.f32.mrf.mxu0 }
0x15e9   : > { %v2631_v18 = vpop.f32.mrf.mxu0 }
0x15ea   : > { %v2637_v42 = vmul.f32 0.35355338, %v2631_v18 }
0x15eb   : > { %v6242_v46 = vpop.f32.mrf.mxu0 }
0x15ec   : > { %v2638_v47 = vadd.f32 %v2637_v42, %v7557_v25 }
0x15ed   : > { %v2634_v49 = vpop.f32.mrf.mxu0 }
0x15ee   : > { %v2639_v50 = vsel %vm199_vm2, %v2638_v47, -inf }
0x15ef   : > { %2640 = vmax.xlane.f32.xlu0 %v2639_v50  ;;  %v6243_v51 = vpop.f32.mrf.mxu0 }
0x15f1   : > { %v2743_v52 = vpop.f32.mrf.mxu0 }
0x15f2   : > { %v2749_v53 = vmul.f32 0.35355338, %v2743_v52 }
0x15f3   : > { %v6254_v9 = vpop.f32.mrf.mxu0 }
0x15f4   : > { %v2750_v54 = vadd.f32 %v2749_v53, %v7557_v25 }
0x15f5   : > { %v2746_v55 = vpop.f32.mrf.mxu0 }
0x15f6   : > { %v2751_v56 = vsel %vm199_vm2, %v2750_v54, -inf  ;;  %v2829_v55 = vld [vmem:[#allocation2 + $0x310] sm:$0xff] }
0x15f7   : > { %2752 = vmax.xlane.f32.xlu0 %v2751_v56  ;;  %v6255_v57 = vpop.f32.mrf.mxu0 }
0x15f8   : > { %v2826_v57 = vld [vmem:[#allocation2 + $0x2f8] sm:$0xff] }
0x1668   : > { %v2417_v58 = vpop.xlane.xlu0 %2416 }
0x1669   : > { %v2418_v59 = vsub.f32 %v2414_v30, %v2417_v58  ;;  %v2827_v58 = vld [vmem:[#allocation2 + $0x300] sm:$0xff] }
0x166b   : > { %v2419_v61 = vmul.f32 1.442695, %v2418_v59  ;;  %v2831_v59 = vpack.c.bf16 %v2827_v58, %v2826_v57  ;;  %v2909_v58 = vld [vmem:[#allocation2 + $0x330] sm:$0xff] }
0x166d   : > { %6764 = vpow2.f32 %v2419_v61 }
0x1670   : > { %v2529_v1 = vpop.xlane.xlu1 %2528 }
0x1671   : > { %v2530_v2 = vsub.f32 %v2526_v17, %v2529_v1 }
0x1673   : > { %v2531_v3 = vmul.f32 1.442695, %v2530_v2 }
0x1675   : > { %6766 = vpow2.f32 %v2531_v3 }
0x1678   : > { %v2641_v6 = vpop.xlane.xlu0 %2640 }
0x1679   : > { %v2642_v13 = vsub.f32 %v2638_v47, %v2641_v6 }
0x167a   : > { %v6765_v4 = vpop.eup %6764 }
0x167b   : > { %v2421_v5 = vsel %vm199_vm2, %v6765_v4, 0.0  ;;  %v2643_v14 = vmul.f32 1.442695, %v2642_v13 }
0x167c   : > { %2422 = vadd.xlane.f32.xlu1 %v2421_v5 }
0x1680   : > { %v2753_v7 = vpop.xlane.xlu0 %2752 }
0x1681   : > { %v2754_v28 = vsub.f32 %v2750_v54, %v2753_v7  ;;  %v2828_v54 = vld [vmem:[#allocation2 + $0x308] sm:$0xff] }
0x1682   : > { %v6767_v10 = vpop.eup %6766  ;;  %v2832_v56 = vpack.c.bf16 %v2829_v55, %v2828_v54 }
0x1683   : > { %v2755_v11 = vmul.f32 1.442695, %v2754_v28  ;;  %v2533_v62 = vsel %vm199_vm2, %v6767_v10, 0.0  ;;  %v5694_v28 = vld [vmem:[#allocation2 + $0x2b8] ss:$0 sm:$0xff] }
0x1684   : > { %2534 = vadd.xlane.f32.xlu0 %v2533_v62  ;;  %6263 = vmatpush3.bf16.msra.mxu0 %v2832_v56 }
0x1685   : > { %6768 = vpow2.f32 %v2755_v11  ;;  %6264 = vmatprep.subr.bf16.mxu0 %v6980_v0  ;;  %v1924_v11 = vadd.f32 %v5694_v28, %v7504_v40 }
0x1686   : > { %6770 = vpow2.f32 %v2643_v14 }
0x1688   : > { %6265 = vmatpush3.bf16.msra.mxu0 %v2831_v59  ;;  %v2910_v59 = vld [vmem:[#allocation2 + $0x338] sm:$0xff] }
0x1689   : > { %6278 = vmatprep.subr.bf16.mxu0 %v6980_v0 }
0x168d   : > { %2427 = vrot.lane.b32.xlu1 %v7517_v8, %s6990_s27 }
0x1692   : > { %v6769_v41 = vpop.eup %6768 }
0x1693   : > { %v2757_v12 = vsel %vm199_vm2, %v6769_v41, 0.0  ;;  %v6771_v15 = vpop.eup %6770 }
0x1694   : > { %2758 = vadd.xlane.f32.xlu0 %v2757_v12  ;;  %v2645_v16 = vsel %vm199_vm2, %v6771_v15, 0.0 }
0x16aa   : > { %2539 = vrot.lane.b32.xlu0 %v7517_v8, %s6989_s24 }
0x16b1   : > { %2646 = vadd.xlane.f32.xlu1 %v2645_v16 }
0x16c2   : > { %2651 = vrot.lane.b32.xlu1 %v7517_v8, %s6991_s28 }
0x16c6   : > { %2763 = vrot.lane.b32.xlu1 %v7517_v8, %s6992_s4 }
0x1705   : > { %v2423_v63 = vpop.xlane.xlu1 %2422 }
0x1706   : > { %6772 = vrcp.f32 %v2423_v63 }
0x1709   : > { %v2428_v19 = vpop.permute.xlu1 %2427 }
0x170a   : > { %v2433_v20 = vsel %vm203_vm1, %v2428_v19, 0 }
0x170b   : > { %6221 = vmatpush3.bf16.msra.mxu1 %v2433_v20 }
0x170c   : > { %6232 = vmatprep.subr.bf16.mxu1 %v6980_v0 }
0x170d   : > { %v2535_v21 = vpop.xlane.xlu0 %2534 }
0x170e   : > { %6774 = vrcp.f32 %v2535_v21 }
0x1713   : > { %v6773_v22 = vpop.eup %6772 }
0x1714   : > { %v2425_v23 = vmul.f32 %v6773_v22, %v6765_v4 }
0x1716   : > { %v2426_v24 = vpack.c.bf16 %v2425_v23, %v2425_v23 }
0x1718   : > { %6223 = vmatmul.mubr.msk.bf16.vlgmr.msra.gmra.mxu1 %vm199_vm2, %v2426_v24 }
0x1719   : > { %6234 = vmatprep.mubr.msk.bf16.mxu1 %vm6981_vm0, %v6980_v0 }
0x171b   : > { %v6775_v26 = vpop.eup %6774 }
0x171c   : > { %v2537_v27 = vmul.f32 %v6775_v26, %v6767_v10  ;;  %v1921_v10 = vadd.f32 %v5694_v28, %v7502_v39 }
0x171d   : > { %v2759_v8 = vpop.xlane.xlu0 %2758 }
0x171e   : > { %v2538_v31 = vpack.c.bf16 %v2537_v27, %v2537_v27  ;;  %v1927_v62 = vadd.f32 %v1921_v10, %v7458_v44 }
0x1720   : > { %v1929_v12 = vsel %vm260_vm3, %v1927_v62, 0.0 }
0x1721   : > { %v2540_v29 = vpop.permute.xlu0 %2539 }
0x1722   : > { %v2545_v30 = vsel %vm203_vm1, %v2540_v29, 0 }
0x1723   : > { %6233 = vmatpush3.bf16.msra.mxu1 %v2545_v30 }
0x1724   : > { %6244 = vmatprep.subr.bf16.mxu1 %v6980_v0 }
0x1726   : > { %6235 = vmatmul.mubr.msk.bf16.vlgmr.msra.gmra.mxu1 %vm199_vm2, %v2538_v31 }
0x1727   : > { %6246 = vmatprep.mubr.msk.bf16.mxu1 %vm6981_vm0, %v6980_v0 }
0x173a   : > { %v2647_v32 = vpop.xlane.xlu1 %2646 }
0x173b   : > { %6776 = vrcp.f32 %v2647_v32 }
0x173c   : > { %6778 = vrcp.f32 %v2759_v8 }
0x173e   : > { %v2652_v33 = vpop.permute.xlu1 %2651 }
0x173f   : > { %v2657_v34 = vsel %vm203_vm1, %v2652_v33, 0 }
0x1740   : > { %6245 = vmatpush3.bf16.msra.mxu1 %v2657_v34 }
0x1741   : > { %6256 = vmatprep.subr.bf16.mxu1 %v6980_v0 }
0x1742   : > { %v2764_v17 = vpop.permute.xlu1 %2763 }
0x1743   : > { %v2769_v38 = vsel %vm203_vm1, %v2764_v17, 0 }
0x1748   : > { %v6777_v35 = vpop.eup %6776 }
0x1749   : > { %v2649_v43 = vmul.f32 %v6777_v35, %v6771_v15  ;;  %v6779_v37 = vpop.eup %6778 }
0x174a   : > { %v2761_v18 = vmul.f32 %v6779_v37, %v6769_v41  ;;  %v1928_v41 = vadd.f32 %v1924_v11, %v7460_v45 }
0x174b   : > { %v2650_v36 = vpack.c.bf16 %v2649_v43, %v2649_v43 }
0x174c   : > { %v2762_v42 = vpack.c.bf16 %v2761_v18, %v2761_v18  ;;  %v1932_v13 = vsel %vm913_vm9, %v1928_v41, 0.0  ;;  %v5696_v18 = vld [vmem:[#allocation2 + $0x2c0] ss:$0 sm:$0xff] }
0x174d   : > { %6247 = vmatmul.mubr.msk.bf16.vlgmr.msra.gmra.mxu1 %vm199_vm2, %v2650_v36 }
0x174e   : > { %6257 = vmatpush3.bf16.msra.mxu1 %v2769_v38  ;;  %6258 = vmatprep.mubr.msk.bf16.mxu1 %vm6981_vm0, %v6980_v0  ;;  %v5719_v38 = vld [vmem:[#allocation2 + $0x318] ss:$0 sm:$0xff] }
0x174f   : > { %6270 = vmatprep.subr.bf16.mxu1 %v6980_v0 }
0x1755   : > { %6259 = vmatmul.mubr.msk.bf16.vlgmr.msra.gmra.mxu1 %vm199_vm2, %v2762_v42 }
0x1756   : > { %6274 = vmatprep.mubr.msk.bf16.mxu1 %vm6981_vm0, %v6980_v0 }
0x17d8   : > { %v2469_v46 = vpop.f32.mrf.mxu1 }
0x17da   : > { %v6224_v47 = vpop.f32.mrf.mxu1 }
0x17dc   : > { %v2472_v49 = vpop.f32.mrf.mxu1 }
0x17de   : > { %v6225_v50 = vpop.f32.mrf.mxu1 }
0x17e6   : > { %v2581_v51 = vpop.f32.mrf.mxu1 }
0x17e7   : > { %2812 = vrot.lane.b32.xlu0 %v2581_v51, %s6993_s3 }
0x17e8   : > { %v6236_v52 = vpop.f32.mrf.mxu1 }
0x17ea   : > { %v2584_v53 = vpop.f32.mrf.mxu1 }
0x17ec   : > { %v6237_v9 = vpop.f32.mrf.mxu1 }
0x180d   : > { %v2693_v61 = vpop.f32.mrf.mxu1 }
0x180e   : > { %2816 = vrot.lane.b32.xlu1 %v2693_v61, %s6994_s5  ;;  %v2914_v61 = vpack.c.bf16 %v2910_v59, %v2909_v58 }
0x180f   : > { %v6248_v1 = vpop.f32.mrf.mxu1 }
0x1810   : > { %6271 = vmatpush3.bf16.msra.mxu1 %v2914_v61  ;;  %v2907_v1 = vld [vmem:[#allocation2 + $0x320] sm:$0xff] }
0x1811   : > { %v2696_v2 = vpop.f32.mrf.mxu1  ;;  %6272 = vmatprep.subr.bf16.mxu1 %v6980_v0 }
0x1812   : > { %v2908_v2 = vld [vmem:[#allocation2 + $0x328] sm:$0xff] }
0x1813   : > { %v6249_v3 = vpop.f32.mrf.mxu1 }
0x1814   : > { %v2913_v3 = vpack.c.bf16 %v2908_v2, %v2907_v1 }
0x1815   : > { %v2805_v4 = vpop.f32.mrf.mxu1 }
0x1816   : > { %2820 = vrot.lane.b32.xlu0 %v2805_v4, %s6995_s7  ;;  %6273 = vmatpush3.bf16.msra.mxu1 %v2913_v3 }
0x1817   : > { %v6260_v5 = vpop.f32.mrf.mxu1  ;;  %6286 = vmatprep.subr.bf16.mxu1 %v6980_v0 }
0x1819   : > { %v2808_v6 = vpop.f32.mrf.mxu1 }
0x181b   : > { %v6261_v7 = vpop.f32.mrf.mxu1 }
0x1832   : > { %1930 = vadd.xlane.f32.xlu1 %v1929_v12 }
0x1835   : > { %1933 = vadd.xlane.f32.xlu0 %v1932_v13 }
0x1859   : > { %v2813_v14 = vpop.permute.xlu0 %2812 }
0x185a   : > { %v2823_v16 = vsel %vm199_vm2, %v2469_v46, %v2813_v14  ;;  %v5697_v46 = vld [vmem:[#allocation2 + $0x2c8] ss:$0 sm:$0xff] }
0x1880   : > { %v2817_v15 = vpop.permute.xlu1 %2816 }
0x1881   : > { %v2824_v63 = vsel %vm846_vm7, %v2823_v16, %v2817_v15 }
0x1888   : > { %v2821_v19 = vpop.permute.xlu0 %2820 }
0x1889   : > { %v2825_v39 = vsel %vm849_vm8, %v2824_v63, %v2821_v19  ;;  %v5723_v63 = vld [vmem:[#allocation2 + $0x340] ss:$0 sm:$0xff] }
0x188a   : > { %v2830_v40 = vpack.c.bf16 %v2825_v39, %v2825_v39 }
0x188c   : > { %6267 = vmatmul.mubr.msk.bf16.vlgmr.msra.gmra.mxu0 %vm260_vm3, %v2830_v40 }
0x188d   : > { %6282 = vmatprep.mubr.msk.bf16.mxu0 %vm6981_vm0, %v6980_v0 }
0x18bb   : > { %v1931_v44 = vpop.xlane.xlu1 %1930 }
0x18bc   : > { %v1935_v45 = vmul.f32 0.03125, %v1931_v44 }
0x18be   : > { %v1937_v20 = vsub.f32 %v1927_v62, %v1935_v45  ;;  %v1934_v21 = vpop.xlane.xlu0 %1933 }
0x18bf   : > { %v1936_v22 = vmul.f32 0.03125, %v1934_v21 }
0x18c0   : > { %v1939_v23 = vmul.f32 %v1937_v20, %v1937_v20 }
0x18c1   : > { %v1938_v24 = vsub.f32 %v1928_v41, %v1936_v22 }
0x18c2   : > { %v1941_v26 = vsel %vm260_vm3, %v1939_v23, 0.0 }
0x18c3   : > { %1942 = vadd.xlane.f32.xlu0 %v1941_v26  ;;  %v1940_v8 = vmul.f32 %v1938_v24, %v1938_v24 }
0x18c5   : > { %v1944_v27 = vsel %vm913_vm9, %v1940_v8, 0.0 }
0x18c6   : > { %1945 = vadd.xlane.f32.xlu1 %v1944_v27  ;;  %v5698_v27 = vld [vmem:[#allocation2 + $0xf0] ss:$0 sm:$0xff] }
0x194c   : > { %v1943_v29 = vpop.xlane.xlu0 %1942  ;;  %v2875_v30 = vpop.f32.mrf.mxu0 }
0x194d   : > { %v1947_v31 = vmul.f32 0.03125, %v1943_v29  ;;  %v2876_v49 = vadd.f32 %v5719_v38, %v2875_v30 }
0x194e   : > { %v6268_v32 = vpop.f32.mrf.mxu0 }
0x194f   : > { %v1949_v33 = vadd.f32 1e-05, %v1947_v31  ;;  %v1946_v34 = vpop.xlane.xlu1 %1945  ;;  %v2881_v9 = vadd.f32 %v2876_v49, %v7510_v60 }
0x1950   : > { %v1948_v35 = vmul.f32 0.03125, %v1946_v34  ;;  %v2878_v43 = vpop.f32.mrf.mxu0  ;;  %v5721_v34 = vld [vmem:[#allocation2 + $0x370] ss:$0 sm:$0xff] }
0x1951   : > { %6780 = vrsqrt.f32 %v1949_v33  ;;  %v2882_v57 = vsel %vm260_vm3, %v2881_v9, 0.0  ;;  %v5699_v43 = vld [vmem:[#allocation2 + $0xf8] ss:$0 sm:$0xff] }
0x1952   : > { %v1950_v17 = vadd.f32 1e-05, %v1948_v35  ;;  %v6269_v36 = vpop.f32.mrf.mxu0 }
0x1953   : > { %v5722_v36 = vld [vmem:[#allocation2 + $0x378] ss:$0 sm:$0xff] }
0x1954   : > { %6782 = vrsqrt.f32 %v1950_v17 }
0x195e   : > { %v6781_v37 = vpop.eup %6780 }
0x195f   : > { %v1953_v42 = vmul.f32 %v6781_v37, %v1937_v20 }
0x1961   : > { %v6783_v47 = vpop.eup %6782  ;;  %v1960_v50 = vmul.f32 %v5696_v18, %v1953_v42 }
0x1962   : > { %v1954_v51 = vmul.f32 %v6783_v47, %v1938_v24 }
0x1963   : > { %v1967_v52 = vadd.f32 %v5697_v46, %v1960_v50 }
0x1964   : > { %v1961_v53 = vmul.f32 %v5696_v18, %v1954_v51 }
0x1965   : > { %v1969_v54 = vsel %vm260_vm3, %v1967_v52, 0.0 }
0x1966   : > { %1970 = vadd.xlane.f32.xlu0 %v1969_v54  ;;  %v1968_v55 = vadd.f32 %v5697_v46, %v1961_v53 }
0x1968   : > { %v1972_v56 = vsel %vm913_vm9, %v1968_v55, 0.0 }
0x1969   : > { %1973 = vadd.xlane.f32.xlu1 %v1972_v56 }
0x196a   : > { %2883 = vadd.xlane.f32.xlu0 %v2882_v57 }
0x19ef   : > { %v1971_v60 = vpop.xlane.xlu0 %1970 }
0x19f0   : > { %v1975_v4 = vmul.f32 0.03125, %v1971_v60 }
0x19f2   : > { %v1977_v5 = vsub.f32 %v1967_v52, %v1975_v4  ;;  %v1974_v6 = vpop.xlane.xlu1 %1973 }
0x19f3   : > { %v1976_v7 = vmul.f32 0.03125, %v1974_v6  ;;  %v2884_v28 = vpop.xlane.xlu0 %2883 }
0x19f4   : > { %v2885_v10 = vmul.f32 0.03125, %v2884_v28  ;;  %v1979_v11 = vmul.f32 %v1977_v5, %v1977_v5 }
0x19f5   : > { %v1978_v62 = vsub.f32 %v1968_v55, %v1976_v7 }
0x19f6   : > { %v2886_v41 = vsub.f32 %v2881_v9, %v2885_v10  ;;  %v1981_v12 = vsel %vm260_vm3, %v1979_v11, 0.0 }
0x19f7   : > { %1982 = vadd.xlane.f32.xlu1 %v1981_v12  ;;  %v1980_v13 = vmul.f32 %v1978_v62, %v1978_v62 }
0x19f8   : > { %v2887_v14 = vmul.f32 %v2886_v41, %v2886_v41 }
0x19f9   : > { %v1984_v15 = vsel %vm913_vm9, %v1980_v13, 0.0  ;;  %v6850_v13 = vld [vmem:[%s7144_s23 + $0x40] ss:$0 sm:$0xff] }
0x19fa   : > { %1985 = vadd.xlane.f32.xlu0 %v1984_v15  ;;  %v2888_v16 = vsel %vm260_vm3, %v2887_v14, 0.0 }
0x19fb   : > { %2889 = vadd.xlane.f32.xlu1 %v2888_v16 }
0x1a0c   : > { %2965 = vrot.lane.b32.xlu1 %v2913_v3, %s6983_s17 }
0x1a10   : > { %2967 = vrot.lane.b32.xlu0 %v2914_v61, %s6983_s17  ;;  %2972 = vrot.lane.b32.xlu1 %v5723_v63, %s6983_s17 }
0x1a80   : > { %v1983_v19 = vpop.xlane.xlu1 %1982 }
0x1a81   : > { %v1987_v39 = vmul.f32 0.03125, %v1983_v19 }
0x1a83   : > { %v1989_v40 = vadd.f32 1e-05, %v1987_v39  ;;  %v1986_v44 = vpop.xlane.xlu0 %1985 }
0x1a84   : > { %v1988_v45 = vmul.f32 0.03125, %v1986_v44  ;;  %v2890_v20 = vpop.xlane.xlu1 %2889 }
0x1a85   : > { %6784 = vrsqrt.f32 %v1989_v40  ;;  %v2891_v21 = vmul.f32 0.03125, %v2890_v20 }
0x1a86   : > { %v1990_v22 = vadd.f32 1e-05, %v1988_v45 }
0x1a87   : > { %v2892_v23 = vadd.f32 1e-05, %v2891_v21  ;;  %v2968_v24 = vpop.permute.xlu0 %2967 }
0x1a88   : > { %6786 = vrsqrt.f32 %v1990_v22  ;;  %6279 = vmatpush3.bf16.msra.mxu0 %v2968_v24  ;;  %v2966_v26 = vpop.permute.xlu1 %2965 }
0x1a89   : > { %6788 = vrsqrt.f32 %v2892_v23  ;;  %6280 = vmatprep.subr.bf16.mxu0 %v6980_v0 }
0x1a8c   : > { %6281 = vmatpush3.bf16.msra.mxu0 %v2966_v26  ;;  %v2973_v51 = vpop.permute.xlu1 %2972 }
0x1a8d   : > { %6292 = vmatprep.subr.bf16.mxu0 %v6980_v0 }
0x1a92   : > { %v6785_v8 = vpop.eup %6784 }
0x1a93   : > { %v1993_v29 = vmul.f32 %v6785_v8, %v1977_v5 }
0x1a95   : > { %v6787_v30 = vpop.eup %6786  ;;  %v2000_v32 = vmul.f32 %v5698_v27, %v1993_v29 }
0x1a96   : > { %v6789_v31 = vpop.eup %6788  ;;  %v1994_v33 = vmul.f32 %v6787_v30, %v1978_v62 }
0x1a97   : > { %v2894_v35 = vmul.f32 %v6789_v31, %v2886_v41  ;;  %v7632_v38 = vadd.f32 %v5699_v43, %v2000_v32 }
0x1a98   : > { %v2001_v17 = vmul.f32 %v5698_v27, %v1994_v33 }
0x1a99   : > { %v2900_v37 = vmul.f32 %v5721_v34, %v2894_v35 }
0x1a9a   : > { %v7634_v18 = vadd.f32 %v5699_v43, %v2001_v17 }
0x1a9b   : > { %v7636_v42 = vadd.f32 %v5722_v36, %v2900_v37 }
0x1a9c   : > { %v7640_v46 = vpack.c.bf16 %v7634_v18, %v7632_v38 }
0x1a9d   : > { %v2912_v47 = vpack.c.bf16 %v7636_v42, %v7636_v42 }
0x1a9e   : > { %6283 = vmatmul.mubr.msk.bf16.vlgmr.msra.gmra.mxu0 %vm260_vm3, %v7640_v46 }
0x1a9f   : > { %6275 = vmatmul.mubr.msk.bf16.vlgmr.msra.gmra.mxu1 %vm260_vm3, %v2912_v47  ;;  %6294 = vmatprep.mubr.msk.bf16.mxu0 %vm6981_vm0, %v6980_v0 }
0x1aa0   : > { %6288 = vmatprep.mubr.msk.bf16.mxu1 %vm6981_vm0, %v6980_v0 }
0x1b5e   : > { %v3012_v49 = vpop.f32.mrf.mxu0 }
0x1b5f   : > { %v2956_v50 = vpop.f32.mrf.mxu1  ;;  %v3013_v56 = vadd.f32 %v3012_v49, %v2973_v51 }
0x1b60   : > { %v2957_v52 = vadd.f32 %v5723_v63, %v2956_v50  ;;  %v6284_v53 = vpop.f32.mrf.mxu0 }
0x1b61   : > { %v6276_v9 = vpop.f32.mrf.mxu1 }
0x1b62   : > { %v3019_v54 = vpack.c.bf16 %v2957_v52, %v2957_v52  ;;  %v3015_v55 = vpop.f32.mrf.mxu0 }
0x1b63   : > { %v3016_v57 = vadd.f32 %v3015_v55, %v2973_v51  ;;  %v2959_v58 = vpop.f32.mrf.mxu1 }
0x1b64   : > { %3131 = vrot.lane.b32.xlu1 %v3019_v54, %s6982_s15  ;;  %v6285_v59 = vpop.f32.mrf.mxu0 }
0x1b65   : > { %v7652_v61 = vpack.c.bf16 %v3016_v57, %v3013_v56  ;;  %v6277_v1 = vpop.f32.mrf.mxu1 }
0x1b67   : > { %3133 = vrot.lane.b32.xlu0 %v7652_v61, %s6982_s15  ;;  %v3025_v2 = vsel %vm199_vm2, %v7652_v61, 0 }
0x1b68   : > { %3243 = vrot.lane.b32.xlu1 %v3019_v54, %s6987_s19  ;;  %6287 = vmatpush3.bf16.xpose.msra.mxu1 %v3025_v2 }
0x1b69   : > { %6298 = vmatprep.subr.bf16.mxu1 %v6980_v0 }
0x1b6b   : > { %3245 = vrot.lane.b32.xlu0 %v7652_v61, %s6987_s19 }
0x1b6c   : > { %3355 = vrot.lane.b32.xlu1 %v3019_v54, %s6988_s20 }
0x1b6f   : > { %3357 = vrot.lane.b32.xlu0 %v7652_v61, %s6988_s20  ;;  %6289 = vmatmul.mubr.msk.bf16.vlgmr.msra.gmra.mxu1 %vm199_vm2, %v3019_v54 }
0x1b70   : > { %6300 = vmatprep.mubr.msk.bf16.mxu1 %vm6981_vm0, %v6980_v0 }
0x1bd6   : > { %v3132_v5 = vpop.permute.xlu1 %3131 }
0x1bd9   : > { %v3134_v3 = vpop.permute.xlu0 %3133 }
0x1bda   : > { %v3139_v60 = vsel %vm199_vm2, %v3134_v3, 0  ;;  %v3244_v28 = vpop.permute.xlu1 %3243 }
0x1bdb   : > { %6299 = vmatpush3.bf16.xpose.msra.mxu1 %v3139_v60 }
0x1bdc   : > { %6310 = vmatprep.subr.bf16.mxu1 %v6980_v0 }
0x1bdd   : > { %v3246_v4 = vpop.permute.xlu0 %3245 }
0x1bde   : > { %v3251_v6 = vsel %vm199_vm2, %v3246_v4, 0  ;;  %v3356_v11 = vpop.permute.xlu1 %3355 }
0x1be1   : > { %v3358_v7 = vpop.permute.xlu0 %3357 }
0x1be2   : > { %6301 = vmatmul.mubr.msk.bf16.vlgmr.msra.gmra.mxu1 %vm199_vm2, %v3132_v5  ;;  %v3363_v10 = vsel %vm199_vm2, %v3358_v7, 0 }
0x1be3   : > { %6311 = vmatpush3.bf16.xpose.msra.mxu1 %v3251_v6  ;;  %6312 = vmatprep.mubr.msk.bf16.mxu1 %vm6981_vm0, %v6980_v0 }
0x1be4   : > { %6322 = vmatprep.subr.bf16.mxu1 %v6980_v0 }
0x1bea   : > { %6313 = vmatmul.mubr.msk.bf16.vlgmr.msra.gmra.mxu1 %vm199_vm2, %v3244_v28 }
0x1beb   : > { %6323 = vmatpush3.bf16.xpose.msra.mxu1 %v3363_v10  ;;  %6324 = vmatprep.mubr.msk.bf16.mxu1 %vm6981_vm0, %v6980_v0 }
0x1bec   : > { %6334 = vmatprep.subr.bf16.mxu1 %v6980_v0 }
0x1bf2   : > { %6325 = vmatmul.mubr.msk.bf16.vlgmr.msra.gmra.mxu1 %vm199_vm2, %v3356_v11 }
0x1bf3   : > { %6338 = vmatprep.mubr.msk.bf16.mxu1 %vm6981_vm0, %v6980_v0 }
0x1c2f   : > { %v3061_v62 = vpop.f32.mrf.mxu1 }
0x1c30   : > { %v3067_v41 = vmul.f32 0.35355338, %v3061_v62 }
0x1c31   : > { %v6290_v12 = vpop.f32.mrf.mxu1 }
0x1c32   : > { %v3068_v14 = vadd.f32 %v6850_v13, %v3067_v41 }
0x1c33   : > { %v3064_v15 = vpop.f32.mrf.mxu1 }
0x1c34   : > { %v3069_v16 = vsel %vm364_vm4, %v3068_v14, -inf }
0x1c35   : > { %3070 = vmax.xlane.f32.xlu0 %v3069_v16  ;;  %v6291_v63 = vpop.f32.mrf.mxu1 }
0x1ca2   : > { %v3175_v19 = vpop.f32.mrf.mxu1 }
0x1ca3   : > { %v3181_v39 = vmul.f32 0.35355338, %v3175_v19 }
0x1ca4   : > { %v6302_v40 = vpop.f32.mrf.mxu1 }
0x1ca5   : > { %v3182_v44 = vadd.f32 %v6850_v13, %v3181_v39 }
0x1ca6   : > { %v3178_v45 = vpop.f32.mrf.mxu1 }
0x1ca7   : > { %v3183_v20 = vsel %vm364_vm4, %v3182_v44, -inf }
0x1ca8   : > { %3184 = vmax.xlane.f32.xlu1 %v3183_v20  ;;  %v6303_v21 = vpop.f32.mrf.mxu1 }
0x1caa   : > { %v3287_v22 = vpop.f32.mrf.mxu1 }
0x1cab   : > { %v3293_v23 = vmul.f32 0.35355338, %v3287_v22 }
0x1cac   : > { %v6314_v24 = vpop.f32.mrf.mxu1 }
0x1cad   : > { %v3294_v26 = vadd.f32 %v6850_v13, %v3293_v23 }
0x1cae   : > { %v3290_v8 = vpop.f32.mrf.mxu1 }
0x1caf   : > { %v3295_v27 = vsel %vm364_vm4, %v3294_v26, -inf }
0x1cb0   : > { %3296 = vmax.xlane.f32.xlu0 %v3295_v27  ;;  %v6315_v29 = vpop.f32.mrf.mxu1  ;;  %v3484_v27 = vld [vmem:[#allocation2 + $0x358] sm:$0xff] }
0x1cb1   : > { %v3485_v29 = vld [vmem:[#allocation2 + $0x360] sm:$0xff] }
0x1cb2   : > { %v3399_v30 = vpop.f32.mrf.mxu1 }
0x1cb3   : > { %v3405_v31 = vmul.f32 0.35355338, %v3399_v30  ;;  %v3488_v30 = vpack.c.bf16 %v3485_v29, %v3484_v27 }
0x1cb4   : > { %v6326_v32 = vpop.f32.mrf.mxu1 }
0x1cb5   : > { %v3406_v33 = vadd.f32 %v6850_v13, %v3405_v31  ;;  %6335 = vmatpush3.bf16.msra.mxu1 %v3488_v30  ;;  %v3621_v30 = vld [vmem:[#allocation2 + $0x3c8] sm:$0xff] }
0x1cb6   : > { %v3402_v34 = vpop.f32.mrf.mxu1  ;;  %6336 = vmatprep.subr.bf16.mxu1 %v6980_v0 }
0x1cb7   : > { %v3407_v35 = vsel %vm364_vm4, %v3406_v33, -inf  ;;  %v3483_v34 = vld [vmem:[#allocation2 + $0x350] sm:$0xff] }
0x1cb8   : > { %3408 = vmax.xlane.f32.xlu0 %v3407_v35  ;;  %v6327_v43 = vpop.f32.mrf.mxu1 }
0x1cbe   : > { %v3071_v17 = vpop.xlane.xlu0 %3070 }
0x1cbf   : > { %v3072_v36 = vsub.f32 %v3068_v14, %v3071_v17 }
0x1cc1   : > { %v3073_v37 = vmul.f32 1.442695, %v3072_v36 }
0x1cc3   : > { %6790 = vpow2.f32 %v3073_v37 }
0x1cd0   : > { %v6791_v47 = vpop.eup %6790 }
0x1cd1   : > { %v3075_v49 = vsel %vm364_vm4, %v6791_v47, 0.0 }
0x1cd2   : > { %3076 = vadd.xlane.f32.xlu1 %v3075_v49 }
0x1ce3   : > { %3082 = vrot.lane.b32.xlu1 %v7652_v61, %s6983_s17 }
0x1d31   : > { %v3185_v50 = vpop.xlane.xlu1 %3184 }
0x1d32   : > { %v3186_v51 = vsub.f32 %v3182_v44, %v3185_v50 }
0x1d34   : > { %v3187_v52 = vmul.f32 1.442695, %v3186_v51 }
0x1d36   : > { %6792 = vpow2.f32 %v3187_v52 }
0x1d39   : > { %v3297_v53 = vpop.xlane.xlu0 %3296 }
0x1d3a   : > { %v3298_v9 = vsub.f32 %v3294_v26, %v3297_v53 }
0x1d3c   : > { %v3299_v54 = vmul.f32 1.442695, %v3298_v9 }
0x1d3e   : > { %6794 = vpow2.f32 %v3299_v54 }
0x1d41   : > { %v3409_v55 = vpop.xlane.xlu0 %3408 }
0x1d42   : > { %v3410_v56 = vsub.f32 %v3406_v33, %v3409_v55  ;;  %v3482_v33 = vld [vmem:[#allocation2 + $0x348] sm:$0xff] }
0x1d43   : > { %v6793_v57 = vpop.eup %6792  ;;  %v3487_v35 = vpack.c.bf16 %v3483_v34, %v3482_v33  ;;  %v3619_v33 = vld [vmem:[#allocation2 + $0x3b8] sm:$0xff]  ;;  %v3620_v34 = vld [vmem:[#allocation2 + $0x3c0] sm:$0xff] }
0x1d44   : > { %v3411_v58 = vmul.f32 1.442695, %v3410_v56  ;;  %v3189_v59 = vsel %vm364_vm4, %v6793_v57, 0.0 }
0x1d45   : > { %3190 = vadd.xlane.f32.xlu0 %v3189_v59  ;;  %6337 = vmatpush3.bf16.msra.mxu1 %v3487_v35  ;;  %v3628_v35 = vpack.c.bf16 %v3620_v34, %v3619_v33 }
0x1d46   : > { %6796 = vpow2.f32 %v3411_v58  ;;  %6350 = vmatprep.subr.bf16.mxu1 %v6980_v0 }
0x1d4b   : > { %v6795_v1 = vpop.eup %6794 }
0x1d4c   : > { %v3301_v2 = vsel %vm364_vm4, %v6795_v1, 0.0 }
0x1d4d   : > { %3302 = vadd.xlane.f32.xlu1 %v3301_v2 }
0x1d53   : > { %v6797_v3 = vpop.eup %6796 }
0x1d54   : > { %v3413_v60 = vsel %vm364_vm4, %v6797_v3, 0.0 }
0x1d55   : > { %3414 = vadd.xlane.f32.xlu0 %v3413_v60 }
0x1d5b   : > { %v3077_v4 = vpop.xlane.xlu1 %3076 }
0x1d5c   : > { %6798 = vrcp.f32 %v3077_v4 }
0x1d5e   : > { %3307 = vrot.lane.b32.xlu1 %v7652_v61, %s6984_s25 }
0x1d5f   : > { %v3083_v5 = vpop.permute.xlu1 %3082 }
0x1d60   : > { %v3088_v6 = vsel %vm394_vm6, %v3083_v5, 0 }
0x1d61   : > { %6293 = vmatpush3.bf16.msra.mxu0 %v3088_v6 }
0x1d62   : > { %3419 = vrot.lane.b32.xlu1 %v7652_v61, %s6986_s14  ;;  %6304 = vmatprep.subr.bf16.mxu0 %v6980_v0 }
0x1d69   : > { %v6799_v7 = vpop.eup %6798 }
0x1d6a   : > { %v3079_v28 = vmul.f32 %v6799_v7, %v6791_v47 }
0x1d6b   : > { %3195 = vrot.lane.b32.xlu0 %v7652_v61, %s6985_s26 }
0x1d6c   : > { %v3080_v10 = vpack.c.bf16 %v3079_v28, %v3079_v28 }
0x1d6e   : > { %6295 = vmatmul.mubr.msk.bf16.vlgmr.msra.gmra.mxu0 %vm364_vm4, %v3080_v10 }
0x1d6f   : > { %6306 = vmatprep.mubr.msk.bf16.mxu0 %vm6981_vm0, %v6980_v0 }
0x1dce   : > { %v3191_v11 = vpop.xlane.xlu0 %3190 }
0x1dcf   : > { %6800 = vrcp.f32 %v3191_v11 }
0x1dd6   : > { %v3303_v62 = vpop.xlane.xlu1 %3302 }
0x1dd7   : > { %6802 = vrcp.f32 %v3303_v62 }
0x1dda   : > { %v3308_v16 = vpop.permute.xlu1 %3307 }
0x1ddb   : > { %v3313_v19 = vsel %vm394_vm6, %v3308_v16, 0  ;;  %v3564_v16 = vld [vmem:[#allocation2 + $0x398] sm:$0xff] }
0x1ddc   : > { %v6801_v41 = vpop.eup %6800 }
0x1ddd   : > { %v3193_v13 = vmul.f32 %v6801_v41, %v6793_v57 }
0x1dde   : > { %v3415_v12 = vpop.xlane.xlu0 %3414  ;;  %v3420_v40 = vpop.permute.xlu1 %3419 }
0x1ddf   : > { %6804 = vrcp.f32 %v3415_v12  ;;  %v3194_v61 = vpack.c.bf16 %v3193_v13, %v3193_v13  ;;  %v3425_v20 = vsel %vm394_vm6, %v3420_v40, 0  ;;  %v3565_v12 = vld [vmem:[#allocation2 + $0x3a0] sm:$0xff]  ;;  %v3566_v13 = vld [vmem:[#allocation2 + $0x3a8] sm:$0xff] }
0x1de0   : > { %v3624_v40 = vld [vmem:[#allocation2 + $0x3e0] sm:$0xff] }
0x1de2   : > { %v3196_v14 = vpop.permute.xlu0 %3195 }
0x1de3   : > { %v3201_v15 = vsel %vm394_vm6, %v3196_v14, 0  ;;  %v3569_v14 = vpack.c.bf16 %v3566_v13, %v3565_v12  ;;  %v5742_v13 = vld [vmem:[#allocation2 + $0x400] ss:$0 sm:$0xff] }
0x1de4   : > { %6305 = vmatpush3.bf16.msra.mxu0 %v3201_v15  ;;  %v6803_v63 = vpop.eup %6802  ;;  %v3563_v15 = vld [vmem:[#allocation2 + $0x390] sm:$0xff] }
0x1de5   : > { %6316 = vmatprep.subr.bf16.mxu0 %v6980_v0  ;;  %v3305_v39 = vmul.f32 %v6803_v63, %v6795_v1  ;;  %v5734_v1 = vld [vmem:[#allocation2 + $0x368] ss:$0 sm:$0xff]  ;;  %v3626_v63 = vld [vmem:[#allocation2 + $0x3f0] sm:$0xff] }
0x1de7   : > { %6307 = vmatmul.mubr.msk.bf16.vlgmr.msra.gmra.mxu0 %vm364_vm4, %v3194_v61  ;;  %v3306_v44 = vpack.c.bf16 %v3305_v39, %v3305_v39  ;;  %v3568_v61 = vpack.c.bf16 %v3564_v16, %v3563_v15  ;;  %v5743_v15 = vld [vmem:[#allocation2 + $0x408] ss:$0 sm:$0xff] }
0x1de8   : > { %6317 = vmatpush3.bf16.msra.mxu0 %v3313_v19  ;;  %6318 = vmatprep.mubr.msk.bf16.mxu0 %vm6981_vm0, %v6980_v0  ;;  %v3623_v19 = vld [vmem:[#allocation2 + $0x3d8] sm:$0xff] }
0x1de9   : > { %6328 = vmatprep.subr.bf16.mxu0 %v6980_v0 }
0x1dec   : > { %v6805_v45 = vpop.eup %6804 }
0x1ded   : > { %v3417_v21 = vmul.f32 %v6805_v45, %v6797_v3 }
0x1def   : > { %6319 = vmatmul.mubr.msk.bf16.vlgmr.msra.gmra.mxu0 %vm364_vm4, %v3306_v44  ;;  %v3418_v22 = vpack.c.bf16 %v3417_v21, %v3417_v21  ;;  %v3630_v44 = vpack.c.bf16 %v3624_v40, %v3623_v19 }
0x1df0   : > { %6329 = vmatpush3.bf16.msra.mxu0 %v3425_v20  ;;  %6330 = vmatprep.mubr.msk.bf16.mxu0 %vm6981_vm0, %v6980_v0 }
0x1df1   : > { %6342 = vmatprep.subr.bf16.mxu0 %v6980_v0 }
0x1df7   : > { %6331 = vmatmul.mubr.msk.bf16.vlgmr.msra.gmra.mxu0 %vm364_vm4, %v3418_v22 }
0x1df8   : > { %6346 = vmatprep.mubr.msk.bf16.mxu0 %vm6981_vm0, %v6980_v0  ;;  %6343 = vmatpush3.bf16.msra.mxu0 %v3569_v14 }
0x1df9   : > { %6344 = vmatprep.subr.bf16.mxu0 %v6980_v0 }
0x1dfc   : > { %6345 = vmatpush3.bf16.msra.mxu0 %v3568_v61 }
0x1dfd   : > { %6362 = vmatprep.subr.bf16.mxu0 %v6980_v0 }
0x1e2e   : > { %v3124_v23 = vpop.f32.mrf.mxu0 }
0x1e30   : > { %v6296_v24 = vpop.f32.mrf.mxu0 }
0x1e32   : > { %v3127_v26 = vpop.f32.mrf.mxu0 }
0x1e33   : > { %v5737_v26 = vld [vmem:[#allocation2 + $0x388] ss:$0 sm:$0xff] }
0x1e34   : > { %v6297_v8 = vpop.f32.mrf.mxu0 }
0x1ea7   : > { %v3237_v31 = vpop.f32.mrf.mxu0 }
0x1ea8   : > { %3468 = vrot.lane.b32.xlu0 %v3237_v31, %s6993_s3  ;;  %v3622_v31 = vld [vmem:[#allocation2 + $0x3d0] sm:$0xff] }
0x1ea9   : > { %v6308_v32 = vpop.f32.mrf.mxu0 }
0x1eaa   : > { %v3629_v32 = vpack.c.bf16 %v3622_v31, %v3621_v30 }
0x1eab   : > { %v3240_v43 = vpop.f32.mrf.mxu0 }
0x1eac   : > { %v5738_v43 = vld [vmem:[#allocation2 + $0x3b0] ss:$0 sm:$0xff] }
0x1ead   : > { %v6309_v17 = vpop.f32.mrf.mxu0 }
0x1eaf   : > { %v3349_v36 = vpop.f32.mrf.mxu0 }
0x1eb0   : > { %3472 = vrot.lane.b32.xlu1 %v3349_v36, %s6994_s5 }
0x1eb1   : > { %v6320_v37 = vpop.f32.mrf.mxu0 }
0x1eb3   : > { %v3352_v47 = vpop.f32.mrf.mxu0 }
0x1eb5   : > { %v6321_v49 = vpop.f32.mrf.mxu0 }
0x1eb7   : > { %v3461_v50 = vpop.f32.mrf.mxu0 }
0x1eb8   : > { %3476 = vrot.lane.b32.xlu0 %v3461_v50, %s6995_s7 }
0x1eb9   : > { %v6332_v51 = vpop.f32.mrf.mxu0 }
0x1ebb   : > { %v3464_v52 = vpop.f32.mrf.mxu0 }
0x1ebc   : > { %v5740_v52 = vld [vmem:[#allocation2 + $0x3f8] ss:$0 sm:$0xff] }
0x1ebd   : > { %v6333_v53 = vpop.f32.mrf.mxu0 }
0x1f1a   : > { %v3469_v9 = vpop.permute.xlu0 %3468 }
0x1f1b   : > { %v3479_v55 = vsel %vm199_vm2, %v3124_v23, %v3469_v9  ;;  %v5736_v23 = vld [vmem:[#allocation2 + $0x380] ss:$0 sm:$0xff] }
0x1f22   : > { %v3473_v54 = vpop.permute.xlu1 %3472 }
0x1f23   : > { %v3480_v56 = vsel %vm846_vm7, %v3479_v55, %v3473_v54 }
0x1f2a   : > { %v3477_v57 = vpop.permute.xlu0 %3476 }
0x1f2b   : > { %v3481_v58 = vsel %vm849_vm8, %v3480_v56, %v3477_v57 }
0x1f2c   : > { %v3486_v59 = vpack.c.bf16 %v3481_v58, %v3481_v58 }
0x1f2e   : > { %6339 = vmatmul.mubr.msk.bf16.vlgmr.msra.gmra.mxu1 %vm260_vm3, %v3486_v59 }
0x1f2f   : > { %6358 = vmatprep.mubr.msk.bf16.mxu1 %vm6981_vm0, %v6980_v0 }
0x1fee   : > { %v3531_v2 = vpop.f32.mrf.mxu1 }
0x1fef   : > { %v3532_v3 = vadd.f32 %v5734_v1, %v3531_v2 }
0x1ff0   : > { %v6340_v60 = vpop.f32.mrf.mxu1 }
0x1ff1   : > { %v3537_v4 = vadd.f32 %v3532_v3, %v7636_v42  ;;  %v3625_v42 = vld [vmem:[#allocation2 + $0x3e8] sm:$0xff] }
0x1ff2   : > { %v3534_v5 = vpop.f32.mrf.mxu1  ;;  %v3631_v39 = vpack.c.bf16 %v3626_v63, %v3625_v42  ;;  %v5744_v63 = vld [vmem:[#allocation2 + $0x430] ss:$0 sm:$0xff] }
0x1ff3   : > { %v3538_v6 = vsel %vm260_vm3, %v3537_v4, 0.0  ;;  %v3709_v5 = vld [vmem:[#allocation2 + $0x428] sm:$0xff] }
0x1ff4   : > { %3539 = vadd.xlane.f32.xlu1 %v3538_v6  ;;  %v6341_v7 = vpop.f32.mrf.mxu1  ;;  %6351 = vmatpush3.bf16.msra.mxu1 %v3631_v39 }
0x1ff5   : > { %6352 = vmatprep.subr.bf16.mxu1 %v6980_v0  ;;  %v3706_v7 = vld [vmem:[#allocation2 + $0x410] sm:$0xff] }
0x1ff8   : > { %6353 = vmatpush3.bf16.msra.mxu1 %v3630_v44 }
0x1ff9   : > { %6354 = vmatprep.subr.bf16.mxu1 %v6980_v0 }
0x1ffc   : > { %6355 = vmatpush3.bf16.msra.mxu1 %v3629_v32 }
0x1ffd   : > { %6356 = vmatprep.subr.bf16.mxu1 %v6980_v0 }
0x2000   : > { %6357 = vmatpush3.bf16.msra.mxu1 %v3628_v35 }
0x2001   : > { %6376 = vmatprep.subr.bf16.mxu1 %v6980_v0 }
0x207d   : > { %v3540_v28 = vpop.xlane.xlu1 %3539 }
0x207e   : > { %v3541_v10 = vmul.f32 0.03125, %v3540_v28  ;;  %v3707_v28 = vld [vmem:[#allocation2 + $0x418] sm:$0xff] }
0x2080   : > { %v3542_v11 = vsub.f32 %v3537_v4, %v3541_v10  ;;  %v3708_v4 = vld [vmem:[#allocation2 + $0x420] sm:$0xff]  ;;  %v3712_v10 = vpack.c.bf16 %v3707_v28, %v3706_v7 }
0x2081   : > { %v3713_v6 = vpack.c.bf16 %v3709_v5, %v3708_v4 }
0x2082   : > { %v3543_v62 = vmul.f32 %v3542_v11, %v3542_v11 }
0x2084   : > { %v3544_v41 = vsel %vm260_vm3, %v3543_v62, 0.0 }
0x2085   : > { %3545 = vadd.xlane.f32.xlu0 %v3544_v41 }
0x210e   : > { %v3546_v45 = vpop.xlane.xlu0 %3545 }
0x210f   : > { %v3547_v20 = vmul.f32 0.03125, %v3546_v45 }
0x2111   : > { %v3548_v21 = vadd.f32 1e-05, %v3547_v20 }
0x2113   : > { %6806 = vrsqrt.f32 %v3548_v21 }
0x2120   : > { %v6807_v22 = vpop.eup %6806 }
0x2121   : > { %v3550_v24 = vmul.f32 %v6807_v22, %v3542_v11 }
0x2123   : > { %v3556_v8 = vmul.f32 %v5736_v23, %v3550_v24 }
0x2125   : > { %v3562_v27 = vadd.f32 %v5737_v26, %v3556_v8 }
0x2127   : > { %v3567_v29 = vpack.c.bf16 %v3562_v27, %v3562_v27 }
0x2129   : > { %6347 = vmatmul.mubr.msk.bf16.vlgmr.msra.gmra.mxu0 %vm260_vm3, %v3567_v29 }
0x212a   : > { %6366 = vmatprep.mubr.msk.bf16.mxu0 %vm6981_vm0, %v6980_v0  ;;  %6363 = vmatpush3.bf16.msra.mxu0 %v3713_v6 }
0x212b   : > { %6364 = vmatprep.subr.bf16.mxu0 %v6980_v0 }
0x212e   : > { %6365 = vmatpush3.bf16.msra.mxu0 %v3712_v10 }
0x212f   : > { %6370 = vmatprep.subr.bf16.mxu0 %v6980_v0 }
0x21e9   : > { %v3612_v17 = vpop.f32.mrf.mxu0 }
0x21ea   : > { %v3613_v36 = vadd.f32 %v5738_v43, %v3612_v17 }
0x21eb   : > { %v6348_v37 = vpop.f32.mrf.mxu0 }
0x21ec   : > { %v3618_v47 = vmax.f32 %v3613_v36, 0.0 }
0x21ed   : > { %v3615_v49 = vpop.f32.mrf.mxu0 }
0x21ee   : > { %v3627_v50 = vpack.c.bf16 %v3618_v47, %v3618_v47 }
0x21ef   : > { %v6349_v51 = vpop.f32.mrf.mxu0 }
0x21f0   : > { %6359 = vmatmul.mubr.msk.bf16.vlgmr.msra.gmra.mxu1 %vm1028_vm10, %v3627_v50 }
0x21f1   : > { %6378 = vmatprep.mubr.msk.bf16.mxu1 %vm6981_vm0, %v6980_v0 }
0x22b0   : > { %v3674_v53 = vpop.f32.mrf.mxu1 }
0x22b1   : > { %v3675_v9 = vadd.f32 %v5740_v52, %v3674_v53 }
0x22b2   : > { %v6360_v54 = vpop.f32.mrf.mxu1 }
0x22b3   : > { %v3680_v55 = vadd.f32 %v3675_v9, %v3562_v27 }
0x22b4   : > { %v3677_v56 = vpop.f32.mrf.mxu1 }
0x22b5   : > { %v3681_v57 = vsel %vm260_vm3, %v3680_v55, 0.0 }
0x22b6   : > { %3682 = vadd.xlane.f32.xlu0 %v3681_v57  ;;  %v6361_v58 = vpop.f32.mrf.mxu1 }
0x233f   : > { %v3683_v59 = vpop.xlane.xlu0 %3682 }
0x2340   : > { %v3684_v1 = vmul.f32 0.03125, %v3683_v59 }
0x2342   : > { %v3685_v2 = vsub.f32 %v3680_v55, %v3684_v1 }
0x2344   : > { %v3686_v3 = vmul.f32 %v3685_v2, %v3685_v2 }
0x2346   : > { %v3687_v60 = vsel %vm260_vm3, %v3686_v3, 0.0 }
0x2347   : > { %3688 = vadd.xlane.f32.xlu1 %v3687_v60 }
0x23d0   : > { %v3689_v11 = vpop.xlane.xlu1 %3688 }
0x23d1   : > { %v3690_v62 = vmul.f32 0.03125, %v3689_v11 }
0x23d3   : > { %v3691_v41 = vadd.f32 1e-05, %v3690_v62 }
0x23d5   : > { %6808 = vrsqrt.f32 %v3691_v41 }
0x23e2   : > { %v6809_v12 = vpop.eup %6808 }
0x23e3   : > { %v3693_v14 = vmul.f32 %v6809_v12, %v3685_v2 }
0x23e5   : > { %v3699_v16 = vmul.f32 %v5742_v13, %v3693_v14 }
0x23e7   : > { %v7750_v61 = vadd.f32 %v5743_v15, %v3699_v16 }
0x23e9   : > { %v3711_v42 = vpack.c.bf16 %v7750_v61, %v7750_v61 }
0x23eb   : > { %6367 = vmatmul.mubr.msk.bf16.vlgmr.msra.gmra.mxu0 %vm260_vm3, %v3711_v42 }
0x23ec   : > { %6372 = vmatprep.mubr.msk.bf16.mxu0 %vm6981_vm0, %v6980_v0 }
0x24ab   : > { %v3755_v19 = vpop.f32.mrf.mxu0 }
0x24ac   : > { %v3756_v39 = vadd.f32 %v5744_v63, %v3755_v19 }
0x24ad   : > { %v6368_v40 = vpop.f32.mrf.mxu0 }
0x24ae   : > { %v7757_v44 = vpack.c.bf16 %v3756_v39, %v3756_v39 }
0x24af   : > { %v3758_v45 = vpop.f32.mrf.mxu0 }
0x24b0   : > { %3875 = vrot.lane.b32.xlu1 %v7757_v44, %s6985_s26  ;;  %3763 = vrot.lane.b32.xlu0 %v7757_v44, %s6983_s17 }
0x24b1   : > { %v6369_v20 = vpop.f32.mrf.mxu0 }
0x24b4   : > { %3873 = vrot.lane.b32.xlu1 %v7757_v44, %s6982_s15  ;;  %3987 = vrot.lane.b32.xlu0 %v7757_v44, %s6984_s25 }
0x24b8   : > { %3985 = vrot.lane.b32.xlu1 %v7757_v44, %s6987_s19  ;;  %4099 = vrot.lane.b32.xlu0 %v7757_v44, %s6986_s14 }
0x24bc   : > { %4097 = vrot.lane.b32.xlu1 %v7757_v44, %s6988_s20 }
0x2522   : > { %v3764_v21 = vpop.permute.xlu0 %3763  ;;  %v3876_v23 = vpop.permute.xlu1 %3875 }
0x2523   : > { %v3769_v22 = vsel %vm199_vm2, %v3764_v21, 0  ;;  %v3881_v24 = vsel %vm199_vm2, %v3876_v23, 0 }
0x2524   : > { %6371 = vmatpush3.bf16.xpose.msra.mxu0 %v3769_v22 }
0x2525   : > { %6382 = vmatprep.subr.bf16.mxu0 %v6980_v0 }
0x2526   : > { %v3988_v26 = vpop.permute.xlu0 %3987  ;;  %v3874_v8 = vpop.permute.xlu1 %3873 }
0x2527   : > { %v3993_v27 = vsel %vm199_vm2, %v3988_v26, 0 }
0x252a   : > { %v4100_v29 = vpop.permute.xlu0 %4099  ;;  %v3986_v30 = vpop.permute.xlu1 %3985 }
0x252b   : > { %6373 = vmatmul.mubr.msk.bf16.vlgmr.msra.gmra.mxu0 %vm199_vm2, %v7757_v44  ;;  %v4105_v31 = vsel %vm199_vm2, %v4100_v29, 0 }
0x252c   : > { %6383 = vmatpush3.bf16.xpose.msra.mxu0 %v3881_v24  ;;  %6384 = vmatprep.mubr.msk.bf16.mxu0 %vm6981_vm0, %v6980_v0 }
0x252d   : > { %6394 = vmatprep.subr.bf16.mxu0 %v6980_v0 }
0x252e   : > { %v4098_v32 = vpop.permute.xlu1 %4097 }
0x2533   : > { %6385 = vmatmul.mubr.msk.bf16.vlgmr.msra.gmra.mxu0 %vm199_vm2, %v3874_v8 }
0x2534   : > { %6395 = vmatpush3.bf16.xpose.msra.mxu0 %v3993_v27  ;;  %6396 = vmatprep.mubr.msk.bf16.mxu0 %vm6981_vm0, %v6980_v0 }
0x2535   : > { %6406 = vmatprep.subr.bf16.mxu0 %v6980_v0 }
0x253b   : > { %6397 = vmatmul.mubr.msk.bf16.vlgmr.msra.gmra.mxu0 %vm199_vm2, %v3986_v30 }
0x253c   : > { %6407 = vmatpush3.bf16.xpose.msra.mxu0 %v4105_v31  ;;  %6408 = vmatprep.mubr.msk.bf16.mxu0 %vm6981_vm0, %v6980_v0 }
0x253d   : > { %6418 = vmatprep.subr.bf16.mxu0 %v6980_v0 }
0x2543   : > { %6409 = vmatmul.mubr.msk.bf16.vlgmr.msra.gmra.mxu0 %vm199_vm2, %v4098_v32 }
0x2544   : > { %6422 = vmatprep.mubr.msk.bf16.mxu0 %vm6981_vm0, %v6980_v0 }
0x25eb   : > { %v3805_v33 = vpop.f32.mrf.mxu0 }
0x25ec   : > { %v3811_v34 = vmul.f32 0.35355338, %v3805_v33 }
0x25ed   : > { %v6374_v35 = vpop.f32.mrf.mxu0 }
0x25ee   : > { %v3812_v43 = vadd.f32 %v3811_v34, %v7557_v25 }
0x25ef   : > { %v3808_v17 = vpop.f32.mrf.mxu0 }
0x25f0   : > { %v3813_v36 = vsel %vm199_vm2, %v3812_v43, -inf }
0x25f1   : > { %3814 = vmax.xlane.f32.xlu0 %v3813_v36  ;;  %v6375_v37 = vpop.f32.mrf.mxu0 }
0x25f3   : > { %v3917_v47 = vpop.f32.mrf.mxu0 }
0x25f4   : > { %v3923_v49 = vmul.f32 0.35355338, %v3917_v47 }
0x25f5   : > { %v6386_v50 = vpop.f32.mrf.mxu0 }
0x25f6   : > { %v3924_v51 = vadd.f32 %v3923_v49, %v7557_v25 }
0x25f7   : > { %v3920_v52 = vpop.f32.mrf.mxu0 }
0x25f8   : > { %v3925_v53 = vsel %vm199_vm2, %v3924_v51, -inf }
0x25f9   : > { %3926 = vmax.xlane.f32.xlu1 %v3925_v53  ;;  %v6387_v9 = vpop.f32.mrf.mxu0 }
0x25fb   : > { %v4029_v54 = vpop.f32.mrf.mxu0 }
0x25fc   : > { %v4035_v55 = vmul.f32 0.35355338, %v4029_v54 }
0x25fd   : > { %v6398_v56 = vpop.f32.mrf.mxu0 }
0x25fe   : > { %v4036_v57 = vadd.f32 %v4035_v55, %v7557_v25 }
0x25ff   : > { %v4032_v58 = vpop.f32.mrf.mxu0 }
0x2600   : > { %v4037_v59 = vsel %vm199_vm2, %v4036_v57, -inf }
0x2601   : > { %4038 = vmax.xlane.f32.xlu0 %v4037_v59  ;;  %v6399_v1 = vpop.f32.mrf.mxu0 }
0x2603   : > { %v4141_v2 = vpop.f32.mrf.mxu0 }
0x2604   : > { %v4147_v3 = vmul.f32 0.35355338, %v4141_v2 }
0x2605   : > { %v6410_v60 = vpop.f32.mrf.mxu0 }
0x2606   : > { %v4148_v4 = vadd.f32 %v4147_v3, %v7557_v25  ;;  %v4226_v3 = vld [vmem:[#allocation2 + $0x448] sm:$0xff]  ;;  %v4227_v60 = vld [vmem:[#allocation2 + $0x450] sm:$0xff] }
0x2607   : > { %v4144_v5 = vpop.f32.mrf.mxu0 }
0x2608   : > { %v4149_v6 = vsel %vm199_vm2, %v4148_v4, -inf  ;;  %v4224_v5 = vld [vmem:[#allocation2 + $0x438] sm:$0xff] }
0x2609   : > { %4150 = vmax.xlane.f32.xlu0 %v4149_v6  ;;  %v6411_v7 = vpop.f32.mrf.mxu0  ;;  %v4225_v6 = vld [vmem:[#allocation2 + $0x440] sm:$0xff] }
0x260a   : > { %v4229_v7 = vpack.c.bf16 %v4225_v6, %v4224_v5 }
0x267a   : > { %v3815_v28 = vpop.xlane.xlu0 %3814 }
0x267b   : > { %v3816_v10 = vsub.f32 %v3812_v43, %v3815_v28 }
0x267d   : > { %v3817_v11 = vmul.f32 1.442695, %v3816_v10 }
0x267f   : > { %6810 = vpow2.f32 %v3817_v11 }
0x2682   : > { %v3927_v62 = vpop.xlane.xlu1 %3926 }
0x2683   : > { %v3928_v41 = vsub.f32 %v3924_v51, %v3927_v62 }
0x2685   : > { %v3929_v12 = vmul.f32 1.442695, %v3928_v41 }
0x2687   : > { %6812 = vpow2.f32 %v3929_v12 }
0x268a   : > { %v4039_v15 = vpop.xlane.xlu0 %4038 }
0x268b   : > { %v4040_v45 = vsub.f32 %v4036_v57, %v4039_v15 }
0x268c   : > { %v6811_v13 = vpop.eup %6810 }
0x268d   : > { %v3819_v14 = vsel %vm199_vm2, %v6811_v13, 0.0  ;;  %v4041_v20 = vmul.f32 1.442695, %v4040_v45 }
0x268e   : > { %3820 = vadd.xlane.f32.xlu1 %v3819_v14 }
0x2692   : > { %v4151_v16 = vpop.xlane.xlu0 %4150 }
0x2693   : > { %v4152_v25 = vsub.f32 %v4148_v4, %v4151_v16  ;;  %v4230_v4 = vpack.c.bf16 %v4227_v60, %v4226_v3 }
0x2694   : > { %v6813_v42 = vpop.eup %6812 }
0x2695   : > { %v4153_v63 = vmul.f32 1.442695, %v4152_v25  ;;  %v3931_v19 = vsel %vm199_vm2, %v6813_v42, 0.0  ;;  %6419 = vmatpush3.bf16.msra.mxu0 %v4230_v4 }
0x2696   : > { %3932 = vadd.xlane.f32.xlu0 %v3931_v19  ;;  %6420 = vmatprep.subr.bf16.mxu0 %v6980_v0 }
0x2697   : > { %6814 = vpow2.f32 %v4153_v63 }
0x2698   : > { %6816 = vpow2.f32 %v4041_v20 }
0x2699   : > { %6421 = vmatpush3.bf16.msra.mxu0 %v4229_v7 }
0x269a   : > { %6434 = vmatprep.subr.bf16.mxu0 %v6980_v0 }
0x269f   : > { %3825 = vrot.lane.b32.xlu1 %v7757_v44, %s6990_s27 }
0x26a4   : > { %v6815_v39 = vpop.eup %6814 }
0x26a5   : > { %v4155_v40 = vsel %vm199_vm2, %v6815_v39, 0.0  ;;  %v6817_v21 = vpop.eup %6816 }
0x26a6   : > { %4156 = vadd.xlane.f32.xlu0 %v4155_v40  ;;  %v4043_v22 = vsel %vm199_vm2, %v6817_v21, 0.0  ;;  %v5754_v40 = vld [vmem:[#allocation2 + $0x458] ss:$0 sm:$0xff] }
0x26bc   : > { %3937 = vrot.lane.b32.xlu0 %v7757_v44, %s6989_s24 }
0x26c3   : > { %4044 = vadd.xlane.f32.xlu1 %v4043_v22 }
0x26d4   : > { %4049 = vrot.lane.b32.xlu1 %v7757_v44, %s6991_s28 }
0x26d8   : > { %4161 = vrot.lane.b32.xlu1 %v7757_v44, %s6992_s4 }
0x2717   : > { %v3821_v23 = vpop.xlane.xlu1 %3820 }
0x2718   : > { %6818 = vrcp.f32 %v3821_v23 }
0x271b   : > { %v3826_v24 = vpop.permute.xlu1 %3825 }
0x271c   : > { %v3831_v26 = vsel %vm203_vm1, %v3826_v24, 0 }
0x271d   : > { %6377 = vmatpush3.bf16.msra.mxu1 %v3831_v26 }
0x271e   : > { %6388 = vmatprep.subr.bf16.mxu1 %v6980_v0 }
0x271f   : > { %v3933_v8 = vpop.xlane.xlu0 %3932 }
0x2720   : > { %6820 = vrcp.f32 %v3933_v8  ;;  %v4307_v8 = vld [vmem:[#allocation2 + $0x470] sm:$0xff] }
0x2725   : > { %v6819_v27 = vpop.eup %6818 }
0x2726   : > { %v3823_v29 = vmul.f32 %v6819_v27, %v6811_v13  ;;  %v4308_v27 = vld [vmem:[#allocation2 + $0x478] sm:$0xff] }
0x2728   : > { %v3824_v30 = vpack.c.bf16 %v3823_v29, %v3823_v29  ;;  %v4312_v29 = vpack.c.bf16 %v4308_v27, %v4307_v8 }
0x272a   : > { %6379 = vmatmul.mubr.msk.bf16.vlgmr.msra.gmra.mxu1 %vm199_vm2, %v3824_v30  ;;  %v4305_v30 = vld [vmem:[#allocation2 + $0x460] sm:$0xff] }
0x272b   : > { %6390 = vmatprep.mubr.msk.bf16.mxu1 %vm6981_vm0, %v6980_v0 }
0x272d   : > { %v6821_v31 = vpop.eup %6820 }
0x272e   : > { %v3935_v32 = vmul.f32 %v6821_v31, %v6813_v42  ;;  %v4306_v31 = vld [vmem:[#allocation2 + $0x468] sm:$0xff] }
0x272f   : > { %v4157_v44 = vpop.xlane.xlu0 %4156 }
0x2730   : > { %v3936_v35 = vpack.c.bf16 %v3935_v32, %v3935_v32 }
0x2733   : > { %v3938_v33 = vpop.permute.xlu0 %3937 }
0x2734   : > { %v3943_v34 = vsel %vm203_vm1, %v3938_v33, 0 }
0x2735   : > { %6389 = vmatpush3.bf16.msra.mxu1 %v3943_v34 }
0x2736   : > { %6400 = vmatprep.subr.bf16.mxu1 %v6980_v0 }
0x2738   : > { %6391 = vmatmul.mubr.msk.bf16.vlgmr.msra.gmra.mxu1 %vm199_vm2, %v3936_v35 }
0x2739   : > { %6402 = vmatprep.mubr.msk.bf16.mxu1 %vm6981_vm0, %v6980_v0 }
0x274c   : > { %v4045_v43 = vpop.xlane.xlu1 %4044 }
0x274d   : > { %6822 = vrcp.f32 %v4045_v43  ;;  %v5758_v43 = vld [vmem:[#allocation2 + $0x480] ss:$0 sm:$0xff] }
0x274e   : > { %6824 = vrcp.f32 %v4157_v44  ;;  %v4311_v44 = vpack.c.bf16 %v4306_v31, %v4305_v30 }
0x2750   : > { %v4050_v17 = vpop.permute.xlu1 %4049 }
0x2751   : > { %v4055_v36 = vsel %vm203_vm1, %v4050_v17, 0 }
0x2752   : > { %6401 = vmatpush3.bf16.msra.mxu1 %v4055_v36 }
0x2753   : > { %6412 = vmatprep.subr.bf16.mxu1 %v6980_v0 }
0x2754   : > { %v4162_v49 = vpop.permute.xlu1 %4161 }
0x2755   : > { %v4167_v52 = vsel %vm203_vm1, %v4162_v49, 0 }
0x275a   : > { %v6823_v37 = vpop.eup %6822 }
0x275b   : > { %v4047_v47 = vmul.f32 %v6823_v37, %v6817_v21  ;;  %v6825_v51 = vpop.eup %6824 }
0x275c   : > { %v4159_v53 = vmul.f32 %v6825_v51, %v6815_v39  ;;  %v5756_v51 = vld [vmem:[#allocation2 + $0x4b0] ss:$0 sm:$0xff] }
0x275d   : > { %v4048_v50 = vpack.c.bf16 %v4047_v47, %v4047_v47 }
0x275e   : > { %v4160_v9 = vpack.c.bf16 %v4159_v53, %v4159_v53  ;;  %v5757_v53 = vld [vmem:[#allocation2 + $0x4b8] ss:$0 sm:$0xff] }
0x275f   : > { %6403 = vmatmul.mubr.msk.bf16.vlgmr.msra.gmra.mxu1 %vm199_vm2, %v4048_v50 }
0x2760   : > { %6413 = vmatpush3.bf16.msra.mxu1 %v4167_v52  ;;  %6414 = vmatprep.mubr.msk.bf16.mxu1 %vm6981_vm0, %v6980_v0 }
0x2761   : > { %6426 = vmatprep.subr.bf16.mxu1 %v6980_v0 }
0x2767   : > { %6415 = vmatmul.mubr.msk.bf16.vlgmr.msra.gmra.mxu1 %vm199_vm2, %v4160_v9 }
0x2768   : > { %6430 = vmatprep.mubr.msk.bf16.mxu1 %vm6981_vm0, %v6980_v0  ;;  %6427 = vmatpush3.bf16.msra.mxu1 %v4312_v29 }
0x2769   : > { %6428 = vmatprep.subr.bf16.mxu1 %v6980_v0 }
0x276c   : > { %6429 = vmatpush3.bf16.msra.mxu1 %v4311_v44 }
0x276d   : > { %6442 = vmatprep.subr.bf16.mxu1 %v6980_v0 }
0x27ea   : > { %v3867_v54 = vpop.f32.mrf.mxu1 }
0x27ec   : > { %v6380_v55 = vpop.f32.mrf.mxu1 }
0x27ee   : > { %v3870_v56 = vpop.f32.mrf.mxu1 }
0x27f0   : > { %v6381_v57 = vpop.f32.mrf.mxu1 }
0x27f8   : > { %v3979_v58 = vpop.f32.mrf.mxu1 }
0x27f9   : > { %4210 = vrot.lane.b32.xlu0 %v3979_v58, %s6993_s3 }
0x27fa   : > { %v6392_v59 = vpop.f32.mrf.mxu1 }
0x27fc   : > { %v3982_v1 = vpop.f32.mrf.mxu1 }
0x27fe   : > { %v6393_v2 = vpop.f32.mrf.mxu1 }
0x281f   : > { %v4091_v28 = vpop.f32.mrf.mxu1 }
0x2820   : > { %4214 = vrot.lane.b32.xlu1 %v4091_v28, %s6994_s5 }
0x2821   : > { %v6404_v10 = vpop.f32.mrf.mxu1 }
0x2823   : > { %v4094_v11 = vpop.f32.mrf.mxu1 }
0x2825   : > { %v6405_v62 = vpop.f32.mrf.mxu1 }
0x2827   : > { %v4203_v41 = vpop.f32.mrf.mxu1 }
0x2828   : > { %4218 = vrot.lane.b32.xlu0 %v4203_v41, %s6995_s7 }
0x2829   : > { %v6416_v12 = vpop.f32.mrf.mxu1 }
0x282b   : > { %v4206_v13 = vpop.f32.mrf.mxu1 }
0x282d   : > { %v6417_v14 = vpop.f32.mrf.mxu1 }
0x286b   : > { %v4211_v15 = vpop.permute.xlu0 %4210 }
0x286c   : > { %v4221_v25 = vsel %vm199_vm2, %v3867_v54, %v4211_v15 }
0x2892   : > { %v4215_v16 = vpop.permute.xlu1 %4214 }
0x2893   : > { %v4222_v42 = vsel %vm846_vm7, %v4221_v25, %v4215_v16 }
0x289a   : > { %v4219_v63 = vpop.permute.xlu0 %4218 }
0x289b   : > { %v4223_v19 = vsel %vm849_vm8, %v4222_v42, %v4219_v63 }
0x289c   : > { %v4228_v39 = vpack.c.bf16 %v4223_v19, %v4223_v19 }
0x289e   : > { %6423 = vmatmul.mubr.msk.bf16.vlgmr.msra.gmra.mxu0 %vm260_vm3, %v4228_v39  ;;  %v6851_v39 = vld [vmem:[%s7144_s23 + $0x40] ss:$0 sm:$0xff] }
0x289f   : > { %6438 = vmatprep.mubr.msk.bf16.mxu0 %vm6981_vm0, %v6980_v0 }
0x295e   : > { %v4273_v45 = vpop.f32.mrf.mxu0 }
0x295f   : > { %v4274_v20 = vadd.f32 %v5754_v40, %v4273_v45 }
0x2960   : > { %v6424_v21 = vpop.f32.mrf.mxu0 }
0x2961   : > { %v4279_v22 = vadd.f32 %v4274_v20, %v7750_v61 }
0x2962   : > { %v4276_v23 = vpop.f32.mrf.mxu0 }
0x2963   : > { %v4280_v24 = vsel %vm260_vm3, %v4279_v22, 0.0 }
0x2964   : > { %4281 = vadd.xlane.f32.xlu1 %v4280_v24  ;;  %v6425_v26 = vpop.f32.mrf.mxu0 }
0x2975   : > { %4362 = vrot.lane.b32.xlu1 %v4311_v44, %s6983_s17 }
0x2979   : > { %4369 = vrot.lane.b32.xlu1 %v5758_v43, %s6983_s17 }
0x29ed   : > { %v4282_v61 = vpop.xlane.xlu1 %4281 }
0x29ee   : > { %v4283_v32 = vmul.f32 0.03125, %v4282_v61 }
0x29f0   : > { %v4284_v33 = vsub.f32 %v4279_v22, %v4283_v32 }
0x29f1   : > { %v4363_v49 = vpop.permute.xlu1 %4362 }
0x29f2   : > { %v4285_v34 = vmul.f32 %v4284_v33, %v4284_v33 }
0x29f4   : > { %v4286_v35 = vsel %vm260_vm3, %v4285_v34, 0.0 }
0x29f5   : > { %4287 = vadd.xlane.f32.xlu0 %v4286_v35 }
0x2a0b   : > { %4364 = vrot.lane.b32.xlu0 %v4312_v29, %s6983_s17 }
0x2a7e   : > { %v4288_v17 = vpop.xlane.xlu0 %4287 }
0x2a7f   : > { %v4289_v36 = vmul.f32 0.03125, %v4288_v17 }
0x2a81   : > { %v4290_v37 = vadd.f32 1e-05, %v4289_v36 }
0x2a82   : > { %v4365_v47 = vpop.permute.xlu0 %4364 }
0x2a83   : > { %6826 = vrsqrt.f32 %v4290_v37  ;;  %6435 = vmatpush3.bf16.msra.mxu0 %v4365_v47 }
0x2a84   : > { %6436 = vmatprep.subr.bf16.mxu0 %v6980_v0 }
0x2a87   : > { %6437 = vmatpush3.bf16.msra.mxu0 %v4363_v49 }
0x2a88   : > { %6448 = vmatprep.subr.bf16.mxu0 %v6980_v0 }
0x2a8a   : > { %6439 = vmatmul.mubr.msk.bf16.vlgmr.msra.gmra.mxu0 %vm260_vm3, %v7640_v46  ;;  %v4370_v46 = vpop.permute.xlu1 %4369 }
0x2a8b   : > { %6450 = vmatprep.mubr.msk.bf16.mxu0 %vm6981_vm0, %v6980_v0 }
0x2a90   : > { %v6827_v50 = vpop.eup %6826 }
0x2a91   : > { %v4292_v52 = vmul.f32 %v6827_v50, %v4284_v33 }
0x2a93   : > { %v4298_v9 = vmul.f32 %v5756_v51, %v4292_v52 }
0x2a95   : > { %v7859_v54 = vadd.f32 %v5757_v53, %v4298_v9 }
0x2a97   : > { %v4310_v55 = vpack.c.bf16 %v7859_v54, %v7859_v54 }
0x2a99   : > { %6431 = vmatmul.mubr.msk.bf16.vlgmr.msra.gmra.mxu1 %vm260_vm3, %v4310_v55 }
0x2a9a   : > { %6444 = vmatprep.mubr.msk.bf16.mxu1 %vm6981_vm0, %v6980_v0 }
0x2b4a   : > { %v4406_v56 = vpop.f32.mrf.mxu0 }
0x2b4b   : > { %v4407_v59 = vadd.f32 %v4406_v56, %v4370_v46 }
0x2b4c   : > { %v6440_v57 = vpop.f32.mrf.mxu0 }
0x2b4e   : > { %v4409_v58 = vpop.f32.mrf.mxu0 }
0x2b4f   : > { %v4410_v1 = vadd.f32 %v4409_v58, %v4370_v46 }
0x2b50   : > { %v6441_v2 = vpop.f32.mrf.mxu0 }
0x2b51   : > { %v7866_v3 = vpack.c.bf16 %v4410_v1, %v4407_v59 }
0x2b53   : > { %4527 = vrot.lane.b32.xlu0 %v7866_v3, %s6982_s15  ;;  %v4419_v60 = vsel %vm199_vm2, %v7866_v3, 0 }
0x2b54   : > { %6443 = vmatpush3.bf16.xpose.msra.mxu1 %v4419_v60 }
0x2b55   : > { %6454 = vmatprep.subr.bf16.mxu1 %v6980_v0 }
0x2b57   : > { %4639 = vrot.lane.b32.xlu0 %v7866_v3, %s6987_s19 }
0x2b59   : > { %v4354_v4 = vpop.f32.mrf.mxu1 }
0x2b5a   : > { %v4355_v5 = vadd.f32 %v5758_v43, %v4354_v4 }
0x2b5b   : > { %v6432_v6 = vpop.f32.mrf.mxu1  ;;  %4751 = vrot.lane.b32.xlu0 %v7866_v3, %s6988_s20 }
0x2b5c   : > { %v4413_v7 = vpack.c.bf16 %v4355_v5, %v4355_v5 }
0x2b5d   : > { %v4357_v28 = vpop.f32.mrf.mxu1 }
0x2b5e   : > { %4525 = vrot.lane.b32.xlu1 %v4413_v7, %s6982_s15  ;;  %6445 = vmatmul.mubr.msk.bf16.vlgmr.msra.gmra.mxu1 %vm199_vm2, %v4413_v7 }
0x2b5f   : > { %v6433_v10 = vpop.f32.mrf.mxu1  ;;  %6456 = vmatprep.mubr.msk.bf16.mxu1 %vm6981_vm0, %v6980_v0 }
0x2b62   : > { %4637 = vrot.lane.b32.xlu1 %v4413_v7, %s6987_s19  ;;  %s6910_s19 = sshll.u32 %s6998_s13, 4  ;;  %s6911_s19 = int_to_ptr.vmem [resolvable:$false] %s6910_s19 }
0x2b66   : > { %4749 = vrot.lane.b32.xlu1 %v4413_v7, %s6988_s20  ;;  %s6912_s20 = scalar_lea.vmem %s6911_s19, 256 }
0x2bc5   : > { %v4528_v11 = vpop.permute.xlu0 %4527 }
0x2bc6   : > { %v4533_v62 = vsel %vm199_vm2, %v4528_v11, 0 }
0x2bc7   : > { %6455 = vmatpush3.bf16.xpose.msra.mxu1 %v4533_v62 }
0x2bc8   : > { %6466 = vmatprep.subr.bf16.mxu1 %v6980_v0 }
0x2bc9   : > { %v4640_v41 = vpop.permute.xlu0 %4639 }
0x2bca   : > { %v4645_v13 = vsel %vm199_vm2, %v4640_v41, 0 }
0x2bcd   : > { %v4752_v14 = vpop.permute.xlu0 %4751 }
0x2bce   : > { %v4757_v16 = vsel %vm199_vm2, %v4752_v14, 0 }
0x2bd0   : > { %v4526_v12 = vpop.permute.xlu1 %4525 }
0x2bd1   : > { %6457 = vmatmul.mubr.msk.bf16.vlgmr.msra.gmra.mxu1 %vm199_vm2, %v4526_v12 }
0x2bd2   : > { %6467 = vmatpush3.bf16.xpose.msra.mxu1 %v4645_v13  ;;  %6468 = vmatprep.mubr.msk.bf16.mxu1 %vm6981_vm0, %v6980_v0 }
0x2bd3   : > { %6478 = vmatprep.subr.bf16.mxu1 %v6980_v0 }
0x2bd4   : > { %v4638_v15 = vpop.permute.xlu1 %4637 }
0x2bd8   : > { %v4750_v25 = vpop.permute.xlu1 %4749 }
0x2bd9   : > { %6469 = vmatmul.mubr.msk.bf16.vlgmr.msra.gmra.mxu1 %vm199_vm2, %v4638_v15 }
0x2bda   : > { %6479 = vmatpush3.bf16.xpose.msra.mxu1 %v4757_v16  ;;  %6480 = vmatprep.mubr.msk.bf16.mxu1 %vm6981_vm0, %v6980_v0 }
0x2bdb   : > { %6490 = vmatprep.subr.bf16.mxu1 %v6980_v0 }
0x2be1   : > { %6481 = vmatmul.mubr.msk.bf16.vlgmr.msra.gmra.mxu1 %vm199_vm2, %v4750_v25 }
0x2be2   : > { %6494 = vmatprep.mubr.msk.bf16.mxu1 %vm6981_vm0, %v6980_v0 }
0x2c1e   : > { %v4455_v42 = vpop.f32.mrf.mxu1 }
0x2c1f   : > { %v4461_v63 = vmul.f32 0.35355338, %v4455_v42 }
0x2c20   : > { %v6446_v19 = vpop.f32.mrf.mxu1 }
0x2c21   : > { %v4462_v40 = vadd.f32 %v6851_v39, %v4461_v63 }
0x2c22   : > { %v4458_v45 = vpop.f32.mrf.mxu1 }
0x2c23   : > { %v4463_v20 = vsel %vm364_vm4, %v4462_v40, -inf }
0x2c24   : > { %4464 = vmax.xlane.f32.xlu0 %v4463_v20  ;;  %v6447_v21 = vpop.f32.mrf.mxu1 }
0x2c91   : > { %v4569_v22 = vpop.f32.mrf.mxu1 }
0x2c92   : > { %v4575_v23 = vmul.f32 0.35355338, %v4569_v22 }
0x2c93   : > { %v6458_v24 = vpop.f32.mrf.mxu1 }
0x2c94   : > { %v4576_v26 = vadd.f32 %v6851_v39, %v4575_v23 }
0x2c95   : > { %v4572_v8 = vpop.f32.mrf.mxu1 }
0x2c96   : > { %v4577_v27 = vsel %vm364_vm4, %v4576_v26, -inf }
0x2c97   : > { %4578 = vmax.xlane.f32.xlu1 %v4577_v27  ;;  %v6459_v29 = vpop.f32.mrf.mxu1 }
0x2c99   : > { %v4681_v30 = vpop.f32.mrf.mxu1 }
0x2c9a   : > { %v4687_v31 = vmul.f32 0.35355338, %v4681_v30 }
0x2c9b   : > { %v6470_v44 = vpop.f32.mrf.mxu1 }
0x2c9c   : > { %v4688_v61 = vadd.f32 %v6851_v39, %v4687_v31 }
0x2c9d   : > { %v4684_v32 = vpop.f32.mrf.mxu1 }
0x2c9e   : > { %v4689_v33 = vsel %vm364_vm4, %v4688_v61, -inf  ;;  %v4879_v32 = vld [vmem:[#allocation2 + $0x4a0] sm:$0xff] }
0x2c9f   : > { %4690 = vmax.xlane.f32.xlu0 %v4689_v33  ;;  %v6471_v34 = vpop.f32.mrf.mxu1 }
0x2ca1   : > { %v4793_v35 = vpop.f32.mrf.mxu1 }
0x2ca2   : > { %v4799_v43 = vmul.f32 0.35355338, %v4793_v35 }
0x2ca3   : > { %v6482_v17 = vpop.f32.mrf.mxu1 }
0x2ca4   : > { %v4800_v36 = vadd.f32 %v6851_v39, %v4799_v43  ;;  %v4876_v43 = vld [vmem:[#allocation2 + $0x488] sm:$0xff]  ;;  %v4877_v17 = vld [vmem:[#allocation2 + $0x490] sm:$0xff] }
0x2ca5   : > { %v4796_v37 = vpop.f32.mrf.mxu1 }
0x2ca6   : > { %v4801_v47 = vsel %vm364_vm4, %v4800_v36, -inf }
0x2ca7   : > { %4802 = vmax.xlane.f32.xlu0 %v4801_v47  ;;  %v6483_v49 = vpop.f32.mrf.mxu1 }
0x2cad   : > { %v4465_v50 = vpop.xlane.xlu0 %4464 }
0x2cae   : > { %v4466_v51 = vsub.f32 %v4462_v40, %v4465_v50 }
0x2cb0   : > { %v4467_v52 = vmul.f32 1.442695, %v4466_v51 }
0x2cb2   : > { %6828 = vpow2.f32 %v4467_v52 }
0x2cbf   : > { %v6829_v53 = vpop.eup %6828 }
0x2cc0   : > { %v4469_v9 = vsel %vm364_vm4, %v6829_v53, 0.0 }
0x2cc1   : > { %4470 = vadd.xlane.f32.xlu1 %v4469_v9 }
0x2cd2   : > { %4476 = vrot.lane.b32.xlu1 %v7866_v3, %s6983_s17 }
0x2d20   : > { %v4579_v55 = vpop.xlane.xlu1 %4578 }
0x2d21   : > { %v4580_v56 = vsub.f32 %v4576_v26, %v4579_v55 }
0x2d23   : > { %v4581_v46 = vmul.f32 1.442695, %v4580_v56 }
0x2d25   : > { %6830 = vpow2.f32 %v4581_v46 }
0x2d28   : > { %v4691_v57 = vpop.xlane.xlu0 %4690 }
0x2d29   : > { %v4692_v58 = vsub.f32 %v4688_v61, %v4691_v57  ;;  %v4878_v61 = vld [vmem:[#allocation2 + $0x498] sm:$0xff] }
0x2d2a   : > { %v4882_v33 = vpack.c.bf16 %v4879_v32, %v4878_v61 }
0x2d2b   : > { %v4693_v59 = vmul.f32 1.442695, %v4692_v58 }
0x2d2c   : > { %6491 = vmatpush3.bf16.msra.mxu1 %v4882_v33 }
0x2d2d   : > { %6832 = vpow2.f32 %v4693_v59  ;;  %6492 = vmatprep.subr.bf16.mxu1 %v6980_v0 }
0x2d30   : > { %v4803_v1 = vpop.xlane.xlu0 %4802 }
0x2d31   : > { %v4804_v2 = vsub.f32 %v4800_v36, %v4803_v1  ;;  %v4881_v36 = vpack.c.bf16 %v4877_v17, %v4876_v43  ;;  %v5015_v43 = vld [vmem:[#allocation2 + $0x508] sm:$0xff]  ;;  %v5016_v17 = vld [vmem:[#allocation2 + $0x510] sm:$0xff] }
0x2d32   : > { %v6831_v60 = vpop.eup %6830 }
0x2d33   : > { %v4805_v4 = vmul.f32 1.442695, %v4804_v2  ;;  %v4583_v5 = vsel %vm364_vm4, %v6831_v60, 0.0  ;;  %6493 = vmatpush3.bf16.msra.mxu1 %v4881_v36  ;;  %v5023_v36 = vpack.c.bf16 %v5016_v17, %v5015_v43  ;;  %v5389_v17 = vld [vmem:[#allocation2 + $0xa8] sm:$0xff] }
0x2d34   : > { %4584 = vadd.xlane.f32.xlu0 %v4583_v5  ;;  %6506 = vmatprep.subr.bf16.mxu1 %v6980_v0 }
0x2d35   : > { %6834 = vpow2.f32 %v4805_v4  ;;  %v5769_v4 = vld [vmem:[#allocation2 + $0x4a8] ss:$0 sm:$0xff] }
0x2d3a   : > { %v6833_v6 = vpop.eup %6832 }
0x2d3b   : > { %v4695_v7 = vsel %vm364_vm4, %v6833_v6, 0.0 }
0x2d3c   : > { %4696 = vadd.xlane.f32.xlu1 %v4695_v7 }
0x2d42   : > { %v6835_v28 = vpop.eup %6834 }
0x2d43   : > { %v4807_v10 = vsel %vm364_vm4, %v6835_v28, 0.0 }
0x2d44   : > { %4808 = vadd.xlane.f32.xlu0 %v4807_v10 }
0x2d4a   : > { %v4471_v11 = vpop.xlane.xlu1 %4470 }
0x2d4b   : > { %6836 = vrcp.f32 %v4471_v11 }
0x2d4d   : > { %4701 = vrot.lane.b32.xlu1 %v7866_v3, %s6984_s25  ;;  %s8010_s25 = scalar_lea.hbm %s8055_s2, %s5795_s6 }
0x2d4e   : > { %v4477_v62 = vpop.permute.xlu1 %4476 }
0x2d4f   : > { %v4482_v41 = vsel %vm394_vm6, %v4477_v62, 0 }
0x2d50   : > { %6449 = vmatpush3.bf16.msra.mxu0 %v4482_v41  ;;  %v185_v41 = vld [vmem:[%s7144_s23 + $0x30] sm:$0xff] }
0x2d51   : > { %4813 = vrot.lane.b32.xlu1 %v7866_v3, %s6986_s14  ;;  %6460 = vmatprep.subr.bf16.mxu0 %v6980_v0 }
0x2d58   : > { %v6837_v12 = vpop.eup %6836 }
0x2d59   : > { %v4473_v13 = vmul.f32 %v6837_v12, %v6829_v53  ;;  %v6575_v12 = vtrunc.f32 %v185_v41 }
0x2d5a   : > { %4589 = vrot.lane.b32.xlu0 %v7866_v3, %s6985_s26  ;;  %s5552_s26 = scalar_lea.sflag [#allocation4], %s7140_s18 }
0x2d5b   : > { %v4474_v14 = vpack.c.bf16 %v4473_v13, %v4473_v13  ;;  %v6576_v13 = vcvt.f32.s32 %v6575_v12 }
0x2d5d   : > { %6451 = vmatmul.mubr.msk.bf16.vlgmr.msra.gmra.mxu0 %vm364_vm4, %v4474_v14 }
0x2d5e   : > { %6462 = vmatprep.mubr.msk.bf16.mxu0 %vm6981_vm0, %v6980_v0 }
0x2dbd   : > { %v4585_v15 = vpop.xlane.xlu0 %4584 }
0x2dbe   : > { %6838 = vrcp.f32 %v4585_v15 }
0x2dc5   : > { %v4697_v16 = vpop.xlane.xlu1 %4696 }
0x2dc6   : > { %6840 = vrcp.f32 %v4697_v16 }
0x2dc9   : > { %v4702_v40 = vpop.permute.xlu1 %4701 }
0x2dca   : > { %v4707_v20 = vsel %vm394_vm6, %v4702_v40, 0  ;;  %v4958_v40 = vld [vmem:[#allocation2 + $0x4d8] sm:$0xff] }
0x2dcb   : > { %v6839_v25 = vpop.eup %6838 }
0x2dcc   : > { %v4587_v63 = vmul.f32 %v6839_v25, %v6831_v60 }
0x2dcd   : > { %v4809_v42 = vpop.xlane.xlu0 %4808  ;;  %v4814_v22 = vpop.permute.xlu1 %4813 }
0x2dce   : > { %6842 = vrcp.f32 %v4809_v42  ;;  %v4588_v3 = vpack.c.bf16 %v4587_v63, %v4587_v63  ;;  %v4819_v26 = vsel %vm394_vm6, %v4814_v22, 0  ;;  %v4959_v63 = vld [vmem:[#allocation2 + $0x4e0] sm:$0xff] }
0x2dd1   : > { %v4590_v19 = vpop.permute.xlu0 %4589 }
0x2dd2   : > { %v4595_v39 = vsel %vm394_vm6, %v4590_v19, 0  ;;  %v4960_v19 = vld [vmem:[#allocation2 + $0x4e8] sm:$0xff] }
0x2dd3   : > { %6461 = vmatpush3.bf16.msra.mxu0 %v4595_v39  ;;  %v6841_v45 = vpop.eup %6840  ;;  %v4963_v39 = vpack.c.bf16 %v4960_v19, %v4959_v63  ;;  %v5287_v19 = vld [vmem:[#allocation2 + $0x58] sm:$0xff] }
0x2dd4   : > { %6472 = vmatprep.subr.bf16.mxu0 %v6980_v0  ;;  %v4699_v21 = vmul.f32 %v6841_v45, %v6833_v6  ;;  %v5019_v45 = vld [vmem:[#allocation2 + $0x528] sm:$0xff] }
0x2dd6   : > { %6463 = vmatmul.mubr.msk.bf16.vlgmr.msra.gmra.mxu0 %vm364_vm4, %v4588_v3  ;;  %v4700_v23 = vpack.c.bf16 %v4699_v21, %v4699_v21  ;;  %v5017_v21 = vld [vmem:[#allocation2 + $0x518] sm:$0xff] }
0x2dd7   : > { %6473 = vmatpush3.bf16.msra.mxu0 %v4707_v20  ;;  %6474 = vmatprep.mubr.msk.bf16.mxu0 %vm6981_vm0, %v6980_v0  ;;  %v5020_v20 = vld [vmem:[#allocation2 + $0x530] sm:$0xff] }
0x2dd8   : > { %6484 = vmatprep.subr.bf16.mxu0 %v6980_v0  ;;  %v5025_v22 = vpack.c.bf16 %v5020_v20, %v5019_v45  ;;  %v5777_v20 = vld [vmem:[#allocation2 + $0x540] ss:$0 sm:$0xff] }
0x2ddb   : > { %v6843_v24 = vpop.eup %6842 }
0x2ddc   : > { %v4811_v8 = vmul.f32 %v6843_v24, %v6835_v28 }
0x2dde   : > { %6475 = vmatmul.mubr.msk.bf16.vlgmr.msra.gmra.mxu0 %vm364_vm4, %v4700_v23  ;;  %v4812_v27 = vpack.c.bf16 %v4811_v8, %v4811_v8  ;;  %v5018_v23 = vld [vmem:[#allocation2 + $0x520] sm:$0xff] }
0x2ddf   : > { %6485 = vmatpush3.bf16.msra.mxu0 %v4819_v26  ;;  %6486 = vmatprep.mubr.msk.bf16.mxu0 %vm6981_vm0, %v6980_v0  ;;  %v5024_v24 = vpack.c.bf16 %v5018_v23, %v5017_v21  ;;  %v5778_v21 = vld [vmem:[#allocation2 + $0x548] ss:$0 sm:$0xff] }
0x2de0   : > { %6498 = vmatprep.subr.bf16.mxu0 %v6980_v0 }
0x2de6   : > { %6487 = vmatmul.mubr.msk.bf16.vlgmr.msra.gmra.mxu0 %vm364_vm4, %v4812_v27 }
0x2de7   : > { %6502 = vmatprep.mubr.msk.bf16.mxu0 %vm6981_vm0, %v6980_v0  ;;  %6499 = vmatpush3.bf16.msra.mxu0 %v4963_v39  ;;  %v5288_v39 = vld [vmem:[#allocation2 + $0x60] sm:$0xff] }
0x2de8   : > { %6500 = vmatprep.subr.bf16.mxu0 %v6980_v0 }
0x2e1d   : > { %v4518_v29 = vpop.f32.mrf.mxu0 }
0x2e1f   : > { %v6452_v30 = vpop.f32.mrf.mxu0 }
0x2e20   : > { %v5771_v30 = vld [vmem:[#allocation2 + $0x4c0] ss:$0 sm:$0xff] }
0x2e21   : > { %v4521_v31 = vpop.f32.mrf.mxu0 }
0x2e23   : > { %v6453_v44 = vpop.f32.mrf.mxu0 }
0x2e24   : > { %v5772_v44 = vld [vmem:[#allocation2 + $0x4c8] ss:$0 sm:$0xff] }
0x2e96   : > { %v4631_v34 = vpop.f32.mrf.mxu0 }
0x2e97   : > { %4862 = vrot.lane.b32.xlu0 %v4631_v34, %s6993_s3 }
0x2e98   : > { %v6464_v35 = vpop.f32.mrf.mxu0 }
0x2e9a   : > { %v4634_v37 = vpop.f32.mrf.mxu0 }
0x2e9b   : > { %v5013_v37 = vld [vmem:[#allocation2 + $0x4f8] sm:$0xff] }
0x2e9c   : > { %v6465_v47 = vpop.f32.mrf.mxu0 }
0x2e9d   : > { %v5014_v47 = vld [vmem:[#allocation2 + $0x500] sm:$0xff] }
0x2e9e   : > { %v4743_v49 = vpop.f32.mrf.mxu0 }
0x2e9f   : > { %4866 = vrot.lane.b32.xlu1 %v4743_v49, %s6994_s5  ;;  %v5022_v49 = vpack.c.bf16 %v5014_v47, %v5013_v37  ;;  %v182_v47 = vld [vmem:[%s7144_s23 + $0x20] sm:$0xff] }
0x2ea0   : > { %v6476_v50 = vpop.f32.mrf.mxu0 }
0x2ea2   : > { %v4746_v51 = vpop.f32.mrf.mxu0 }
0x2ea4   : > { %v6477_v52 = vpop.f32.mrf.mxu0 }
0x2ea6   : > { %v4855_v53 = vpop.f32.mrf.mxu0 }
0x2ea7   : > { %4870 = vrot.lane.b32.xlu0 %v4855_v53, %s6995_s7 }
0x2ea8   : > { %v6488_v9 = vpop.f32.mrf.mxu0 }
0x2eaa   : > { %v4858_v55 = vpop.f32.mrf.mxu0 }
0x2eac   : > { %v6489_v56 = vpop.f32.mrf.mxu0 }
0x2f09   : > { %v4863_v46 = vpop.permute.xlu0 %4862 }
0x2f0a   : > { %v4873_v58 = vsel %vm199_vm2, %v4518_v29, %v4863_v46 }
0x2f11   : > { %v4867_v57 = vpop.permute.xlu1 %4866 }
0x2f12   : > { %v4874_v59 = vsel %vm846_vm7, %v4873_v58, %v4867_v57  ;;  %v5775_v57 = vld [vmem:[#allocation2 + $0x538] ss:$0 sm:$0xff] }
0x2f19   : > { %v4871_v1 = vpop.permute.xlu0 %4870 }
0x2f1a   : > { %v4875_v2 = vsel %vm849_vm8, %v4874_v59, %v4871_v1 }
0x2f1b   : > { %v4880_v60 = vpack.c.bf16 %v4875_v2, %v4875_v2 }
0x2f1d   : > { %6495 = vmatmul.mubr.msk.bf16.vlgmr.msra.gmra.mxu1 %vm260_vm3, %v4880_v60 }
0x2f1e   : > { %6514 = vmatprep.mubr.msk.bf16.mxu1 %vm6981_vm0, %v6980_v0  ;;  %6507 = vmatpush3.bf16.msra.mxu1 %v5025_v22 }
0x2f1f   : > { %6508 = vmatprep.subr.bf16.mxu1 %v6980_v0 }
0x2f22   : > { %6509 = vmatpush3.bf16.msra.mxu1 %v5024_v24 }
0x2f23   : > { %6510 = vmatprep.subr.bf16.mxu1 %v6980_v0 }
0x2f26   : > { %6511 = vmatpush3.bf16.msra.mxu1 %v5023_v36  ;;  %v5390_v36 = vld [vmem:[#allocation2 + $0xb0] sm:$0xff] }
0x2f27   : > { %6512 = vmatprep.subr.bf16.mxu1 %v6980_v0 }
0x2f2a   : > { %6513 = vmatpush3.bf16.msra.mxu1 %v5022_v49 }
0x2f2b   : > { %6532 = vmatprep.subr.bf16.mxu1 %v6980_v0 }
0x2fdd   : > { %v4925_v5 = vpop.f32.mrf.mxu1 }
0x2fde   : > { %v4926_v6 = vadd.f32 %v5769_v4, %v4925_v5 }
0x2fdf   : > { %v6496_v7 = vpop.f32.mrf.mxu1 }
0x2fe0   : > { %v4931_v28 = vadd.f32 %v4926_v6, %v7859_v54  ;;  %v4957_v54 = vld [vmem:[#allocation2 + $0x4d0] sm:$0xff] }
0x2fe1   : > { %v4928_v10 = vpop.f32.mrf.mxu1  ;;  %v4962_v3 = vpack.c.bf16 %v4958_v40, %v4957_v54  ;;  %v5292_v40 = vpack.c.bf16 %v5288_v39, %v5287_v19  ;;  %v5496_v19 = vld [vmem:[#allocation2 + $0xd0] sm:$0xff] }
0x2fe2   : > { %v4932_v11 = vsel %vm260_vm3, %v4931_v28, 0.0 }
0x2fe3   : > { %4933 = vadd.xlane.f32.xlu1 %v4932_v11  ;;  %v6497_v62 = vpop.f32.mrf.mxu1  ;;  %6501 = vmatpush3.bf16.msra.mxu0 %v4962_v3 }
0x2fe4   : > { %6518 = vmatprep.subr.mxu0 %v6980_v0  ;;  %v187_v62 = vld [vmem:[%s7144_s23 + $0x38] sm:$0xff]  ;;  %s5565_s23 = sshll.u32 %s176_s22, 4  ;;  %s8012_s23 = int_to_ptr.vmem [resolvable:$true] %s5565_s23 }
0x2fe5   : > { %v6577_v41 = vtrunc.f32 %v187_v62  ;;  %s6906_s14 = scalar_lea.vmem %s8012_s23, 128  ;;  %p6913_p10 = scmp.lt.s32.totalorder %s8012_s23, %s6911_s19 }
0x2fe6   : > { %p6907_p8 = scmp.ne.s32.totalorder %s8012_s23, %s6906_s14  ;;  %p6914_p12 = scmp.lt.s32.totalorder %s6912_s20, %s6906_s14 }
0x2fe7   : > { %v6578_v12 = vcvt.f32.s32 %v6577_v41 }
0x2fe8   : > { %p6908_p5 = pnand %p6907_p8, %p8071_p3  ;;  %p6915_p13 = por %p6914_p12, %p6913_p10 }
0x2fea   : > { %p6909_p9 = pneg %p6908_p5 }
0x2fec   : > { %p6916_p0 = pnand %p6915_p13, %p6909_p9 }
0x2ff4   : > { %5126 = vperm.xlu1 %6686, %v6576_v13  }
0x306c   : > { %v4934_v14 = vpop.xlane.xlu1 %4933 }
0x306d   : > { %v4935_v15 = vmul.f32 0.03125, %v4934_v14 }
0x306f   : > { %v4936_v16 = vsub.f32 %v4931_v28, %v4935_v15 }
0x3070   : > { %v5127_v34 = vpop.permute.xlu1 %5126 }
0x3071   : > { %v4937_v25 = vmul.f32 %v4936_v16, %v4936_v16  ;;  %vm5128_vm14 = vcmp.eq.s32.totalorder %v5127_v34, %v7465_v48 }
0x3072   : > { %v5781_v35 = vsel %vm5128_vm14, 1.0, %v6980_v0 }
0x3073   : > { %v4938_v42 = vsel %vm260_vm3, %v4937_v25, 0.0  ;;  %v5290_v25 = vld [vmem:[#allocation2 + $0x70] sm:$0xff] }
0x3074   : > { %4939 = vadd.xlane.f32.xlu0 %v4938_v42 }
0x30fd   : > { %v4940_v26 = vpop.xlane.xlu0 %4939 }
0x30fe   : > { %v4941_v8 = vmul.f32 0.03125, %v4940_v26  ;;  %v5296_v26 = vld [vmem:[#allocation2 + $0x88] sm:$0xff] }
0x3100   : > { %v4942_v27 = vadd.f32 1e-05, %v4941_v8  ;;  %v5297_v8 = vld [vmem:[#allocation2 + $0x90] sm:$0xff] }
0x3102   : > { %6844 = vrsqrt.f32 %v4942_v27  ;;  %v5300_v27 = vpack.c.bf16 %v5297_v8, %v5296_v26 }
0x310f   : > { %v6845_v29 = vpop.eup %6844 }
0x3110   : > { %v4944_v31 = vmul.f32 %v6845_v29, %v4936_v16  ;;  %v5289_v16 = vld [vmem:[#allocation2 + $0x68] sm:$0xff]  ;;  %v5294_v29 = vld [vmem:[#allocation2 + $0x78] sm:$0xff] }
0x3111   : > { %v5293_v63 = vpack.c.bf16 %v5290_v25, %v5289_v16 }
0x3112   : > { %v4950_v61 = vmul.f32 %v5771_v30, %v4944_v31  ;;  %v5295_v30 = vld [vmem:[#allocation2 + $0x80] sm:$0xff] }
0x3113   : > { %v5299_v31 = vpack.c.bf16 %v5295_v30, %v5294_v29 }
0x3114   : > { %v4956_v32 = vadd.f32 %v5772_v44, %v4950_v61 }
0x3116   : > { %v4961_v33 = vpack.c.bf16 %v4956_v32, %v4956_v32 }
0x3118   : > { %6503 = vmatmul.mubr.msk.bf16.vlgmr.msra.gmra.mxu0 %vm260_vm3, %v4961_v33 }
0x3119   : > { %6519 = vmatpush3.msk.msra.mxu0 %vm5134_vm13, %v7634_v18  ;;  %6522 = vmatprep.mubr.msk.f32.mxu0 %vm6981_vm0, %v6980_v0 }
0x311a   : > { %6520 = vmatprep.subr.mxu0 %v6980_v0 }
0x311b   : > { %6521 = vmatpush3.msra.mxu0 %v7632_v38 }
0x311c   : > { %6525 = vmatprep.subr.mxu0 %v6980_v0 }
0x3120   : > { %6523 = vmatmul.mubr.msk.f32.vlgmr.msra.gmra.mxu0 %vm364_vm4, %v5781_v35  ;;  %v5438_v35 = vld [vmem:[#allocation2 + $0xb8] sm:$0xff] }
0x3121   : > { %6526 = vmatpush3.msk.msra.mxu0 %vm5134_vm13, %v7634_v18  ;;  %6529 = vmatprep.mubr.msk.f32.mxu0 %vm6981_vm0, %v6980_v0  ;;  %v5773_v18 = vld [vmem:[#allocation2 + $0x4f0] ss:$0 sm:$0xff]  ;;  %v5440_v43 = vpack.c.bf16 %v5438_v35, %v5438_v35 }
0x3122   : > { %6527 = vmatprep.subr.mxu0 %v6980_v0 }
0x3123   : > { %6528 = vmatpush3.msra.mxu0 %v7632_v38  ;;  %v5445_v37 = vsel %vm203_vm1, %v5440_v43, 0 }
0x3124   : > { %6540 = vmatprep.subr.bf16.mxu0 %v6980_v0 }
0x31d8   : > { %v5006_v50 = vpop.f32.mrf.mxu0 }
0x31d9   : > { %v5007_v51 = vadd.f32 %v5773_v18, %v5006_v50  ;;  %v5393_v18 = vpack.c.bf16 %v5390_v36, %v5389_v17  ;;  %v5439_v50 = vpack.c.bf16 %v182_v47, %v182_v47 }
0x31da   : > { %v6504_v52 = vpop.f32.mrf.mxu0 }
0x31db   : > { %v5012_v53 = vmax.f32 %v5007_v51, 0.0  ;;  %v5387_v52 = vld [vmem:[#allocation2 + $0x98] sm:$0xff] }
0x31dc   : > { %v5009_v38 = vpop.f32.mrf.mxu0 }
0x31dd   : > { %v5021_v9 = vpack.c.bf16 %v5012_v53, %v5012_v53  ;;  %v5388_v53 = vld [vmem:[#allocation2 + $0xa0] sm:$0xff] }
0x31de   : > { %v6505_v55 = vpop.f32.mrf.mxu0 }
0x31df   : > { %6515 = vmatmul.mubr.msk.bf16.vlgmr.msra.gmra.mxu1 %vm1028_vm10, %v5021_v9  ;;  %v5392_v9 = vpack.c.bf16 %v5388_v53, %v5387_v52 }
0x31e0   : > { %v5204_v56 = vpop.f32.mrf.mxu0  ;;  %6536 = vmatprep.mubr.msk.bf16.mxu1 %vm6981_vm0, %v6980_v0  ;;  %6533 = vmatpush3.bf16.msra.mxu1 %v5300_v27 }
0x31e1   : > { %v5291_v3 = vpack.c.bf16 %v5204_v56, %v5204_v56  ;;  %6534 = vmatprep.subr.bf16.mxu1 %v6980_v0 }
0x31e2   : > { %v6524_v46 = vpop.f32.mrf.mxu0 }
0x31e4   : > { %6535 = vmatpush3.bf16.msra.mxu1 %v5299_v31 }
0x31e5   : > { %6548 = vmatprep.subr.bf16.mxu1 %v6980_v0 }
0x329f   : > { %v5068_v58 = vpop.f32.mrf.mxu1 }
0x32a0   : > { %v5069_v59 = vadd.f32 %v5775_v57, %v5068_v58 }
0x32a1   : > { %v6516_v1 = vpop.f32.mrf.mxu1 }
0x32a2   : > { %v5074_v2 = vadd.f32 %v5069_v59, %v4956_v32 }
0x32a3   : > { %v5071_v60 = vpop.f32.mrf.mxu1 }
0x32a4   : > { %v5075_v4 = vsel %vm260_vm3, %v5074_v2, 0.0  ;;  %v5779_v60 = vld [vmem:[#allocation2 + $0x100] ss:$0 sm:$0xff] }
0x32a5   : > { %5076 = vadd.xlane.f32.xlu0 %v5075_v4  ;;  %v6517_v5 = vpop.f32.mrf.mxu1 }
0x32a6   : > { %v5780_v5 = vld [vmem:[#allocation2 + $0x108] ss:$0 sm:$0xff] }
0x332e   : > { %v5077_v6 = vpop.xlane.xlu0 %5076 }
0x332f   : > { %v5078_v7 = vmul.f32 0.03125, %v5077_v6 }
0x3331   : > { %v5079_v28 = vsub.f32 %v5074_v2, %v5078_v7 }
0x3333   : > { %v5080_v10 = vmul.f32 %v5079_v28, %v5079_v28 }
0x3335   : > { %v5081_v11 = vsel %vm260_vm3, %v5080_v10, 0.0 }
0x3336   : > { %5082 = vadd.xlane.f32.xlu0 %v5081_v11 }
0x334c   : > { %5209 = vperm.xlu0 %6687, %v6578_v12   ;;  %v5497_v12 = vld [vmem:[#allocation2 + $0xd8] sm:$0xff] }
0x33bf   : > { %v5083_v13 = vpop.xlane.xlu0 %5082 }
0x33c0   : > { %v5084_v14 = vmul.f32 0.03125, %v5083_v13  ;;  %v5498_v13 = vld [vmem:[#allocation2 + $0xe0] sm:$0xff] }
0x33c1   : > { %v5501_v16 = vpack.c.bf16 %v5498_v13, %v5497_v12 }
0x33c2   : > { %v5085_v15 = vadd.f32 1e-05, %v5084_v14 }
0x33c4   : > { %6846 = vrsqrt.f32 %v5085_v15 }
0x33c7   : > { %v5210_v42 = vpop.permute.xlu0 %5209 }
0x33c8   : > { %vm5211_vm15 = vcmp.eq.s32.totalorder %v5210_v42, %v7465_v48 }
0x33c9   : > { %v5784_v54 = vsel %vm5211_vm15, 1.0, %v6980_v0 }
0x33ca   : > { %6530 = vmatmul.mubr.msk.f32.vlgmr.msra.gmra.mxu0 %vm364_vm4, %v5784_v54 }
0x33cb   : > { %6541 = vmatpush3.bf16.msra.mxu0 %v5293_v63  ;;  %6544 = vmatprep.mubr.msk.bf16.mxu0 %vm6981_vm0, %v6980_v0  ;;  %v5495_v63 = vld [vmem:[#allocation2 + $0xc8] sm:$0xff] }
0x33cc   : > { %6542 = vmatprep.subr.bf16.mxu0 %v6980_v0  ;;  %v5500_v39 = vpack.c.bf16 %v5496_v19, %v5495_v63 }
0x33cf   : > { %6543 = vmatpush3.bf16.msra.mxu0 %v5292_v40 }
0x33d0   : > { %6556 = vmatprep.subr.bf16.mxu0 %v6980_v0 }
0x33d1   : > { %v6847_v45 = vpop.eup %6846 }
0x33d2   : > { %6545 = vmatmul.mubr.msk.bf16.vlgmr.msra.gmra.mxu0 %vm260_vm3, %v5291_v3  ;;  %v5087_v48 = vmul.f32 %v6847_v45, %v5079_v28  ;;  %v5791_v45 = vld [vmem:[#allocation2 + $0xc0] ss:$0 sm:$0xff] }
0x33d3   : > { %6558 = vmatprep.mubr.msk.bf16.mxu0 %vm6981_vm0, %v6980_v0  ;;  %6557 = vmatpush3.bf16.msra.mxu0 %v5445_v37 }
0x33d4   : > { %v5093_v22 = vmul.f32 %v5777_v20, %v5087_v48 }
0x33d6   : > { %v5099_v23 = vadd.f32 %v5778_v21, %v5093_v22 }
0x33d8   : > { %v5100_v24 = vsel %vm260_vm3, %v5099_v23, 0.0 }
0x33d9   : > { %5101 = vadd.xlane.f32.xlu1 %v5100_v24 }
0x33da   : > { %6559 = vmatmul.mubr.msk.bf16.vlgmr.msra.gmra.mxu0 %vm199_vm2, %v5439_v50 }
0x3462   : > { %v5102_v44 = vpop.xlane.xlu1 %5101 }
0x3463   : > { %v5103_v61 = vmul.f32 0.03125, %v5102_v44 }
0x3465   : > { %v5104_v32 = vsub.f32 %v5099_v23, %v5103_v61 }
0x3467   : > { %v5105_v33 = vmul.f32 %v5104_v32, %v5104_v32 }
0x3469   : > { %v5106_v34 = vsel %vm260_vm3, %v5105_v33, 0.0 }
0x346a   : > { %5107 = vadd.xlane.f32.xlu0 %v5106_v34 }
0x348a   : > { %v5283_v49 = vpop.f32.mrf.mxu0 }
0x348b   : > { %v5298_v51 = vpack.c.bf16 %v5283_v49, %v5283_v49 }
0x348c   : > { %v6531_v38 = vpop.f32.mrf.mxu0 }
0x348d   : > { %6537 = vmatmul.mubr.msk.bf16.vlgmr.msra.gmra.mxu1 %vm260_vm3, %v5298_v51 }
0x348e   : > { %6549 = vmatpush3.bf16.msra.mxu1 %v5393_v18  ;;  %6552 = vmatprep.mubr.msk.bf16.mxu1 %vm6981_vm0, %v6980_v0 }
0x348f   : > { %6550 = vmatprep.subr.bf16.mxu1 %v6980_v0 }
0x3492   : > { %v5381_v55 = vpop.f32.mrf.mxu0  ;;  %6551 = vmatpush3.bf16.msra.mxu1 %v5392_v9 }
0x3493   : > { %6562 = vmatprep.subr.bf16.mxu1 %v6980_v0 }
0x3494   : > { %v6546_v56 = vpop.f32.mrf.mxu0 }
0x3496   : > { %v5384_v46 = vpop.f32.mrf.mxu0 }
0x3498   : > { %v6547_v57 = vpop.f32.mrf.mxu0 }
0x349a   : > { %v5481_v10 = vpop.f32.mrf.mxu0 }
0x349c   : > { %v6560_v62 = vpop.f32.mrf.mxu0 }
0x349e   : > { %v5484_v14 = vpop.f32.mrf.mxu0 }
0x34a0   : > { %v6561_v25 = vpop.f32.mrf.mxu0 }
0x34f3   : > { %v5108_v58 = vpop.xlane.xlu0 %5107 }
0x34f4   : > { %v5109_v59 = vmul.f32 0.03125, %v5108_v58 }
0x34f6   : > { %v5110_v1 = vadd.f32 1e-05, %v5109_v59 }
0x34f8   : > { %6848 = vrsqrt.f32 %v5110_v1 }
0x3505   : > { %v6849_v2 = vpop.eup %6848 }
0x3506   : > { %v5112_v4 = vmul.f32 %v6849_v2, %v5104_v32 }
0x3508   : > { %v5118_v6 = vmul.f32 %v5779_v60, %v5112_v4 }
0x350a   : > { %v5124_v7 = vadd.f32 %v5780_v5, %v5118_v6 }
0x350c   : > { %v5391_v28 = vpack.c.bf16 %v5124_v7, %v5124_v7 }
0x350e   : > { %6553 = vmatmul.mubr.msk.bf16.vlgmr.msra.gmra.mxu1 %vm260_vm3, %v5391_v28 }
0x350f   : > { %6566 = vmatprep.mubr.msk.bf16.mxu1 %vm6981_vm0, %v6980_v0  ;;  %6563 = vmatpush3.bf16.msra.mxu1 %v5501_v16 }
0x3510   : > { %6564 = vmatprep.subr.bf16.mxu1 %v6980_v0  ;;  %v5792_v0 = vld [vmem:[#allocation2 + $0xe8] ss:$0 sm:$0xff] }
0x3513   : > { %6565 = vmatpush3.bf16.msra.mxu1 %v5500_v39 }
0x354d   : > { %v5338_v11 = vpop.f32.mrf.mxu1 }
0x354e   : > { %v5382_v54 = vadd.f32 %v5381_v55, %v5338_v11 }
0x354f   : > { %v6538_v41 = vpop.f32.mrf.mxu1 }
0x3551   : > { %v5341_v15 = vpop.f32.mrf.mxu1 }
0x3553   : > { %v6539_v42 = vpop.f32.mrf.mxu1 }
0x35ce   : > { %v5431_v40 = vpop.f32.mrf.mxu1 }
0x35cf   : > { %v5437_v3 = vadd.f32 %v5431_v40, %v5382_v54 }
0x35d0   : > { %v6554_v20 = vpop.f32.mrf.mxu1 }
0x35d1   : > { %v5487_v48 = vadd.f32 %v5481_v10, %v5437_v3 }
0x35d2   : > { %v5434_v21 = vpop.f32.mrf.mxu1 }
0x35d3   : > { %v5493_v22 = vadd.f32 %v5791_v45, %v5487_v48 }
0x35d4   : > { %v6555_v23 = vpop.f32.mrf.mxu1 }
0x35d5   : > { %v5494_v24 = vmax.f32 %v5493_v22, 0.0 }
0x35d7   : > { %v5499_v26 = vpack.c.bf16 %v5494_v24, %v5494_v24 }
0x35d9   : > { %6567 = vmatmul.mubr.msk.bf16.vlgmr.msra.gmra.mxu1 %vm260_vm3, %v5499_v26 }
0x3699   : > { %v5544_v8 = vpop.f32.mrf.mxu1 }
0x369a   : > { %v5545_v27 = vadd.f32 %v5792_v0, %v5544_v8 }
0x369b   : > { %v6568_v29 = vpop.f32.mrf.mxu1 }
0x369c   : > { %5550 = vst [vmem:[%s176_s22] sm:$0xff] %v5545_v27 }
0x369d   : > { %v5547_v30 = vpop.f32.mrf.mxu1 }
0x369e   : > { %6919 = shalt.err (!%p6916_p0)
}
0x369f   : > { %s6920_s24 = scalar_lea.hbm %s8010_s25, 128  ;;  %s6924_s28 = scalar_lea.hbm %s8055_s2, 256 }
0x36a0   : > { %p6921_p11 = scmp.ne.s32.totalorder %s8010_s25, %s6920_s24  ;;  %p6925_p6 = scmp.lt.s32.totalorder %s8010_s25, %s8055_s2 }
0x36a1   : > { %p6926_p7 = scmp.lt.s32.totalorder %s6924_s28, %s6920_s24 }
0x36a2   : > { %p6922_p2 = pnand %p6921_p11, %p8071_p3 }
0x36a3   : > { %p6927_p4 = por %p6926_p7, %p6925_p6 }
0x36a4   : > { %p6923_p1 = pneg %p6922_p2 }
0x36a6   : > { %p6928_p8 = pnand %p6927_p4, %p6923_p1 }
0x36a8   : > { %6931 = shalt.err (!%p6928_p8)
}
0x36a9   : > { %6585 = dma.vmem_to_hbm [thread:$0]  (%p8071_p3), %s8012_s23, 128, %s8010_s25, %s5552_s26   ;;  %v6569_v31 = vpop.f32.mrf.mxu1 }
0x36aa PF: > { %s5577_s5 = sand.u32 1, %s6962_s9   ;;  %p8072_p5 = scmp.ne.s32.totalorder %s8061_s16, 0 }
0x36ab   : > { %p8073_p9 = scmp.ge.s32.totalorder %s6974_s12, 2  ;;  %s5578_s7 = scalar_lea.sflag [#allocation4], %s5577_s5 }
0x36ad   : > { %p6596_p10 = pnand %p8073_p9, %p8072_p5 }
0x36af   : > { %p6597_p12 = pneg %p6596_p10 }
0x36b1   : > { %6957 = dma.done.wait (%p6597_p12), %s5578_s7, 128  }
0x36b2   : > { %6959 = vsyncadd (%p6597_p12), %s5578_s7, 4294967168  ;;  %p16_p13 = scmp.ge.s32.totalorder %s7068_s21, 4   ;;  %s8074_s9 = smov %s6966_s10 }
0x36b3   : > { %s8075_s10 = smov %s6970_s11  ;;  %s8076_s11 = smov %s7088_s29 }
0x36b4   : > { %s8077_s12 = smov %s7068_s21  ;;  %18 = sbr.rel (!%p16_p13) target bundleno = 6 (0x6), region = 78 }
0x36b9   :  { %5583 = vsyncpa [#allocation3], 1 }
0x36ba   :  { %5585 = vsyncpa [#allocation3 + $0x1], 1 }
0x36bb   :  { %5586 = vsyncpa [#allocation6], 1 }
0x36bc   :  { %5588 = vsyncpa [#allocation6 + $0x1], 1 }
0x36bd   :  { %5589 = vsyncpa [#allocation4], 1 }
0x36be   :  { %5591 = vsyncpa [#allocation4 + $0x1], 1 }

</bundles_post_ra>
